<compile_context>
chip_gen: v7x
topology: tpu7x:2x2x1
jax: 0.10.0
libtpu: 0.0.40
codegen_flags: <defaults>
</compile_context>

<pallas_src>
import jax
import jax.numpy as jnp
from jax.experimental import pallas as pl
from jax.experimental.pallas import tpu as pltpu

EPS = 1e-5
LANES = 128
NUM_CORE_GROUPS = 2   # batch split for v7x megacore; also correct on 1-core chips


def _vmem_limit_bytes():
    """~75% of physical VMEM, capped at 100 MiB (safe on v5e/v6e/v7x)."""
    try:
        cap = int(pltpu.get_tpu_info().vmem_capacity_bytes)
    except Exception:
        cap = 64 * 1024 * 1024          # conservative fallback (v7x physical size)
    return max(32 * 1024 * 1024, min((cap * 3) // 4, 100 * 1024 * 1024))


# ---------------------------------------------------------------------------
# In-kernel helpers (traced inline).
# ---------------------------------------------------------------------------
def _conv3x3_deep(pad_sc, patch_sc, w_ref):
    """3x3 'SAME' conv as 3 accumulating deep-K MXU matmuls (grouped by kh).

    pad_sc:   (H+2, W+2, Cp) conv_dtype, zero halo.
    patch_sc: (H, W, 3*Cp)   conv_dtype staging buffer (one kh group at a time).
    w_ref:    (9*Cp, Cp)     conv_dtype flattened HWIO weights.
    Returns (H*W, Cp) float32.
    """
    Hp, Wp, Cp = pad_sc.shape
    H, W = Hp - 2, Wp - 2
    acc = None
    for kh in range(3):
        # kh offset lands on the un-tiled outer axis -> free; kw column offsets in
        # the staging buffer are lane offsets kw*Cp (multiples of 128, aligned).
        for kw in range(3):
            patch_sc[:, :, kw * Cp:(kw + 1) * Cp] = pad_sc[kh:kh + H, kw:kw + W, :]
        part = jnp.dot(patch_sc[...].reshape(H * W, 3 * Cp),
                       w_ref[kh * 3 * Cp:(kh + 1) * 3 * Cp, :],
                       preferred_element_type=jnp.float32)
        acc = part if acc is None else acc + part
    return acc


def _accum_channel_stats(stats_ref, y):
    """stats_ref[0] += per-channel sum, stats_ref[1] += per-channel sum of squares."""
    stats_ref[0:1, :] = stats_ref[0:1, :] + jnp.sum(y, axis=0, keepdims=True)
    stats_ref[1:2, :] = stats_ref[1:2, :] + jnp.sum(y * y, axis=0, keepdims=True)


# ---------------------------------------------------------------------------
# Pass A: conv1 (bias dropped) + BN1 partial stats (per core group).
# ---------------------------------------------------------------------------
def _conv1_kernel(x_ref, w_ref, y_ref, stats_ref, pad_sc, patch_sc):
    n = pl.program_id(1)
    _, H, W, Cp = x_ref.shape

    @pl.when(n == 0)
    def _():
        pad_sc[...] = jnp.zeros_like(pad_sc)        # zero halo once per core group
        stats_ref[...] = jnp.zeros_like(stats_ref)

    pad_sc[1:H + 1, 1:W + 1, :] = x_ref[0].astype(pad_sc.dtype)
    y = _conv3x3_deep(pad_sc, patch_sc, w_ref)       # (H*W, Cp) f32
    y_ref[0] = y.reshape(H, W, Cp).astype(y_ref.dtype)
    _accum_channel_stats(stats_ref, y)


# ---------------------------------------------------------------------------
# Pass B: fused BN1 affine + ReLU -> conv2 -> BN2 partial stats (per core group).
# ---------------------------------------------------------------------------
def _bn_relu_conv2_kernel(y1_ref, scale_ref, shift_ref, w_ref,
                          y2_ref, stats_ref, pad_sc, patch_sc):
    n = pl.program_id(1)
    _, H, W, Cp = y1_ref.shape

    @pl.when(n == 0)
    def _():
        pad_sc[...] = jnp.zeros_like(pad_sc)
        stats_ref[...] = jnp.zeros_like(stats_ref)

    scale = scale_ref[...].reshape(1, 1, Cp)
    shift = shift_ref[...].reshape(1, 1, Cp)
    a = jnp.maximum(y1_ref[0].astype(jnp.float32) * scale + shift, 0.0)
    pad_sc[1:H + 1, 1:W + 1, :] = a.astype(pad_sc.dtype)
    y2 = _conv3x3_deep(pad_sc, patch_sc, w_ref)
    y2_ref[0] = y2.reshape(H, W, Cp).astype(y2_ref.dtype)
    _accum_channel_stats(stats_ref, y2)


# ---------------------------------------------------------------------------
# Pass C: BN2 affine + identity residual + final ReLU (pure element-wise).
# ---------------------------------------------------------------------------
def _bn2_residual_relu_kernel(y2_ref, x_ref, scale_ref, shift_ref, o_ref):
    _, H, W, Cp = y2_ref.shape
    scale = scale_ref[...].reshape(1, 1, Cp)
    shift = shift_ref[...].reshape(1, 1, Cp)
    out = (y2_ref[0].astype(jnp.float32) * scale + shift
           + x_ref[0].astype(jnp.float32))
    o_ref[0] = jnp.maximum(out, 0.0).astype(o_ref.dtype)


# ---------------------------------------------------------------------------
# Wrapper.
# ---------------------------------------------------------------------------
def residual_layer(x, w1, b1, g1, be1, w2, b2, g2, be2,
                   *, conv_dtype=jnp.bfloat16):
    """ResidualLayer forward (stride=1, down_sample=None, Cin == Cout).

    b1/b2 are accepted for parity with the PyTorch module but unused: the
    training-mode BatchNorm mean subtraction cancels the conv bias exactly.
    """
    del b1, b2
    N, H, W, C = x.shape
    assert w1.shape[-1] == C and w2.shape[-1] == C, "identity residual needs Cin == Cout"

    # Lane-dense channel padding (exact; padded gamma/beta/weights are zero).
    # TODO(synk): for C << 128 this inflates traffic/FLOPs by Cp/C; a production
    # small-channel layer would want spatial-into-lane packing instead.
    Cp = ((C + LANES - 1) // LANES) * LANES
    pc = Cp - C
    xp = jnp.pad(x, ((0, 0), (0, 0), (0, 0), (0, pc))) if pc else x

    def prep_w(w):
        if pc:
            w = jnp.pad(w, ((0, 0), (0, 0), (0, pc), (0, pc)))
        return w.reshape(9 * Cp, Cp).astype(conv_dtype)   # taps folded into contraction

    def prep_p(p):
        p = jnp.pad(p, (0, pc)) if pc else p
        return p.astype(jnp.float32)

    w1f, w2f = prep_w(w1), prep_w(w2)
    g1p, be1p, g2p, be2p = prep_p(g1), prep_p(be1), prep_p(g2), prep_p(be2)

    m_count = float(N * H * W)
    vmem_limit = _vmem_limit_bytes()

    # Megacore batch split: leading "parallel" axis of size G, each group writing
    # its own stats slab (combined on the host).  G=1 if the batch doesn't split.
    G = NUM_CORE_GROUPS if (N % NUM_CORE_GROUPS == 0 and N >= NUM_CORE_GROUPS) else 1
    Nper = N // G

    img_spec = pl.BlockSpec((1, H, W, Cp), lambda g, n: (g * Nper + n, 0, 0, 0))
    # TODO(synk): weight block is constant across the grid; pipeline_mode=pl.Buffered(1)
    # would save its double-buffer VMEM at very large Cp (kept default for robustness).
    w_spec = pl.BlockSpec((9 * Cp, Cp), lambda g, n: (0, 0))
    ch_spec = pl.BlockSpec((1, Cp), lambda g, n: (0, 0))
    stats_spec = pl.BlockSpec((None, 2, Cp), lambda g, n: (g, 0, 0))

    scratch = [pltpu.VMEM((H + 2, W + 2, Cp), conv_dtype),   # zero-halo padded activation
               pltpu.VMEM((H, W, 3 * Cp), conv_dtype)]       # per-kh im2col staging buffer

    reduce_params = pltpu.CompilerParams(
        dimension_semantics=("parallel", "arbitrary"),   # per-core stats, batch reduce
        vmem_limit_bytes=vmem_limit)
    parallel_params = pltpu.CompilerParams(
        dimension_semantics=("parallel",),
        vmem_limit_bytes=vmem_limit)

    # ---- Pass A: conv1 + BN1 partial stats --------------------------------
    y1, stats1 = pl.pallas_call(
        _conv1_kernel,
        grid_spec=pltpu.PrefetchScalarGridSpec(
            num_scalar_prefetch=0, grid=(G, Nper),
            in_specs=[img_spec, w_spec],
            out_specs=[img_spec, stats_spec],
            scratch_shapes=scratch),
        out_shape=(jax.ShapeDtypeStruct((N, H, W, Cp), conv_dtype),
                   jax.ShapeDtypeStruct((G, 2, Cp), jnp.float32)),
        compiler_params=reduce_params,
    )(xp, w1f)

    def bn_affine(stats, gamma, beta):
        tot = jnp.sum(stats, axis=0)                            # combine per-core slabs
        mean = tot[0] / m_count
        var = jnp.maximum(tot[1] / m_count - mean * mean, 0.0)  # biased variance
        scale = gamma * jax.lax.rsqrt(var + EPS)
        shift = beta - mean * scale
        return scale.reshape(1, Cp), shift.reshape(1, Cp)

    sc1, sh1 = bn_affine(stats1, g1p, be1p)

    # ---- Pass B: BN1+ReLU affine, conv2, BN2 partial stats ------------------
    y2, stats2 = pl.pallas_call(
        _bn_relu_conv2_kernel,
        grid_spec=pltpu.PrefetchScalarGridSpec(
            num_scalar_prefetch=0, grid=(G, Nper),
            in_specs=[img_spec, ch_spec, ch_spec, w_spec],
            out_specs=[img_spec, stats_spec],
            scratch_shapes=scratch),
        out_shape=(jax.ShapeDtypeStruct((N, H, W, Cp), conv_dtype),
                   jax.ShapeDtypeStruct((G, 2, Cp), jnp.float32)),
        compiler_params=reduce_params,
    )(y1, sc1, sh1, w2f)

    sc2, sh2 = bn_affine(stats2, g2p, be2p)

    # ---- Pass C: BN2 affine + identity residual + final ReLU ----------------
    img_spec_c = pl.BlockSpec((1, H, W, Cp), lambda n: (n, 0, 0, 0))
    ch_spec_c = pl.BlockSpec((1, Cp), lambda n: (0, 0))

    out_p = pl.pallas_call(
        _bn2_residual_relu_kernel,
        grid_spec=pltpu.PrefetchScalarGridSpec(
            num_scalar_prefetch=0, grid=(N,),
            in_specs=[img_spec_c, img_spec_c, ch_spec_c, ch_spec_c],
            out_specs=img_spec_c,
            scratch_shapes=[]),
        out_shape=jax.ShapeDtypeStruct((N, H, W, Cp), x.dtype),
        compiler_params=parallel_params,
    )(y2, xp, sc2, sh2)

    return out_p[..., :C] if pc else out_p


# ---------------------------------------------------------------------------
# Pure-JAX reference (biases included, to verify the bias-cancellation claim).
# ---------------------------------------------------------------------------
def ref_forward(x, w1, b1, g1, be1, w2, b2, g2, be2):
    def conv(h, w, b):
        return jax.lax.conv_general_dilated(
            h, w, window_strides=(1, 1), padding='SAME',
            dimension_numbers=('NHWC', 'HWIO', 'NHWC')) + b.reshape(1, 1, 1, -1)

    def bn(y, g, be):
        mean = y.mean(axis=(0, 1, 2), keepdims=True)
        var = ((y - mean) ** 2).mean(axis=(0, 1, 2), keepdims=True)
        return ((y - mean) * jax.lax.rsqrt(var + EPS)
                * g.reshape(1, 1, 1, -1) + be.reshape(1, 1, 1, -1))

    y = jnp.maximum(bn(conv(x, w1, b1), g1, be1), 0.0)
    y2 = bn(conv(y, w2, b2), g2, be2)
    return jnp.maximum(y2 + x, 0.0)


if __name__ == "__main__":
    N, C, H, W = 2, 4, 16, 16          # in_channels == out_channels, stride=1
    key = jax.random.PRNGKey(0)
    ks = jax.random.split(key, 9)

    x = jax.random.normal(ks[0], (N, H, W, C), jnp.float32)
    w1 = jax.random.normal(ks[1], (3, 3, C, C), jnp.float32) * 0.1
    b1 = jax.random.normal(ks[2], (C,), jnp.float32) * 0.1
    g1 = 1.0 + 0.1 * jax.random.normal(ks[3], (C,), jnp.float32)
    be1 = 0.1 * jax.random.normal(ks[4], (C,), jnp.float32)
    w2 = jax.random.normal(ks[5], (3, 3, C, C), jnp.float32) * 0.1
    b2 = jax.random.normal(ks[6], (C,), jnp.float32) * 0.1
    g2 = 1.0 + 0.1 * jax.random.normal(ks[7], (C,), jnp.float32)
    be2 = 0.1 * jax.random.normal(ks[8], (C,), jnp.float32)

    ref = ref_forward(x, w1, b1, g1, be1, w2, b2, g2, be2)

    # Default bf16 path (bf16 MXU inputs, bf16 inter-pass tensors, f32 BN stats).
    out = residual_layer(x, w1, b1, g1, be1, w2, b2, g2, be2)
    out = jax.block_until_ready(out)
    assert out.shape == (N, H, W, C)
    assert jnp.allclose(out, ref, rtol=5e-2, atol=5e-2), "bf16 path mismatch vs reference"

    # f32 path: validates the restructured math (per-kh deep-K conv, fused one-pass
    # BN, bias drop, channel padding, per-core stats) at tight tolerance.
    out_f32 = residual_layer(x, w1, b1, g1, be1, w2, b2, g2, be2,
                             conv_dtype=jnp.float32)
    out_f32 = jax.block_until_ready(out_f32)
    assert jnp.allclose(out_f32, ref, rtol=1e-4, atol=1e-4), "f32 path mismatch vs reference"

    print("KERNEL_OK")
</pallas_src>

<mosaic_0001>
module attributes {stable_mosaic.version = 11 : i64} {
  func.func @_conv1_kernel(%arg0: i32, %arg1: i32, %arg2: memref<1x16x16x128xf32, #tpu.memory_space<vmem>>, %arg3: memref<1152x128xbf16, #tpu.memory_space<vmem>>, %arg4: memref<1x16x16x128xbf16, #tpu.memory_space<vmem>>, %arg5: memref<1x2x128xf32, #tpu.memory_space<vmem>>, %arg6: memref<18x18x128xbf16, #tpu.memory_space<vmem>>, %arg7: memref<16x16x384xbf16, #tpu.memory_space<vmem>>) attributes {dimension_semantics = [#tpu.dimension_semantics<parallel>, #tpu.dimension_semantics<arbitrary>], iteration_bounds = array<i64: 2, 1>, scalar_prefetch = 0 : i64, scratch_operands = 2 : i64, tpu.core_type = #tpu.core_type<tc>, window_params = [{transform_indices = @transform_0, window_bounds = array<i64: 1, 16, 16, 128>}, {pipeline_mode = #tpu.pipeline_mode<synchronous>, transform_indices = @transform_1, window_bounds = array<i64: 1152, 128>}, {transform_indices = @transform_2, window_bounds = array<i64: 1, 16, 16, 128>}, {transform_indices = @transform_3, window_bounds = array<i64: 1, 2, 128>}]} {
    %c0_i32 = arith.constant 0 : i32
    %0 = arith.cmpi eq, %arg1, %c0_i32 : i32
    %1 = arith.extui %0 : i1 to i32
    %c0_i32_0 = arith.constant 0 : i32
    %2 = arith.cmpi ne, %1, %c0_i32_0 : i32
    scf.if %2 {
      %cst_90 = arith.constant 0.000000e+00 : bf16
      %61 = vector.broadcast %cst_90 : bf16 to vector<18x18x128xbf16>
      %c0_91 = arith.constant 0 : index
      %c0_92 = arith.constant 0 : index
      %c0_93 = arith.constant 0 : index
      %62 = vector.load %arg6[%c0_91, %c0_92, %c0_93] : memref<18x18x128xbf16, #tpu.memory_space<vmem>>, vector<18x18x128xbf16>
      tpu.vector_store %arg6[%c0_91, %c0_92, %c0_93], %61 {strides = array<i32>} : memref<18x18x128xbf16, #tpu.memory_space<vmem>>, vector<18x18x128xbf16>,
      %cst_94 = arith.constant 0.000000e+00 : f32
      %63 = vector.broadcast %cst_94 : f32 to vector<2x128xf32>
      %c0_95 = arith.constant 0 : index
      %c0_96 = arith.constant 0 : index
      %c0_97 = arith.constant 0 : index
      %64 = vector.load %arg5[%c0_95, %c0_96, %c0_97] : memref<1x2x128xf32, #tpu.memory_space<vmem>>, vector<1x2x128xf32>
      %65 = vector.shape_cast %64 : vector<1x2x128xf32> to vector<2x128xf32>
      %66 = vector.shape_cast %63 : vector<2x128xf32> to vector<1x2x128xf32>
      tpu.vector_store %arg5[%c0_95, %c0_96, %c0_97], %66 {strides = array<i32>} : memref<1x2x128xf32, #tpu.memory_space<vmem>>, vector<1x2x128xf32>,
    } else {
    }
    %c0 = arith.constant 0 : index
    %c0_1 = arith.constant 0 : index
    %c0_2 = arith.constant 0 : index
    %c0_3 = arith.constant 0 : index
    %3 = vector.load %arg2[%c0, %c0_1, %c0_2, %c0_3] : memref<1x16x16x128xf32, #tpu.memory_space<vmem>>, vector<1x16x16x128xf32>
    %4 = vector.shape_cast %3 : vector<1x16x16x128xf32> to vector<16x16x128xf32>
    %5 = arith.truncf %4 : vector<16x16x128xf32> to vector<16x16x128xbf16>
    %c1 = arith.constant 1 : index
    %c1_4 = arith.constant 1 : index
    %c0_5 = arith.constant 0 : index
    %6 = vector.load %arg6[%c1, %c1_4, %c0_5] : memref<18x18x128xbf16, #tpu.memory_space<vmem>>, vector<16x16x128xbf16>
    tpu.vector_store %arg6[%c1, %c1_4, %c0_5], %5 {strides = array<i32>} : memref<18x18x128xbf16, #tpu.memory_space<vmem>>, vector<16x16x128xbf16>,
    %c0_6 = arith.constant 0 : index
    %c0_7 = arith.constant 0 : index
    %c0_8 = arith.constant 0 : index
    %7 = vector.load %arg6[%c0_6, %c0_7, %c0_8] : memref<18x18x128xbf16, #tpu.memory_space<vmem>>, vector<16x16x128xbf16>
    %c0_9 = arith.constant 0 : index
    %c0_10 = arith.constant 0 : index
    %c0_11 = arith.constant 0 : index
    %8 = vector.load %arg7[%c0_9, %c0_10, %c0_11] : memref<16x16x384xbf16, #tpu.memory_space<vmem>>, vector<16x16x128xbf16>
    tpu.vector_store %arg7[%c0_9, %c0_10, %c0_11], %7 {strides = array<i32>} : memref<16x16x384xbf16, #tpu.memory_space<vmem>>, vector<16x16x128xbf16>,
    %c0_12 = arith.constant 0 : index
    %c1_13 = arith.constant 1 : index
    %c0_14 = arith.constant 0 : index
    %9 = vector.load %arg6[%c0_12, %c1_13, %c0_14] : memref<18x18x128xbf16, #tpu.memory_space<vmem>>, vector<16x16x128xbf16>
    %c0_15 = arith.constant 0 : index
    %c0_16 = arith.constant 0 : index
    %c128 = arith.constant 128 : index
    %10 = vector.load %arg7[%c0_15, %c0_16, %c128] : memref<16x16x384xbf16, #tpu.memory_space<vmem>>, vector<16x16x128xbf16>
    tpu.vector_store %arg7[%c0_15, %c0_16, %c128], %9 {strides = array<i32>} : memref<16x16x384xbf16, #tpu.memory_space<vmem>>, vector<16x16x128xbf16>,
    %c0_17 = arith.constant 0 : index
    %c2 = arith.constant 2 : index
    %c0_18 = arith.constant 0 : index
    %11 = vector.load %arg6[%c0_17, %c2, %c0_18] : memref<18x18x128xbf16, #tpu.memory_space<vmem>>, vector<16x16x128xbf16>
    %c0_19 = arith.constant 0 : index
    %c0_20 = arith.constant 0 : index
    %c256 = arith.constant 256 : index
    %12 = vector.load %arg7[%c0_19, %c0_20, %c256] : memref<16x16x384xbf16, #tpu.memory_space<vmem>>, vector<16x16x128xbf16>
    tpu.vector_store %arg7[%c0_19, %c0_20, %c256], %11 {strides = array<i32>} : memref<16x16x384xbf16, #tpu.memory_space<vmem>>, vector<16x16x128xbf16>,
    %c0_21 = arith.constant 0 : index
    %c0_22 = arith.constant 0 : index
    %c0_23 = arith.constant 0 : index
    %13 = vector.load %arg7[%c0_21, %c0_22, %c0_23] : memref<16x16x384xbf16, #tpu.memory_space<vmem>>, vector<16x16x384xbf16>
    %14 = vector.shape_cast %13 : vector<16x16x384xbf16> to vector<256x384xbf16>
    %c0_24 = arith.constant 0 : index
    %c0_25 = arith.constant 0 : index
    %15 = vector.load %arg3[%c0_24, %c0_25] : memref<1152x128xbf16, #tpu.memory_space<vmem>>, vector<384x128xbf16>
    %cst = arith.constant dense<0.000000e+00> : vector<256x128xf32>
    %16 = tpu.matmul %14, %15, %cst {dimension_numbers = #tpu.dot_dimension_numbers<[1], [0], [0], [1], [0, 0, 1, 1], [], []>} : vector<256x384xbf16>, vector<384x128xbf16>, vector<256x128xf32> -> vector<256x128xf32>
    %c1_26 = arith.constant 1 : index
    %c0_27 = arith.constant 0 : index
    %c0_28 = arith.constant 0 : index
    %17 = vector.load %arg6[%c1_26, %c0_27, %c0_28] : memref<18x18x128xbf16, #tpu.memory_space<vmem>>, vector<16x16x128xbf16>
    %c0_29 = arith.constant 0 : index
    %c0_30 = arith.constant 0 : index
    %c0_31 = arith.constant 0 : index
    %18 = vector.load %arg7[%c0_29, %c0_30, %c0_31] : memref<16x16x384xbf16, #tpu.memory_space<vmem>>, vector<16x16x128xbf16>
    tpu.vector_store %arg7[%c0_29, %c0_30, %c0_31], %17 {strides = array<i32>} : memref<16x16x384xbf16, #tpu.memory_space<vmem>>, vector<16x16x128xbf16>,
    %c1_32 = arith.constant 1 : index
    %c1_33 = arith.constant 1 : index
    %c0_34 = arith.constant 0 : index
    %19 = vector.load %arg6[%c1_32, %c1_33, %c0_34] : memref<18x18x128xbf16, #tpu.memory_space<vmem>>, vector<16x16x128xbf16>
    %c0_35 = arith.constant 0 : index
    %c0_36 = arith.constant 0 : index
    %c128_37 = arith.constant 128 : index
    %20 = vector.load %arg7[%c0_35, %c0_36, %c128_37] : memref<16x16x384xbf16, #tpu.memory_space<vmem>>, vector<16x16x128xbf16>
    tpu.vector_store %arg7[%c0_35, %c0_36, %c128_37], %19 {strides = array<i32>} : memref<16x16x384xbf16, #tpu.memory_space<vmem>>, vector<16x16x128xbf16>,
    %c1_38 = arith.constant 1 : index
    %c2_39 = arith.constant 2 : index
    %c0_40 = arith.constant 0 : index
    %21 = vector.load %arg6[%c1_38, %c2_39, %c0_40] : memref<18x18x128xbf16, #tpu.memory_space<vmem>>, vector<16x16x128xbf16>
    %c0_41 = arith.constant 0 : index
    %c0_42 = arith.constant 0 : index
    %c256_43 = arith.constant 256 : index
    %22 = vector.load %arg7[%c0_41, %c0_42, %c256_43] : memref<16x16x384xbf16, #tpu.memory_space<vmem>>, vector<16x16x128xbf16>
    tpu.vector_store %arg7[%c0_41, %c0_42, %c256_43], %21 {strides = array<i32>} : memref<16x16x384xbf16, #tpu.memory_space<vmem>>, vector<16x16x128xbf16>,
    %c0_44 = arith.constant 0 : index
    %c0_45 = arith.constant 0 : index
    %c0_46 = arith.constant 0 : index
    %23 = vector.load %arg7[%c0_44, %c0_45, %c0_46] : memref<16x16x384xbf16, #tpu.memory_space<vmem>>, vector<16x16x384xbf16>
    %24 = vector.shape_cast %23 : vector<16x16x384xbf16> to vector<256x384xbf16>
    %c384 = arith.constant 384 : index
    %c0_47 = arith.constant 0 : index
    %25 = vector.load %arg3[%c384, %c0_47] : memref<1152x128xbf16, #tpu.memory_space<vmem>>, vector<384x128xbf16>
    %cst_48 = arith.constant dense<0.000000e+00> : vector<256x128xf32>
    %26 = tpu.matmul %24, %25, %cst_48 {dimension_numbers = #tpu.dot_dimension_numbers<[1], [0], [0], [1], [0, 0, 1, 1], [], []>} : vector<256x384xbf16>, vector<384x128xbf16>, vector<256x128xf32> -> vector<256x128xf32>
    %27 = arith.addf %16, %26 : vector<256x128xf32>
    %c2_49 = arith.constant 2 : index
    %c0_50 = arith.constant 0 : index
    %c0_51 = arith.constant 0 : index
    %28 = vector.load %arg6[%c2_49, %c0_50, %c0_51] : memref<18x18x128xbf16, #tpu.memory_space<vmem>>, vector<16x16x128xbf16>
    %c0_52 = arith.constant 0 : index
    %c0_53 = arith.constant 0 : index
    %c0_54 = arith.constant 0 : index
    %29 = vector.load %arg7[%c0_52, %c0_53, %c0_54] : memref<16x16x384xbf16, #tpu.memory_space<vmem>>, vector<16x16x128xbf16>
    tpu.vector_store %arg7[%c0_52, %c0_53, %c0_54], %28 {strides = array<i32>} : memref<16x16x384xbf16, #tpu.memory_space<vmem>>, vector<16x16x128xbf16>,
    %c2_55 = arith.constant 2 : index
    %c1_56 = arith.constant 1 : index
    %c0_57 = arith.constant 0 : index
    %30 = vector.load %arg6[%c2_55, %c1_56, %c0_57] : memref<18x18x128xbf16, #tpu.memory_space<vmem>>, vector<16x16x128xbf16>
    %c0_58 = arith.constant 0 : index
    %c0_59 = arith.constant 0 : index
    %c128_60 = arith.constant 128 : index
    %31 = vector.load %arg7[%c0_58, %c0_59, %c128_60] : memref<16x16x384xbf16, #tpu.memory_space<vmem>>, vector<16x16x128xbf16>
    tpu.vector_store %arg7[%c0_58, %c0_59, %c128_60], %30 {strides = array<i32>} : memref<16x16x384xbf16, #tpu.memory_space<vmem>>, vector<16x16x128xbf16>,
    %c2_61 = arith.constant 2 : index
    %c2_62 = arith.constant 2 : index
    %c0_63 = arith.constant 0 : index
    %32 = vector.load %arg6[%c2_61, %c2_62, %c0_63] : memref<18x18x128xbf16, #tpu.memory_space<vmem>>, vector<16x16x128xbf16>
    %c0_64 = arith.constant 0 : index
    %c0_65 = arith.constant 0 : index
    %c256_66 = arith.constant 256 : index
    %33 = vector.load %arg7[%c0_64, %c0_65, %c256_66] : memref<16x16x384xbf16, #tpu.memory_space<vmem>>, vector<16x16x128xbf16>
    tpu.vector_store %arg7[%c0_64, %c0_65, %c256_66], %32 {strides = array<i32>} : memref<16x16x384xbf16, #tpu.memory_space<vmem>>, vector<16x16x128xbf16>,
    %c0_67 = arith.constant 0 : index
    %c0_68 = arith.constant 0 : index
    %c0_69 = arith.constant 0 : index
    %34 = vector.load %arg7[%c0_67, %c0_68, %c0_69] : memref<16x16x384xbf16, #tpu.memory_space<vmem>>, vector<16x16x384xbf16>
    %35 = vector.shape_cast %34 : vector<16x16x384xbf16> to vector<256x384xbf16>
    %c768 = arith.constant 768 : index
    %c0_70 = arith.constant 0 : index
    %36 = vector.load %arg3[%c768, %c0_70] : memref<1152x128xbf16, #tpu.memory_space<vmem>>, vector<384x128xbf16>
    %cst_71 = arith.constant dense<0.000000e+00> : vector<256x128xf32>
    %37 = tpu.matmul %35, %36, %cst_71 {dimension_numbers = #tpu.dot_dimension_numbers<[1], [0], [0], [1], [0, 0, 1, 1], [], []>} : vector<256x384xbf16>, vector<384x128xbf16>, vector<256x128xf32> -> vector<256x128xf32>
    %38 = arith.addf %27, %37 : vector<256x128xf32>
    %39 = vector.shape_cast %38 : vector<256x128xf32> to vector<16x16x128xf32>
    %40 = arith.truncf %39 : vector<16x16x128xf32> to vector<16x16x128xbf16>
    %c0_72 = arith.constant 0 : index
    %c0_73 = arith.constant 0 : index
    %c0_74 = arith.constant 0 : index
    %c0_75 = arith.constant 0 : index
    %41 = vector.load %arg4[%c0_72, %c0_73, %c0_74, %c0_75] : memref<1x16x16x128xbf16, #tpu.memory_space<vmem>>, vector<1x16x16x128xbf16>
    %42 = vector.shape_cast %41 : vector<1x16x16x128xbf16> to vector<16x16x128xbf16>
    %43 = vector.shape_cast %40 : vector<16x16x128xbf16> to vector<1x16x16x128xbf16>
    tpu.vector_store %arg4[%c0_72, %c0_73, %c0_74, %c0_75], %43 {strides = array<i32>} : memref<1x16x16x128xbf16, #tpu.memory_space<vmem>>, vector<1x16x16x128xbf16>,
    %c0_76 = arith.constant 0 : index
    %c0_77 = arith.constant 0 : index
    %c0_78 = arith.constant 0 : index
    %44 = vector.load %arg5[%c0_76, %c0_77, %c0_78] : memref<1x2x128xf32, #tpu.memory_space<vmem>>, vector<1x1x128xf32>
    %45 = vector.shape_cast %44 : vector<1x1x128xf32> to vector<1x128xf32>
    %cst_79 = arith.constant dense<0.000000e+00> : vector<128xf32>
    %46 = vector.multi_reduction <add>, %38, %cst_79 [0] : vector<256x128xf32> to vector<128xf32>
    %47 = vector.shape_cast %46 : vector<128xf32> to vector<1x128xf32>
    %48 = arith.addf %45, %47 : vector<1x128xf32>
    %c0_80 = arith.constant 0 : index
    %c0_81 = arith.constant 0 : index
    %c0_82 = arith.constant 0 : index
    %49 = vector.load %arg5[%c0_80, %c0_81, %c0_82] : memref<1x2x128xf32, #tpu.memory_space<vmem>>, vector<1x1x128xf32>
    %50 = vector.shape_cast %49 : vector<1x1x128xf32> to vector<1x128xf32>
    %51 = vector.shape_cast %48 : vector<1x128xf32> to vector<1x1x128xf32>
    tpu.vector_store %arg5[%c0_80, %c0_81, %c0_82], %51 {strides = array<i32>} : memref<1x2x128xf32, #tpu.memory_space<vmem>>, vector<1x1x128xf32>,
    %c0_83 = arith.constant 0 : index
    %c1_84 = arith.constant 1 : index
    %c0_85 = arith.constant 0 : index
    %52 = vector.load %arg5[%c0_83, %c1_84, %c0_85] : memref<1x2x128xf32, #tpu.memory_space<vmem>>, vector<1x1x128xf32>
    %53 = vector.shape_cast %52 : vector<1x1x128xf32> to vector<1x128xf32>
    %54 = arith.mulf %38, %38 : vector<256x128xf32>
    %cst_86 = arith.constant dense<0.000000e+00> : vector<128xf32>
    %55 = vector.multi_reduction <add>, %54, %cst_86 [0] : vector<256x128xf32> to vector<128xf32>
    %56 = vector.shape_cast %55 : vector<128xf32> to vector<1x128xf32>
    %57 = arith.addf %53, %56 : vector<1x128xf32>
    %c0_87 = arith.constant 0 : index
    %c1_88 = arith.constant 1 : index
    %c0_89 = arith.constant 0 : index
    %58 = vector.load %arg5[%c0_87, %c1_88, %c0_89] : memref<1x2x128xf32, #tpu.memory_space<vmem>>, vector<1x1x128xf32>
    %59 = vector.shape_cast %58 : vector<1x1x128xf32> to vector<1x128xf32>
    %60 = vector.shape_cast %57 : vector<1x128xf32> to vector<1x1x128xf32>
    tpu.vector_store %arg5[%c0_87, %c1_88, %c0_89], %60 {strides = array<i32>} : memref<1x2x128xf32, #tpu.memory_space<vmem>>, vector<1x1x128xf32>,
    return
  }
  func.func @transform_0(%arg0: i32, %arg1: i32) -> (i32, i32, i32, i32) {
    %c1_i32 = arith.constant 1 : i32
    %0 = arith.muli %arg0, %c1_i32 : i32
    %1 = arith.addi %0, %arg1 : i32
    %c0_i32 = arith.constant 0 : i32
    %c0_i32_0 = arith.constant 0 : i32
    %c0_i32_1 = arith.constant 0 : i32
    %c0_i32_2 = arith.constant 0 : i32
    return %1, %c0_i32, %c0_i32_0, %c0_i32_1 : i32, i32, i32, i32
  }
  func.func @transform_1(%arg0: i32, %arg1: i32) -> (i32, i32) {
    %c0_i32 = arith.constant 0 : i32
    %c0_i32_0 = arith.constant 0 : i32
    %c0_i32_1 = arith.constant 0 : i32
    return %c0_i32, %c0_i32_0 : i32, i32
  }
  func.func @transform_2(%arg0: i32, %arg1: i32) -> (i32, i32, i32, i32) {
    %c1_i32 = arith.constant 1 : i32
    %0 = arith.muli %arg0, %c1_i32 : i32
    %1 = arith.addi %0, %arg1 : i32
    %c0_i32 = arith.constant 0 : i32
    %c0_i32_0 = arith.constant 0 : i32
    %c0_i32_1 = arith.constant 0 : i32
    %c0_i32_2 = arith.constant 0 : i32
    return %1, %c0_i32, %c0_i32_0, %c0_i32_1 : i32, i32, i32, i32
  }
  func.func @transform_3(%arg0: i32, %arg1: i32) -> (i32, i32, i32) {
    %c0_i32 = arith.constant 0 : i32
    %c0_i32_0 = arith.constant 0 : i32
    %c0_i32_1 = arith.constant 0 : i32
    return %arg0, %c0_i32, %c0_i32_0 : i32, i32, i32
  }
}

</mosaic_0001>

<bundles_post_ra>
// kernel: tpu_custom_call.1
= control target key start
LH: loop header
LB: loop body
LE: loop exit
PB: predicated region body
PF: predicated region fallthrough
CT: control target
= control target key end

     0   :  { %9 = vsyncpa [#allocation5], 0  ;;  %s8121_s0 = inlined_call_operand.hbm [shape: f32[2,16,16,128], index: 0, kind: input, shape index: {}]   ;;  %s8122_s1 = inlined_call_operand.hbm [shape: bf16[1152,128], index: 1, kind: input, shape index: {}]   ;;  %s8123_s2 = inlined_call_operand.hbm [shape: bf16[2,16,16,128], index: 2, kind: output, shape index: {0}]   ;;  %s8124_s3 = inlined_call_operand.hbm [shape: f32[2,2,128], index: 3, kind: output, shape index: {1}]  }
   0x1   :  { %11 = vsyncpa [#allocation5 + $0x1], 0 }
   0x2   :  { %12 = vsyncpa [#allocation8], 0 }
   0x3   :  { %13 = vsyncpa [#allocation6], 0 }
   0x4   :  { %15 = vsyncpa [#allocation6 + $0x1], 0 }
   0x5   :  { %16 = vsyncpa [#allocation11], 0 }
   0x6   :  { %18 = vsyncpa [#allocation11 + $0x1], 0  ;;  %s7307_s12 = smov 0   ;;  %s7309_s13 = smov 0  }
   0x7   :  { %s7311_s14 = smov 0   ;;  %s7313_s15 = smov 0  }
   0x8   :  { %s7315_s16 = smov 0   ;;  %s7317_s17 = smov 0  }
   0x9 LB: > { %s5414_s18 = sadd.s32 4294967295, %s7273_s17   ;;  %s5415_s19 = sadd.s32 4294967294, %s7273_s17   ;;  %s7273_s17 = sphi %s7317_s17, %s24_s17   ;;  %s7269_s16 = sphi %s7315_s16, %s8158_s16   ;;  %s7265_s15 = sphi %s7313_s15, %s8157_s15   ;;  %s7261_s14 = sphi %s7311_s14, %s8156_s14   ;;  %s7257_s13 = sphi %s7309_s13, %s8155_s13   ;;  %s7253_s12 = sphi %s7307_s12, %s8154_s12  }
   0xa   : > { %p58_p0 = scmp.ne.s32.totalorder %s7257_s13, %s7253_s12  ;;  %p7341_p1 = scmp.eq.s32.totalorder %s5414_s18, 0 }
   0xb   : > { %p7345_p2 = scmp.eq.s32.totalorder %s5414_s18, 1  ;;  %p111_p3 = scmp.eq.s32.totalorder %s5415_s19, 1 }
   0xc   : > { %s8129_s20 = scalar_select %p7341_p1, 1, 0 }
   0xd   : > { %s8130_s21 = scalar_select %p7345_p2, 1, 0 }
   0xe   : > { %p7351_p4 = por %p7341_p1, %p58_p0  ;;  %p5416_p5 = scmp.ge.s32.totalorder %s7273_s17, 1 }
   0xf   : > { %p7356_p6 = por %p111_p3, %p58_p0  ;;  %p144_p7 = scmp.lt.s32.totalorder %s7273_s17, 3 }
  0x10   : > { %s8131_s22 = scalar_select %p7351_p4, 1, 0 }
  0x11   : > { %s8132_s23 = scalar_select %p7356_p6, 1, 0 }
  0x12   : > { %p7361_p8 = pnand %p5416_p5, %p144_p7  ;;  %s7275_s25 = smov [#allocation7]  }
  0x13   : > { %s156_s26 = sshll.u32 %s7275_s25, 4  ;;  %s36_s28 = sadd.s32 1, %s7269_s16  ;;  %s157_s26 = int_to_ptr.vmem [resolvable:$true] %s156_s26 }
  0x14   : > { %s8133_s24 = scalar_select %p7361_p8, 1, 0 }
  0x15   : > { %p6709_p9 = pneg %p7361_p8  ;;  %s7097_s4 = scalar_lea.hbm %s8122_s1, 9216 }
  0x16   : > { %p7098_p12 = scmp.ne.s32.totalorder %s8122_s1, %s7097_s4  ;;  %p7104_p5 = scmp.lt.u32.totalorder %s7097_s4, %s8122_s1 }
  0x17   : > { %p7370_p11 = pnand %p6709_p9, %p7341_p1 }
  0x19   : > { %p7099_p13 = pneg %p7370_p11 }
  0x1b   : > { %p7100_p0 = pnand %p7099_p13, %p7098_p12 }
  0x1d   : > { %p7101_p3 = pneg %p7100_p0 }
  0x1f   : > { %p7106_p7 = pnand %p7104_p5, %p7101_p3 }
  0x21   : > { %7109 = shalt.err (!%p7106_p7)
}
  0x22   : > { %s7110_s9 = scalar_lea.vmem %s157_s26, 9216  ;;  %p7118_p1 = scmp.lt.s32.totalorder %s157_s26, %s157_s26 }
  0x23   : > { %p7111_p9 = scmp.ne.s32.totalorder %s157_s26, %s7110_s9  ;;  %p7119_p4 = scmp.lt.s32.totalorder %s7110_s9, %s7110_s9 }
  0x25   : > { %p7113_p10 = pnand %p7111_p9, %p7099_p13  ;;  %p7120_p8 = por %p7119_p4, %p7118_p1 }
  0x27   : > { %p7114_p6 = pneg %p7113_p10 }
  0x29   : > { %p7121_p2 = pnand %p7120_p8, %p7114_p6 }
  0x2b   : > { %7124 = shalt.err (!%p7121_p2)
}
  0x2c   : > { %s7276_s10 = smov 64   ;;  %s7277_s11 = smov 4  }
  0x2d   : > { %6712 = dma.hbm_to_vmem [thread:$0]  (!%p7370_p11), %s8122_s1, 9216, %s157_s26, [#allocation8], %s7276_s10, %s7276_s10, %s7277_s11  }
  0x2e   : > { %p38_p1 = scmp.ge.s32.totalorder %s36_s28, 2  ;;  %s45_s25 = sadd.s32 1, %s7261_s14 }
  0x2f   : > { %p52_p2 = scmp.ne.s32.totalorder %s7261_s14, %s7257_s13  ;;  %p53_p4 = scmp.eq.s32.totalorder %s7273_s17, 0 }
  0x30   : > { %s8160_s28 = smov (%p38_p1, %s36_s28), 0  ;;  %p8136_p8 = scmp.ne.s32.totalorder %s8130_s21, 0 }
  0x31   : > { %p7397_p6 = por %p53_p4, %p52_p2  ;;  %s42_s27 = ssub.s32 %s7269_s16, %s8160_s28 }
  0x32   : > { %p7403_p10 = por %p8136_p8, %p52_p2  ;;  %p6725_p12 = scmp.lt.s32.totalorder %s7273_s17, 2 }
  0x33   : > { %p43_p11 = scmp.eq.s32.totalorder %s42_s27, 0  ;;  %s170_s26 = sand.u32 1, %s7261_s14  }
  0x34   : > { %s5419_s4 = sshll.u32 %s170_s26, 8  ;;  %s5810_s6 = sshll.u32 %s7269_s16, 12 }
  0x35   : > { %s7412_s5 = scalar_select %p43_p11, %s7261_s14, %s45_s25  }
  0x36   : > { %s7418_s9 = scalar_lea.hbm %s8121_s0, %s5810_s6  ;;  %s174_s21 = scalar_lea.vmem [#allocation4], %s5419_s4 }
  0x37   : > { %s182_s10 = sshll.u32 %s174_s21, 4  ;;  %p7424_p13 = pnand %p6725_p12, %p7397_p6  ;;  %s7420_s10 = int_to_ptr.vmem [resolvable:$true] %s182_s10 }
  0x38   : > { %s7428_s18 = scalar_lea.sflag [#allocation5], %s170_s26  ;;  %s7125_s19 = scalar_lea.hbm %s7418_s9, 4096 }
  0x39   : > { %p7126_p0 = scmp.ne.s32.totalorder %s7418_s9, %s7125_s19  ;;  %p7127_p3 = pneg %p7424_p13 }
  0x3a   : > { %s7130_s29 = scalar_lea.hbm %s8121_s0, 8192  ;;  %p7131_p9 = scmp.lt.u32.totalorder %s7418_s9, %s8121_s0 }
  0x3b   : > { %p7128_p5 = pnand %p7127_p3, %p7126_p0  ;;  %p7132_p1 = scmp.lt.u32.totalorder %s7130_s29, %s7125_s19 }
  0x3c   : > { %p7134_p4 = scmp.lt.u32.totalorder %s7125_s19, %s7418_s9 }
  0x3d   : > { %p7129_p7 = pneg %p7128_p5  ;;  %p7133_p2 = por %p7132_p1, %p7131_p9 }
  0x3f   : > { %p7135_p6 = por %p7134_p4, %p7133_p2 }
  0x41   : > { %p7136_p8 = pnand %p7135_p6, %p7129_p7 }
  0x43   : > { %7139 = shalt.err (!%p7136_p8)
}
  0x44   : > { %s7140_s26 = scalar_lea.vmem %s7420_s10, 4096  ;;  %s7278_s7 = smov [#allocation4]  }
  0x45   : > { %p7141_p12 = scmp.ne.s32.totalorder %s7420_s10, %s7140_s26  ;;  %s7145_s8 = sshll.u32 %s7278_s7, 4  ;;  %s7146_s8 = int_to_ptr.vmem [resolvable:$false] %s7145_s8 }
  0x46   : > { %s7147_s21 = scalar_lea.vmem %s7146_s8, 8192  ;;  %p7148_p5 = scmp.lt.s32.totalorder %s7420_s10, %s7146_s8 }
  0x47   : > { %p7143_p11 = pnand %p7141_p12, %p7127_p3  ;;  %p7149_p9 = scmp.lt.s32.totalorder %s7147_s21, %s7140_s26 }
  0x49   : > { %p7144_p0 = pneg %p7143_p11  ;;  %p7150_p1 = por %p7149_p9, %p7148_p5 }
  0x4b   : > { %p7151_p2 = pnand %p7150_p1, %p7144_p0 }
  0x4d   : > { %7154 = shalt.err (!%p7151_p2)
}
  0x4e   : > { %s7279_s19 = smov 128   ;;  %s7280_s25 = smov 8  }
  0x4f   : > { %6716 = dma.hbm_to_vmem [thread:$0]  (!%p7424_p13), %s7418_s9, 4096, %s7420_s10, %s7428_s18, %s7279_s19, %s7279_s19, %s7280_s25  }
  0x50   : > { %p8139_p3 = scmp.ne.s32.totalorder %s8133_s24, 0 }
  0x52   : > { %194 = sbr.rel (%p8139_p3) target bundleno = 719 (0x2cf), region = 28 }
  0x59   : > { %s7459_s27 = sand.u32 1, %s7257_s13   ;;  %p8140_p7 = scmp.ne.s32.totalorder %s8131_s22, 0 }
  0x5a   : > { %s5423_s29 = sshll.u32 %s7459_s27, 8  ;;  %s197_s4 = scalar_lea.sflag [#allocation5], %s7459_s27 }
  0x5b   : > { %s7463_s6 = scalar_lea.vmem [#allocation4], %s5423_s29 }
  0x5c   : > { %7236 = dma.done.wait (%p8140_p7), %s197_s4, 4096  }
  0x5d   : > { %7238 = vsyncadd (%p8140_p7), %s197_s4, 4294963200  ;;  %p8141_p13 = scmp.ne.s32.totalorder %s8129_s20, 0 }
  0x5f   : > { %7240 = dma.done.wait (%p8141_p13), [#allocation8], 9216  }
  0x60   : > { %7242 = vsyncadd (%p8141_p13), [#allocation8], 4294958080  ;;  %v7281_v0 = vmov 0   ;;  %v6785_v1 = vld [vmem:[#allocation7 + $0x100] sm:$0xff]   ;;  %v6788_v4 = vld [vmem:[#allocation7 + $0x108] sm:$0xff]   ;;  %vm746_vm2 = vcmask 1043456  }
  0x61   : > { %242 = vst [vmem:[#allocation2 + $0xc] sm:$0xf] %v7281_v0  ;;  %243 = vst [vmem:[#allocation2 + $0x10] sm:$0xf] %v7281_v0  ;;  %v7473_v2 = vld [vmem:[#allocation7 + $0x140] sm:$0xff]   ;;  %5971 = vmatprep.subr.bf16.mxu0 %v6785_v1  ;;  %v7477_v5 = vld [vmem:[#allocation7 + $0x148] sm:$0xff]  }
  0x62   : > { %244 = vst [vmem:[#allocation2 + $0x14] sm:$0x1] %v7281_v0  ;;  %239 = vst [vmem:[#allocation2] sm:$0xf] %v7281_v0  ;;  %v6787_v3 = vld [vmem:[#allocation7 + $0xc0] sm:$0xff]   ;;  %6523 = vmatprep.subr.bf16.mxu1 %v7473_v2  ;;  %v6790_v6 = vld [vmem:[#allocation7 + $0xc8] sm:$0xff]  }
  0x63   : > { %240 = vst [vmem:[#allocation2 + $0x4] sm:$0xf] %v7281_v0  ;;  %241 = vst [vmem:[#allocation2 + $0x8] sm:$0x1] %v7281_v0  ;;  %5972 = vmatpush3.bf16.msra.mxu0 %v6787_v3  ;;  %6531 = vmatpush3.bf16.msra.mxu1 %v7473_v2  ;;  %v6791_v7 = vld [vmem:[#allocation7 + $0x110] sm:$0xff]   ;;  %v6794_v10 = vld [vmem:[#allocation7 + $0x118] sm:$0xff]  }
  0x64   : > { %245 = vst [vmem:[#allocation2 + $0x18] sm:$0xf] %v7281_v0  ;;  %246 = vst [vmem:[#allocation2 + $0x1c] sm:$0xf] %v7281_v0  ;;  %5973 = vmatprep.subr.bf16.mxu0 %v6788_v4  ;;  %6524 = vmatprep.subr.bf16.mxu1 %v7477_v5  ;;  %v7480_v8 = vld [vmem:[#allocation7 + $0x150] sm:$0xff]   ;;  %v7484_v11 = vld [vmem:[#allocation7 + $0x158] sm:$0xff]  }
  0x65   : > { %247 = vst [vmem:[#allocation2 + $0x20] sm:$0x1] %v7281_v0  ;;  %248 = vst [vmem:[#allocation2 + $0x24] sm:$0xf] %v7281_v0  ;;  %v6793_v9 = vld [vmem:[#allocation7 + $0xd0] sm:$0xff]   ;;  %v6796_v12 = vld [vmem:[#allocation7 + $0xd8] sm:$0xff]  }
  0x66   : > { %249 = vst [vmem:[#allocation2 + $0x28] sm:$0xf] %v7281_v0  ;;  %250 = vst [vmem:[#allocation2 + $0x2c] sm:$0x1] %v7281_v0  ;;  %v6797_v13 = vld [vmem:[#allocation7 + $0x120] sm:$0xff]   ;;  %v6800_v16 = vld [vmem:[#allocation7 + $0x128] sm:$0xff]  }
  0x67   : > { %251 = vst [vmem:[#allocation2 + $0x30] sm:$0xf] %v7281_v0  ;;  %252 = vst [vmem:[#allocation2 + $0x34] sm:$0xf] %v7281_v0  ;;  %5974 = vmatpush3.bf16.msra.mxu0 %v6790_v6  ;;  %6532 = vmatpush3.bf16.msra.mxu1 %v7477_v5  ;;  %v7488_v14 = vld [vmem:[#allocation7 + $0x160] sm:$0xff]   ;;  %v7492_v17 = vld [vmem:[#allocation7 + $0x168] sm:$0xff]  }
  0x68   : > { %253 = vst [vmem:[#allocation2 + $0x38] sm:$0x1] %v7281_v0  ;;  %254 = vst [vmem:[#allocation2 + $0x3c] sm:$0xf] %v7281_v0  ;;  %5975 = vmatprep.subr.bf16.mxu0 %v6791_v7  ;;  %6525 = vmatprep.subr.bf16.mxu1 %v7480_v8  ;;  %v6799_v15 = vld [vmem:[#allocation7 + $0xe0] sm:$0xff]   ;;  %v6802_v18 = vld [vmem:[#allocation7 + $0xe8] sm:$0xff]  }
  0x69   : > { %255 = vst [vmem:[#allocation2 + $0x40] sm:$0xf] %v7281_v0  ;;  %256 = vst [vmem:[#allocation2 + $0x44] sm:$0x1] %v7281_v0  ;;  %v6803_v19 = vld [vmem:[#allocation7 + $0x130] sm:$0xff]   ;;  %v6806_v22 = vld [vmem:[#allocation7 + $0x138] sm:$0xff]  }
  0x6a   : > { %257 = vst [vmem:[#allocation2 + $0x48] sm:$0xf] %v7281_v0  ;;  %258 = vst [vmem:[#allocation2 + $0x4c] sm:$0xf] %v7281_v0  ;;  %v7496_v20 = vld [vmem:[#allocation7 + $0x170] sm:$0xff]   ;;  %v294_v23 = vld [vmem:[%s7463_s6] sm:$0xff] }
  0x6b   : > { %259 = vst [vmem:[#allocation2 + $0x50] sm:$0x1] %v7281_v0  ;;  %260 = vst [vmem:[#allocation2 + $0x54] sm:$0xf] %v7281_v0  ;;  %5976 = vmatpush3.bf16.msra.mxu0 %v6793_v9  ;;  %6533 = vmatpush3.bf16.msra.mxu1 %v7480_v8  ;;  %v6805_v21 = vld [vmem:[#allocation7 + $0xf0] sm:$0xff]   ;;  %v295_v24 = vld [vmem:[%s7463_s6 + $0x8] sm:$0xff]  ;;  %v5811_v26 = vpack.c.bf16 %v294_v23, %v294_v23 }
  0x6c   : > { %261 = vst [vmem:[#allocation2 + $0x58] sm:$0xf] %v7281_v0  ;;  %262 = vst [vmem:[#allocation2 + $0x5c] sm:$0x1] %v7281_v0  ;;  %5977 = vmatprep.subr.bf16.mxu0 %v6794_v10  ;;  %6526 = vmatprep.subr.bf16.mxu1 %v7484_v11  ;;  %vm422_vm0 = vsmask.f32 256  ;;  %v5812_v27 = vpack.c.bf16 %v295_v24, %v295_v24 }
  0x6d   : > { %263 = vst [vmem:[#allocation2 + $0x60] sm:$0xf] %v7281_v0  ;;  %264 = vst [vmem:[#allocation2 + $0x64] sm:$0xf] %v7281_v0  ;;  %v7502_v25 = vld [vmem:[#allocation7 + $0x178] sm:$0xff]   ;;  %v310_v28 = vld [vmem:[%s7463_s6 + $0x80] sm:$0xff] }
  0x6e   : > { %265 = vst [vmem:[#allocation2 + $0x68] sm:$0x1] %v7281_v0  ;;  %266 = vst [vmem:[#allocation2 + $0x6c] sm:$0xf] %v7281_v0  ;;  %vm423_vm1 = vsmask.f32 4368  ;;  %v5827_v30 = vpack.c.bf16 %v310_v28, %v310_v28 }
  0x6f   : > { %267 = vst [vmem:[#allocation2 + $0x70] sm:$0xf] %v7281_v0  ;;  %268 = vst [vmem:[#allocation2 + $0x74] sm:$0x1] %v7281_v0  ;;  %5978 = vmatpush3.bf16.msra.mxu0 %v6796_v12  ;;  %6534 = vmatpush3.bf16.msra.mxu1 %v7484_v11  ;;  %v311_v29 = vld [vmem:[%s7463_s6 + $0x88] sm:$0xff]  ;;  %vm753_vm4 = vcmask 1040384  }
  0x70   : > { %269 = vst [vmem:[#allocation2 + $0x78] sm:$0xf] %v7281_v0  ;;  %270 = vst [vmem:[#allocation2 + $0x7c] sm:$0xf] %v7281_v0  ;;  %5979 = vmatprep.subr.bf16.mxu0 %v6797_v13  ;;  %6527 = vmatprep.subr.bf16.mxu1 %v7488_v14  ;;  %vm747_vm3 = vsmask.f32 7938  ;;  %v5828_v31 = vpack.c.bf16 %v311_v29, %v311_v29 }
  0x71   : > { %271 = vst [vmem:[#allocation2 + $0x80] sm:$0x1] %v7281_v0  ;;  %272 = vst [vmem:[#allocation2 + $0x84] sm:$0xf] %v7281_v0  ;;  %v312_v32 = vld [vmem:[%s7463_s6 + $0x90] sm:$0xff]  ;;  %v6808_v33 = vld [vmem:[#allocation7 + $0xf8] sm:$0xff]  }
  0x72   : > { %273 = vst [vmem:[#allocation2 + $0x88] sm:$0xf] %v7281_v0  ;;  %274 = vst [vmem:[#allocation2 + $0x8c] sm:$0x1] %v7281_v0  ;;  %v426_v34 = vshrl.u32 %v5811_v26, 16  ;;  %v429_v35 = vshll.u32 %v5811_v26, 16  ;;  %v5829_v50 = vpack.c.bf16 %v312_v32, %v312_v32 }
  0x73   : > { %275 = vst [vmem:[#allocation2 + $0x90] sm:$0xf] %v7281_v0  ;;  %276 = vst [vmem:[#allocation2 + $0x94] sm:$0xf] %v7281_v0  ;;  %5980 = vmatpush3.bf16.msra.mxu0 %v6799_v15  ;;  %6535 = vmatpush3.bf16.msra.mxu1 %v7488_v14  ;;  %v434_v36 = vshrl.u32 %v5812_v27, 16  ;;  %v437_v37 = vshll.u32 %v5812_v27, 16 }
  0x74   : > { %277 = vst [vmem:[#allocation2 + $0x98] sm:$0x1] %v7281_v0  ;;  %278 = vst [vmem:[#allocation2 + $0x9c] sm:$0xf] %v7281_v0  ;;  %5981 = vmatprep.subr.bf16.mxu0 %v6800_v16  ;;  %6528 = vmatprep.subr.bf16.mxu1 %v7492_v17  ;;  %v313_v38 = vld [vmem:[%s7463_s6 + $0x98] sm:$0xff]  ;;  %v562_v42 = vshrl.u32 %v5827_v30, 16 }
  0x75   : > { %279 = vst [vmem:[#allocation2 + $0xa0] sm:$0xf] %v7281_v0  ;;  %280 = vst [vmem:[#allocation2 + $0xa4] sm:$0x1] %v7281_v0  ;;  %v749_v40 = vld [vmem:[#allocation2 + $0xc] sm:$0xf]  ;;  %v5830_v55 = vpack.c.bf16 %v313_v38, %v313_v38 }
  0x76   : > { %281 = vst [vmem:[#allocation2 + $0xa8] sm:$0xf] %v7281_v0  ;;  %282 = vst [vmem:[#allocation2 + $0xac] sm:$0xf] %v7281_v0  ;;  %v755_v41 = vld [vmem:[#allocation2 + $0x14] sm:$0x1] }
  0x77   : > { %283 = vst [vmem:[#allocation2 + $0xb0] sm:$0x1] %v7281_v0  ;;  %284 = vst [vmem:[#allocation2 + $0xb4] sm:$0xf] %v7281_v0  ;;  %5982 = vmatpush3.bf16.msra.mxu0 %v6802_v18  ;;  %6536 = vmatpush3.bf16.msra.mxu1 %v7492_v17  ;;  %v565_v43 = vshll.u32 %v5827_v30, 16  ;;  %v570_v44 = vshrl.u32 %v5828_v31, 16 }
  0x78   : > { %285 = vst [vmem:[#allocation2 + $0xb8] sm:$0xf] %v7281_v0  ;;  %286 = vst [vmem:[#allocation2 + $0xbc] sm:$0x1] %v7281_v0  ;;  %5983 = vmatprep.subr.bf16.mxu0 %v6803_v19  ;;  %6529 = vmatprep.subr.bf16.mxu1 %v7496_v20  ;;  %v573_v45 = vshll.u32 %v5828_v31, 16  ;;  %v428_v46 = vrot.slane %v426_v34, 7 }
  0x79   : > { %287 = vst [vmem:[#allocation2 + $0xc0] sm:$0xf] %v7281_v0  ;;  %288 = vst [vmem:[#allocation2 + $0xc4] sm:$0xf] %v7281_v0  ;;  %v436_v47 = vrot.slane %v434_v36, 7  ;;  %v6816_v51 = vld [vmem:[#allocation7 + $0x40] sm:$0xff]  }
  0x7a   : > { %289 = vst [vmem:[#allocation2 + $0xc8] sm:$0x1] %v7281_v0  ;;  %290 = vst [vmem:[#allocation2 + $0xcc] sm:$0xf] %v7281_v0  ;;  %v807_v49 = vld [vmem:[#allocation2 + $0x6c] sm:$0xf]  ;;  %v431_v56 = vor.u32 %v429_v35, %v428_v46 }
  0x7b   : > { %291 = vst [vmem:[#allocation2 + $0xd0] sm:$0xf] %v7281_v0  ;;  %292 = vst [vmem:[#allocation2 + $0xd4] sm:$0x1] %v7281_v0  ;;  %5984 = vmatpush3.bf16.msra.mxu0 %v6805_v21  ;;  %6537 = vmatpush3.bf16.msra.mxu1 %v7496_v20  ;;  %v564_v53 = vrot.slane %v562_v42, 7  ;;  %v572_v54 = vrot.slane %v570_v44, 7  ;;  %v439_v58 = vor.u32 %v437_v37, %v436_v47 }
  0x7c   : > { %vm7511_vm5 = vmor %vm422_vm0, %vm423_vm1  ;;  %5985 = vmatprep.subr.bf16.mxu0 %v6806_v22  ;;  %6530 = vmatprep.subr.bf16.mxu1 %v7502_v25  ;;  %v432_v57 = vrot.slane %v428_v46, 4  ;;  %v441_v59 = vrot.slane %v436_v47, 4  ;;  %v811_v60 = vld [vmem:[#allocation2 + $0x74] sm:$0x1]  ;;  %v579_v6 = vshrl.u32 %v5829_v50, 16  ;;  %v582_v12 = vshll.u32 %v5829_v50, 16 }
  0x7d   : > { %vm7518_vm6 = vmand %vm746_vm2, %vm747_vm3  ;;  %v567_v61 = vor.u32 %v565_v43, %v564_v53  ;;  %v568_v62 = vrot.slane %v564_v53, 4  ;;  %v575_v63 = vor.u32 %v573_v45, %v572_v54  ;;  %v577_v0 = vrot.slane %v572_v54, 4  ;;  %v296_v13 = vld [vmem:[%s7463_s6 + $0x10] sm:$0xff]  ;;  %v297_v15 = vld [vmem:[%s7463_s6 + $0x18] sm:$0xff]  ;;  %s5426_s20 = sshll.u32 %s7459_s27, 1  ;;  %s5425_s24 = sshll.u32 %s7459_s27, 7 }
  0x7e   : > { %vm7524_vm7 = vmand %vm753_vm4, %vm422_vm0  ;;  %v440_v1 = vsel %vm7511_vm5, %v432_v57, %v439_v58  ;;  %v750_v3 = vsel %vm7518_vm6, %v431_v56, %v749_v40  ;;  %v581_v16 = vrot.slane %v579_v6, 7  ;;  %v587_v18 = vshrl.u32 %v5830_v55, 16  ;;  %v314_v22 = vld [vmem:[%s7463_s6 + $0xa0] sm:$0xff]  ;;  %v315_v26 = vld [vmem:[%s7463_s6 + $0xa8] sm:$0xff]  ;;  %s7925_s22 = scalar_lea.vmem [#allocation10], %s5426_s20  ;;  %s7969_s9 = scalar_lea.vmem [#allocation9], %s5425_s24 }
  0x7f   : > { %5986 = vmatpush3.bf16.msra.mxu0 %v6808_v33  ;;  %6538 = vmatpush3.bf16.msra.mxu1 %v7502_v25  ;;  %v756_v4 = vsel %vm7524_vm7, %v441_v59, %v755_v41  ;;  %751 = vst [vmem:[#allocation2 + $0xc] sm:$0xf] %v750_v3  ;;  %752 = vst [vmem:[#allocation2 + $0x10] sm:$0xf] %v440_v1  ;;  %v576_v7 = vsel %vm7511_vm5, %v568_v62, %v575_v63  ;;  %v590_v19 = vshll.u32 %v5830_v55, 16  ;;  %vm1584_vm8 = vcmask 1046528  }
  0x80   : > { %6379 = vmatprep.subr.bf16.mxu0 %v7473_v2  ;;  %6107 = vmatprep.subr.bf16.mxu1 %v6816_v51  ;;  %757 = vst [vmem:[#allocation2 + $0x14] sm:$0x1] %v756_v4  ;;  %v808_v9 = vsel %vm7518_vm6, %v567_v61, %v807_v49  ;;  %v812_v10 = vsel %vm7524_vm7, %v577_v0, %v811_v60  ;;  %810 = vst [vmem:[#allocation2 + $0x70] sm:$0xf] %v576_v7  ;;  %v814_v23 = vld [vmem:[#allocation2 + $0x78] sm:$0xf] }
  0x81   : > { %809 = vst [vmem:[#allocation2 + $0x6c] sm:$0xf] %v808_v9  ;;  %813 = vst [vmem:[#allocation2 + $0x74] sm:$0x1] %v812_v10  ;;  %v5813_v21 = vpack.c.bf16 %v296_v13, %v296_v13  ;;  %v5814_v24 = vpack.c.bf16 %v297_v15, %v297_v15  ;;  %v5831_v27 = vpack.c.bf16 %v314_v22, %v314_v22  ;;  %v585_v29 = vrot.slane %v581_v16, 4  ;;  %v316_v42 = vld [vmem:[%s7463_s6 + $0xb0] sm:$0xff] }
  0x82   : > { %v584_v28 = vor.u32 %v582_v12, %v581_v16  ;;  %v589_v30 = vrot.slane %v587_v18, 7  ;;  %v818_v32 = vld [vmem:[#allocation2 + $0x80] sm:$0x1]  ;;  %v758_v35 = vld [vmem:[#allocation2 + $0x18] sm:$0xf]  ;;  %v5832_v36 = vpack.c.bf16 %v315_v26, %v315_v26  ;;  %v5833_v56 = vpack.c.bf16 %v316_v42, %v316_v42  ;;  %v317_v63 = vld [vmem:[%s7463_s6 + $0xb8] sm:$0xff] }
  0x83   : > { %v443_v31 = vshrl.u32 %v5813_v21, 16  ;;  %v446_v33 = vshll.u32 %v5813_v21, 16  ;;  %v451_v34 = vshrl.u32 %v5814_v24, 16  ;;  %vm1183_vm9 = vsmask.f32 7424  ;;  %s5875_s10 = sshll.u32 %s7265_s15, 11 }
  0x84   : > { %v592_v37 = vor.u32 %v590_v19, %v589_v30  ;;  %v594_v38 = vrot.slane %v589_v30, 4  ;;  %v815_v40 = vsel %vm7518_vm6, %v584_v28, %v814_v23  ;;  %v454_v44 = vshll.u32 %v5814_v24, 16  ;;  %v762_v62 = vld [vmem:[#allocation2 + $0x20] sm:$0x1]  ;;  %v821_v9 = vld [vmem:[#allocation2 + $0x84] sm:$0xf]  ;;  %s8033_s7 = scalar_lea.hbm %s8123_s2, %s5875_s10 }
  0x85   : > { %v445_v41 = vrot.slane %v443_v31, 7  ;;  %816 = vst [vmem:[#allocation2 + $0x78] sm:$0xf] %v815_v40  ;;  %v453_v43 = vrot.slane %v451_v34, 7  ;;  %v596_v45 = vshrl.u32 %v5831_v27, 16  ;;  %v604_v46 = vshrl.u32 %v5832_v36, 16 }
  0x86   : > { %v593_v47 = vsel %vm7511_vm5, %v585_v29, %v592_v37  ;;  %v819_v49 = vsel %vm7524_vm7, %v594_v38, %v818_v32  ;;  %v6809_v51 = vld [vmem:[#allocation2 + $0xc] sm:$0xff]   ;;  %v599_v1 = vshll.u32 %v5831_v27, 16  ;;  %v607_v15 = vshll.u32 %v5832_v36, 16  ;;  %s5276_s11 = sshll.u32 %s7969_s9, 4  ;;  %s5257_s8 = scalar_lea.sflag [#allocation6], %s7459_s27  ;;  %s8035_s11 = int_to_ptr.vmem [resolvable:$true] %s5276_s11 }
  0x87   : > { %v448_v50 = vor.u32 %v446_v33, %v445_v41  ;;  %v6810_v53 = vld [vmem:[#allocation2 + $0x14] ss:$0 sps:$4 sm:$0x11]   ;;  %817 = vst [vmem:[#allocation2 + $0x7c] sm:$0xf] %v593_v47  ;;  %v2082_v57 = vshrl.u32 %v6809_v51, 16  ;;  %v456_v61 = vor.u32 %v454_v44, %v453_v43  ;;  %v5834_v29 = vpack.c.bf16 %v317_v63, %v317_v63 }
  0x88   : > { %820 = vst [vmem:[#allocation2 + $0x80] sm:$0x1] %v819_v49  ;;  %v6811_v54 = vld [vmem:[#allocation2 + $0x6c] sm:$0xfe]   ;;  %v2084_v58 = vshll.u32 %v6809_v51, 16  ;;  %v2089_v59 = vshll.u32 %v6810_v53, 16 }
  0x89   : > { %v759_v55 = vsel %vm7518_vm6, %v448_v50, %v758_v35  ;;  %v6812_v60 = vld [vmem:[#allocation2 + $0x74] ss:$0 sps:$4 sm:$0x11]   ;;  %v2505_v0 = vrot.slane %v6811_v54, 1  ;;  %v449_v7 = vrot.slane %v445_v41, 4  ;;  %v458_v10 = vrot.slane %v453_v43, 4 }
  0x8a   : > { %760 = vst [vmem:[#allocation2 + $0x18] sm:$0xf] %v759_v55  ;;  %v2086_v3 = vrot.slane %v2084_v58, 1  ;;  %v2091_v4 = vrot.slane %v2089_v59, 1  ;;  %v2506_v6 = vrot.slane %v6812_v60, 1  ;;  %v598_v12 = vrot.slane %v596_v45, 7 }
  0x8b   : > { %v606_v13 = vrot.slane %v604_v46, 7  ;;  %v825_v16 = vld [vmem:[#allocation2 + $0x8c] sm:$0x1]  ;;  %v457_v22 = vsel %vm7511_vm5, %v449_v7, %v456_v61  ;;  %v613_v23 = vshrl.u32 %v5833_v56, 16  ;;  %v763_v26 = vsel %vm7524_vm7, %v458_v10, %v762_v62  ;;  %v828_v35 = vld [vmem:[#allocation2 + $0x90] sm:$0xf] }
  0x8c   : > { %v2087_v18 = vor.u32 %v2086_v3, %v2082_v57  ;;  %v2507_v19 = vsel %vm1584_vm8, %v2505_v0, %v2506_v6  ;;  %v6813_v21 = vld [vmem:[#allocation2 + $0xc] sm:$0xff]   ;;  %761 = vst [vmem:[#allocation2 + $0x1c] sm:$0xf] %v457_v22  ;;  %v601_v27 = vor.u32 %v599_v1, %v598_v12  ;;  %764 = vst [vmem:[#allocation2 + $0x20] sm:$0x1] %v763_v26  ;;  %v602_v32 = vrot.slane %v598_v12, 4 }
  0x8d   : > { %6411 = vmatprep.mubr.bf16.mxu1 %v2507_v19  ;;  %v609_v28 = vor.u32 %v607_v15, %v606_v13  ;;  %v611_v33 = vrot.slane %v606_v13, 4  ;;  %v615_v34 = vrot.slane %v613_v23, 7  ;;  %v616_v38 = vshll.u32 %v5833_v56, 16  ;;  %v6817_v41 = vld [vmem:[#allocation7] sm:$0xff]   ;;  %v6818_v44 = vld [vmem:[#allocation7 + $0x48] sm:$0xff]   ;;  %v6827_v0 = vld [vmem:[#allocation7 + $0x50] sm:$0xff]  }
  0x8e   : > { %v6814_v24 = vld [vmem:[#allocation2 + $0x78] sm:$0xfe]   ;;  %v2092_v30 = vsel %vm1183_vm9, %v2087_v18, %v2091_v4  ;;  %v822_v37 = vsel %vm7518_vm6, %v601_v27, %v821_v9  ;;  %v621_v46 = vshrl.u32 %v5834_v29, 16  ;;  %v624_v47 = vshll.u32 %v5834_v29, 16  ;;  %v299_v51 = vld [vmem:[%s7463_s6 + $0x28] sm:$0xff]  ;;  %v6828_v7 = vld [vmem:[#allocation7 + $0x10] sm:$0xff]  }
  0x8f   : > { %v6815_v31 = vld [vmem:[#allocation2 + $0x80] ss:$0 sps:$4 sm:$0x11]   ;;  %2833 = vmatprep.mubr.bf16.mxu0 %v2092_v30  ;;  %v2508_v36 = vrot.slane %v6814_v24, 1  ;;  %v610_v42 = vsel %vm7511_vm5, %v602_v32, %v609_v28  ;;  %823 = vst [vmem:[#allocation2 + $0x84] sm:$0xf] %v822_v37  ;;  %v826_v43 = vsel %vm7524_vm7, %v611_v33, %v825_v16  ;;  %v618_v45 = vor.u32 %v616_v38, %v615_v34 }
  0x90   : > { %2834 = vmatmul.mubr.bf16.vlgmr.msra.gmra.mrb[0].mxu0 %v6813_v21  ;;  %v2509_v40 = vrot.slane %v6815_v31, 1  ;;  %824 = vst [vmem:[#allocation2 + $0x88] sm:$0xf] %v610_v42  ;;  %827 = vst [vmem:[#allocation2 + $0x8c] sm:$0x1] %v826_v43  ;;  %v298_v49 = vld [vmem:[%s7463_s6 + $0x20] sm:$0xff]  ;;  %v5816_v58 = vpack.c.bf16 %v299_v51, %v299_v51 }
  0x91   : > { %6380 = vmatpush3.bf16.msra.mxu0 %v7473_v2  ;;  %v5815_v53 = vpack.c.bf16 %v298_v49, %v298_v49  ;;  %v6819_v54 = vld [vmem:[#allocation7 + $0x8] sm:$0xff]   ;;  %v619_v55 = vrot.slane %v615_v34, 4  ;;  %v623_v56 = vrot.slane %v621_v46, 7  ;;  %v829_v2 = vsel %vm7518_vm6, %v618_v45, %v828_v35  ;;  %v832_v57 = vld [vmem:[#allocation2 + $0x98] sm:$0x1]  ;;  %v6829_v16 = vld [vmem:[#allocation7 + $0x58] sm:$0xff]  }
  0x92   : > { %v2510_v50 = vsel %vm1584_vm8, %v2508_v36, %v2509_v40  ;;  %6381 = vmatprep.subr.bf16.mxu0 %v7477_v5  ;;  %v318_v59 = vld [vmem:[%s7463_s6 + $0xc0] sm:$0xff]  ;;  %830 = vst [vmem:[#allocation2 + $0x90] sm:$0xf] %v829_v2  ;;  %v765_v10 = vld [vmem:[#allocation2 + $0x24] sm:$0xf]  ;;  %v468_v19 = vshrl.u32 %v5816_v58, 16 }
  0x93   : > { %6412 = vmatmul.mubr.bf16.vlgmr.msra.gmra.mrb[0].mxu1 %v2510_v50  ;;  %v6820_v60 = vld [vmem:[#allocation2 + $0x18] sm:$0xff]   ;;  %v460_v61 = vshrl.u32 %v5815_v53, 16  ;;  %v6821_v62 = vld [vmem:[#allocation2 + $0x20] ss:$0 sps:$4 sm:$0x11]   ;;  %v626_v63 = vor.u32 %v624_v47, %v623_v56  ;;  %v5835_v1 = vpack.c.bf16 %v318_v59, %v318_v59  ;;  %v628_v6 = vrot.slane %v623_v56, 4 }
  0x94   : > { %6108 = vmatpush3.bf16.msra.mxu1 %v6817_v41  ;;  %v2094_v3 = vshrl.u32 %v6820_v60, 16  ;;  %v2096_v4 = vshll.u32 %v6820_v60, 16  ;;  %v319_v12 = vld [vmem:[%s7463_s6 + $0xc8] sm:$0xff]  ;;  %v2101_v13 = vshll.u32 %v6821_v62, 16  ;;  %v463_v18 = vshll.u32 %v5815_v53, 16  ;;  %v320_v21 = vld [vmem:[%s7463_s6 + $0xd0] sm:$0xff] }
  0x95   : > { %6109 = vmatprep.subr.bf16.mxu1 %v6818_v44  ;;  %6382 = vmatpush3.bf16.msra.mxu0 %v7477_v5  ;;  %v462_v9 = vrot.slane %v460_v61, 7  ;;  %v627_v15 = vsel %vm7511_vm5, %v619_v55, %v626_v63  ;;  %v833_v5 = vsel %vm7524_vm7, %v628_v6, %v832_v57  ;;  %v769_v29 = vld [vmem:[#allocation2 + $0x2c] sm:$0x1]  ;;  %v5836_v30 = vpack.c.bf16 %v319_v12, %v319_v12  ;;  %v6824_v33 = vld [vmem:[#allocation2 + $0x18] sm:$0xff]   ;;  %v321_v37 = vld [vmem:[%s7463_s6 + $0xd8] sm:$0xff]  ;;  %s7155_s21 = scalar_lea.vmem %s8035_s11, 2048 }
  0x96   : > { %6383 = vmatprep.subr.bf16.mxu0 %v7480_v8  ;;  %v2098_v22 = vrot.slane %v2096_v4, 1  ;;  %831 = vst [vmem:[#allocation2 + $0x94] sm:$0xf] %v627_v15  ;;  %v2103_v24 = vrot.slane %v2101_v13, 1  ;;  %834 = vst [vmem:[#allocation2 + $0x98] sm:$0x1] %v833_v5  ;;  %v5837_v31 = vpack.c.bf16 %v320_v21, %v320_v21  ;;  %p7156_p4 = scmp.ne.s32.totalorder %s8035_s11, %s7155_s21 }
  0x97   : > { %v466_v23 = vrot.slane %v462_v9, 4  ;;  %v6822_v26 = vld [vmem:[#allocation2 + $0x84] sm:$0xfe]   ;;  %v6823_v27 = vld [vmem:[#allocation2 + $0x8c] ss:$0 sps:$4 sm:$0x11]   ;;  %v465_v28 = vor.u32 %v463_v18, %v462_v9 }
  0x98   : > { %6110 = vmatpush3.bf16.msra.mxu1 %v6819_v54  ;;  %v2099_v32 = vor.u32 %v2098_v22, %v2094_v3  ;;  %v470_v34 = vrot.slane %v468_v19, 7  ;;  %v471_v35 = vshll.u32 %v5816_v58, 16  ;;  %v630_v36 = vshrl.u32 %v5835_v1, 16  ;;  %v835_v43 = vld [vmem:[#allocation2 + $0x9c] sm:$0xf]  ;;  %v6830_v45 = vld [vmem:[#allocation7 + $0x18] sm:$0xff]   ;;  %p7157_p6 = pnand %p7156_p4, %p7403_p10 }
  0x99   : > { %6111 = vmatprep.subr.bf16.mxu1 %v6827_v0  ;;  %6384 = vmatpush3.bf16.msra.mxu0 %v7480_v8  ;;  %v2511_v38 = vrot.slane %v6822_v26, 1  ;;  %v2512_v40 = vrot.slane %v6823_v27, 1  ;;  %v766_v41 = vsel %vm7518_vm6, %v465_v28, %v765_v10  ;;  %v633_v42 = vshll.u32 %v5835_v1, 16  ;;  %v6838_v49 = vld [vmem:[#allocation7 + $0x60] sm:$0xff]   ;;  %v839_v58 = vld [vmem:[#allocation2 + $0xa4] sm:$0x1] }
  0x9a   : > { %6385 = vmatprep.subr.bf16.mxu0 %v7484_v11  ;;  %v2104_v44 = vsel %vm1183_vm9, %v2099_v32, %v2103_v24  ;;  %v473_v8 = vor.u32 %v471_v35, %v470_v34  ;;  %v475_v46 = vrot.slane %v470_v34, 4  ;;  %767 = vst [vmem:[#allocation2 + $0x24] sm:$0xf] %v766_v41  ;;  %v632_v47 = vrot.slane %v630_v36, 7  ;;  %v6839_v59 = vld [vmem:[#allocation7 + $0x20] sm:$0xff]   ;;  %v6840_v10 = vld [vmem:[#allocation7 + $0x68] sm:$0xff]   ;;  %p7158_p8 = pneg %p7157_p6 }
  0x9b   : > { %2841 = vmatprep.mubr.bf16.mxu0 %v2104_v44  ;;  %v2513_v50 = vsel %vm1584_vm8, %v2511_v38, %v2512_v40  ;;  %v638_v51 = vshrl.u32 %v5836_v30, 16  ;;  %v641_v53 = vshll.u32 %v5836_v30, 16  ;;  %v5838_v54 = vpack.c.bf16 %v321_v37, %v321_v37  ;;  %v842_v3 = vld [vmem:[#allocation2 + $0xa8] sm:$0xf]  ;;  %v301_v24 = vld [vmem:[%s7463_s6 + $0x38] sm:$0xff]  ;;  %v323_v30 = vld [vmem:[%s7463_s6 + $0xe8] sm:$0xff] }
  0x9c   : > { %6112 = vmatpush3.bf16.msra.mxu1 %v6828_v7  ;;  %6415 = vmatprep.mubr.bf16.mxu1 %v2513_v50  ;;  %v474_v55 = vsel %vm7511_vm5, %v466_v23, %v473_v8  ;;  %v770_v56 = vsel %vm7524_vm7, %v475_v46, %v769_v29  ;;  %v635_v2 = vor.u32 %v633_v42, %v632_v47  ;;  %v636_v57 = vrot.slane %v632_v47, 4  ;;  %v300_v19 = vld [vmem:[%s7463_s6 + $0x30] sm:$0xff]  ;;  %v6841_v23 = vld [vmem:[#allocation7 + $0x28] sm:$0xff]   ;;  %v846_v27 = vld [vmem:[#allocation2 + $0xb0] sm:$0x1]  ;;  %s7283_s19 = smov [#allocation9]  }
  0x9d   : > { %6113 = vmatprep.subr.bf16.mxu1 %v6829_v16  ;;  %2842 = vmatmul.mubr.bf16.gmra.mrb[4].mxu0 %v6824_v33  ;;  %v6825_v60 = vld [vmem:[#allocation2 + $0x90] sm:$0xfe]   ;;  %768 = vst [vmem:[#allocation2 + $0x28] sm:$0xf] %v474_v55  ;;  %771 = vst [vmem:[#allocation2 + $0x2c] sm:$0x1] %v770_v56  ;;  %v5818_v28 = vpack.c.bf16 %v301_v24, %v301_v24  ;;  %v7612_v36 = vpack.c.bf16 %v323_v30, %v323_v30 }
  0x9e   : > { %v640_v61 = vrot.slane %v638_v51, 7  ;;  %v647_v62 = vshrl.u32 %v5837_v31, 16  ;;  %6386 = vmatpush3.bf16.msra.mxu0 %v7484_v11  ;;  %v6826_v63 = vld [vmem:[#allocation2 + $0x98] ss:$0 sps:$4 sm:$0x11]   ;;  %v836_v0 = vsel %vm7518_vm6, %v635_v2, %v835_v43  ;;  %v650_v1 = vshll.u32 %v5837_v31, 16 }
  0x9f   : > { %6387 = vmatprep.subr.bf16.mxu0 %v7488_v14  ;;  %v2514_v4 = vrot.slane %v6825_v60, 1  ;;  %837 = vst [vmem:[#allocation2 + $0x9c] sm:$0xf] %v836_v0  ;;  %v2515_v12 = vrot.slane %v6826_v63, 1  ;;  %v655_v11 = vshrl.u32 %v5838_v54, 16  ;;  %v658_v13 = vshll.u32 %v5838_v54, 16 }
  0xa0   : > { %6114 = vmatpush3.bf16.msra.mxu1 %v6830_v45  ;;  %v643_v6 = vor.u32 %v641_v53, %v640_v61  ;;  %v645_v7 = vrot.slane %v640_v61, 4  ;;  %v649_v9 = vrot.slane %v647_v62, 7  ;;  %v322_v29 = vld [vmem:[%s7463_s6 + $0xe0] sm:$0xff]  ;;  %v485_v45 = vshrl.u32 %v5818_v28, 16  ;;  %v772_v47 = vld [vmem:[#allocation2 + $0x30] sm:$0xf] }
  0xa1   : > { %6115 = vmatprep.subr.bf16.mxu1 %v6838_v49  ;;  %v2516_v21 = vsel %vm1584_vm8, %v2514_v4, %v2515_v12  ;;  %v657_v5 = vrot.slane %v655_v11, 7  ;;  %v5839_v34 = vpack.c.bf16 %v322_v29, %v322_v29  ;;  %v488_v46 = vshll.u32 %v5818_v28, 16  ;;  %v324_v51 = vld [vmem:[%s7463_s6 + $0xf0] sm:$0xff]  ;;  %v325_v53 = vld [vmem:[%s7463_s6 + $0xf8] sm:$0xff]  ;;  %s7159_s25 = sshll.u32 %s7283_s19, 4  ;;  %s7160_s25 = int_to_ptr.vmem [resolvable:$false] %s7159_s25 }
  0xa2   : > { %v644_v15 = vsel %vm7511_vm5, %v636_v57, %v643_v6  ;;  %v840_v16 = vsel %vm7524_vm7, %v645_v7, %v839_v58  ;;  %v652_v18 = vor.u32 %v650_v1, %v649_v9  ;;  %6388 = vmatpush3.bf16.msra.mxu0 %v7488_v14  ;;  %v653_v22 = vrot.slane %v649_v9, 4  ;;  %6416 = vmatmul.mubr.bf16.gmra.mrb[4].mxu1 %v2516_v21  ;;  %v6849_v1 = vld [vmem:[#allocation7 + $0x70] sm:$0xff]   ;;  %v849_v9 = vld [vmem:[#allocation2 + $0xb4] sm:$0xf]  ;;  %s7161_s29 = scalar_lea.vmem %s7160_s25, 4096  ;;  %p7162_p12 = scmp.lt.s32.totalorder %s8035_s11, %s7160_s25 }
  0xa3   : > { %838 = vst [vmem:[#allocation2 + $0xa0] sm:$0xf] %v644_v15  ;;  %841 = vst [vmem:[#allocation2 + $0xa4] sm:$0x1] %v840_v16  ;;  %6389 = vmatprep.subr.bf16.mxu0 %v7492_v17  ;;  %v5817_v14 = vpack.c.bf16 %v300_v19, %v300_v19  ;;  %v660_v32 = vor.u32 %v658_v13, %v657_v5  ;;  %v662_v33 = vrot.slane %v657_v5, 4  ;;  %v664_v49 = vshrl.u32 %v5839_v34, 16  ;;  %p7163_p11 = scmp.lt.s32.totalorder %s7161_s29, %s7155_s21 }
  0xa4   : > { %6116 = vmatpush3.bf16.msra.mxu1 %v6839_v59  ;;  %v843_v26 = vsel %vm7518_vm6, %v652_v18, %v842_v3  ;;  %v6831_v31 = vld [vmem:[#allocation2 + $0x24] sm:$0xff]   ;;  %v6832_v35 = vld [vmem:[#allocation2 + $0x2c] ss:$0 sps:$4 sm:$0x11]   ;;  %v667_v50 = vshll.u32 %v5839_v34, 16  ;;  %v487_v58 = vrot.slane %v485_v45, 7  ;;  %v5841_v59 = vpack.c.bf16 %v324_v51, %v324_v51 }
  0xa5   : > { %6117 = vmatprep.subr.bf16.mxu1 %v6840_v10  ;;  %844 = vst [vmem:[#allocation2 + $0xa8] sm:$0xf] %v843_v26  ;;  %v2106_v37 = vshrl.u32 %v6831_v31, 16  ;;  %v2108_v38 = vshll.u32 %v6831_v31, 16  ;;  %v661_v40 = vsel %vm7511_vm5, %v653_v22, %v660_v32  ;;  %v847_v41 = vsel %vm7524_vm7, %v662_v33, %v846_v27  ;;  %v6835_v8 = vld [vmem:[#allocation2 + $0x24] sm:$0xff]   ;;  %p7164_p0 = por %p7163_p11, %p7162_p12 }
  0xa6   : > { %6390 = vmatpush3.bf16.msra.mxu0 %v7492_v17  ;;  %v2113_v42 = vshll.u32 %v6832_v35, 16  ;;  %845 = vst [vmem:[#allocation2 + $0xac] sm:$0xf] %v661_v40  ;;  %848 = vst [vmem:[#allocation2 + $0xb0] sm:$0x1] %v847_v41  ;;  %v477_v43 = vshrl.u32 %v5817_v14, 16  ;;  %v5842_v60 = vpack.c.bf16 %v325_v53, %v325_v53  ;;  %v490_v7 = vor.u32 %v488_v46, %v487_v58 }
  0xa7   : > { %6391 = vmatprep.subr.bf16.mxu0 %v7496_v20  ;;  %v480_v44 = vshll.u32 %v5817_v14, 16  ;;  %v2110_v17 = vrot.slane %v2108_v38, 1  ;;  %v666_v63 = vrot.slane %v664_v49, 7  ;;  %v672_v0 = vshrl.u32 %v7612_v36, 16  ;;  %v853_v19 = vld [vmem:[#allocation2 + $0xbc] sm:$0x1]  ;;  %p7165_p5 = pnand %p7164_p0, %p7158_p8 }
  0xa8   : > { %6118 = vmatpush3.bf16.msra.mxu1 %v6841_v23  ;;  %v2115_v54 = vrot.slane %v2113_v42, 1  ;;  %v479_v55 = vrot.slane %v477_v43, 7  ;;  %v492_v10 = vrot.slane %v487_v58, 4  ;;  %v675_v23 = vshll.u32 %v7612_v36, 16  ;;  %v6850_v26 = vld [vmem:[#allocation7 + $0x30] sm:$0xff]   ;;  %v6851_v36 = vld [vmem:[#allocation7 + $0x78] sm:$0xff]  }
  0xa9   : > { %v2111_v56 = vor.u32 %v2110_v17, %v2106_v37  ;;  %v669_v11 = vor.u32 %v667_v50, %v666_v63  ;;  %v670_v13 = vrot.slane %v666_v63, 4  ;;  %6119 = vmatprep.subr.bf16.mxu1 %v6849_v1  ;;  %v674_v5 = vrot.slane %v672_v0, 7  ;;  %v856_v34 = vld [vmem:[#allocation2 + $0xc0] sm:$0xf]  ;;  %v860_v35 = vld [vmem:[#allocation2 + $0xc8] sm:$0x1] }
  0xaa   : > { %6392 = vmatpush3.bf16.msra.mxu0 %v7496_v20  ;;  %v6833_v2 = vld [vmem:[#allocation2 + $0x9c] sm:$0xfe]   ;;  %v6834_v57 = vld [vmem:[#allocation2 + $0xa4] ss:$0 sps:$4 sm:$0x11]   ;;  %v482_v61 = vor.u32 %v480_v44, %v479_v55  ;;  %v483_v62 = vrot.slane %v479_v55, 4 }
  0xab   : > { %6393 = vmatprep.subr.bf16.mxu0 %v7502_v25  ;;  %v2116_v3 = vsel %vm1183_vm9, %v2111_v56, %v2115_v54  ;;  %v2517_v4 = vrot.slane %v6833_v2, 1  ;;  %v2518_v6 = vrot.slane %v6834_v57, 1  ;;  %v776_v20 = vld [vmem:[#allocation2 + $0x38] sm:$0x1]  ;;  %v850_v24 = vsel %vm7518_vm6, %v669_v11, %v849_v9  ;;  %v6852_v42 = vld [vmem:[#allocation7 + $0x38] sm:$0xff]   ;;  %v303_v46 = vld [vmem:[%s7463_s6 + $0x48] sm:$0xff] }
  0xac   : > { %2849 = vmatprep.mubr.bf16.mxu0 %v2116_v3  ;;  %v773_v12 = vsel %vm7518_vm6, %v482_v61, %v772_v47  ;;  %v491_v18 = vsel %vm7511_vm5, %v483_v62, %v490_v7  ;;  %v777_v22 = vsel %vm7524_vm7, %v492_v10, %v776_v20  ;;  %851 = vst [vmem:[#allocation2 + $0xb4] sm:$0xf] %v850_v24  ;;  %v681_v14 = vshrl.u32 %v5841_v59, 16  ;;  %v779_v62 = vld [vmem:[#allocation2 + $0x3c] sm:$0xf]  ;;  %v6855_v63 = vld [vmem:[#allocation2] sm:$0xff]  }
  0xad   : > { %v2519_v15 = vsel %vm1584_vm8, %v2517_v4, %v2518_v6  ;;  %2850 = vmatmul.mubr.bf16.gmra.mrb[8].mxu0 %v6835_v8  ;;  %v6836_v16 = vld [vmem:[#allocation2 + $0xa8] sm:$0xfe]   ;;  %774 = vst [vmem:[#allocation2 + $0x30] sm:$0xf] %v773_v12  ;;  %775 = vst [vmem:[#allocation2 + $0x34] sm:$0xf] %v491_v18  ;;  %v677_v31 = vor.u32 %v675_v23, %v674_v5  ;;  %6120 = vmatpush3.bf16.msra.mxu1 %v6850_v26 }
  0xae   : > { %6419 = vmatprep.mubr.bf16.mxu1 %v2519_v15  ;;  %v6837_v21 = vld [vmem:[#allocation2 + $0xb0] ss:$0 sps:$4 sm:$0x11]   ;;  %6394 = vmatpush3.bf16.msra.mxu0 %v7502_v25  ;;  %v2520_v27 = vrot.slane %v6836_v16, 1  ;;  %778 = vst [vmem:[#allocation2 + $0x38] sm:$0x1] %v777_v22  ;;  %v5820_v49 = vpack.c.bf16 %v303_v46, %v303_v46 }
  0xaf   : > { %v684_v28 = vshll.u32 %v5841_v59, 16  ;;  %v689_v29 = vshrl.u32 %v5842_v60, 16  ;;  %v2521_v30 = vrot.slane %v6837_v21, 1  ;;  %v679_v32 = vrot.slane %v674_v5, 4  ;;  %6121 = vmatprep.subr.bf16.mxu1 %v6851_v36  ;;  %v302_v8 = vld [vmem:[%s7463_s6 + $0x40] sm:$0xff]  ;;  %v304_v36 = vld [vmem:[%s7463_s6 + $0x50] sm:$0xff] }
  0xb0   : > { %v692_v33 = vshll.u32 %v5842_v60, 16  ;;  %v683_v37 = vrot.slane %v681_v14, 7  ;;  %v678_v40 = vsel %vm7511_vm5, %v670_v13, %v677_v31  ;;  %v5819_v47 = vpack.c.bf16 %v302_v8, %v302_v8  ;;  %v783_v4 = vld [vmem:[#allocation2 + $0x44] sm:$0x1]  ;;  %v6862_v8 = vld [vmem:[#allocation2 + $0xc] sm:$0xff]  }
  0xb1   : > { %v691_v38 = vrot.slane %v689_v29, 7  ;;  %v2522_v25 = vsel %vm1584_vm8, %v2520_v27, %v2521_v30  ;;  %v854_v41 = vsel %vm7524_vm7, %v679_v32, %v853_v19  ;;  %852 = vst [vmem:[#allocation2 + $0xb8] sm:$0xf] %v678_v40  ;;  %6122 = vmatpush3.bf16.msra.mxu1 %v6852_v42  ;;  %v502_v60 = vshrl.u32 %v5820_v49, 16 }
  0xb2   : > { %6420 = vmatmul.mubr.bf16.gmra.mrb[8].mxu1 %v2522_v25  ;;  %855 = vst [vmem:[#allocation2 + $0xbc] sm:$0x1] %v854_v41  ;;  %v686_v43 = vor.u32 %v684_v28, %v683_v37  ;;  %v687_v44 = vrot.slane %v683_v37, 4  ;;  %v494_v57 = vshrl.u32 %v5819_v47, 16  ;;  %v497_v58 = vshll.u32 %v5819_v47, 16 }
  0xb3   : > { %v694_v45 = vor.u32 %v692_v33, %v691_v38  ;;  %v696_v17 = vrot.slane %v691_v38, 4  ;;  %v505_v61 = vshll.u32 %v5820_v49, 16  ;;  %v504_v7 = vrot.slane %v502_v60, 7  ;;  %v6856_v16 = vld [vmem:[#allocation2 + $0x8] ss:$0 sps:$4 sm:$0x11]  }
  0xb4   : > { %v6842_v50 = vld [vmem:[#allocation2 + $0x30] sm:$0xff]   ;;  %v857_v53 = vsel %vm7518_vm6, %v686_v43, %v856_v34  ;;  %v496_v3 = vrot.slane %v494_v57, 7  ;;  %v1185_v18 = vshrl.u32 %v6855_v63, 16  ;;  %v1187_v19 = vshll.u32 %v6855_v63, 16 }
  0xb5   : > { %v695_v51 = vsel %vm7511_vm5, %v687_v44, %v694_v45  ;;  %v861_v54 = vsel %vm7524_vm7, %v696_v17, %v860_v35  ;;  %v6843_v55 = vld [vmem:[#allocation2 + $0x38] ss:$0 sps:$4 sm:$0x11]   ;;  %858 = vst [vmem:[#allocation2 + $0xc0] sm:$0xf] %v857_v53  ;;  %v2118_v56 = vshrl.u32 %v6842_v50, 16  ;;  %v507_v13 = vor.u32 %v505_v61, %v504_v7 }
  0xb6   : > { %859 = vst [vmem:[#allocation2 + $0xc4] sm:$0xf] %v695_v51  ;;  %862 = vst [vmem:[#allocation2 + $0xc8] sm:$0x1] %v861_v54  ;;  %v2120_v2 = vshll.u32 %v6842_v50, 16  ;;  %v2125_v59 = vshll.u32 %v6843_v55, 16  ;;  %v499_v12 = vor.u32 %v497_v58, %v496_v3  ;;  %v5821_v25 = vpack.c.bf16 %v304_v36, %v304_v36 }
  0xb7   : > { %v6846_v1 = vld [vmem:[#allocation2 + $0x30] sm:$0xff]   ;;  %v500_v11 = vrot.slane %v496_v3, 4  ;;  %v509_v15 = vrot.slane %v504_v7, 4  ;;  %v1189_v14 = vrot.slane %v1187_v19, 1  ;;  %v1192_v28 = vshll.u32 %v6856_v16, 16  ;;  %v6859_v35 = vld [vmem:[#allocation7 + $0x80] sm:$0xff]  }
  0xb8   : > { %v2122_v0 = vrot.slane %v2120_v2, 1  ;;  %v2127_v6 = vrot.slane %v2125_v59, 1  ;;  %v6844_v9 = vld [vmem:[#allocation2 + $0xb4] sm:$0xfe]   ;;  %v780_v23 = vsel %vm7518_vm6, %v499_v12, %v779_v62  ;;  %6427 = vmatprep.subr.bf16.mxu1 %v6859_v35  ;;  %v511_v42 = vshrl.u32 %v5821_v25, 16  ;;  %v6858_v54 = vld [vmem:[#allocation2] sm:$0xff]  }
  0xb9   : > { %v6845_v10 = vld [vmem:[#allocation2 + $0xbc] ss:$0 sps:$4 sm:$0x11]   ;;  %v2523_v22 = vrot.slane %v6844_v9, 1  ;;  %v508_v26 = vsel %vm7511_vm5, %v500_v11, %v507_v13  ;;  %781 = vst [vmem:[#allocation2 + $0x3c] sm:$0xf] %v780_v23  ;;  %v784_v27 = vsel %vm7524_vm7, %v509_v15, %v783_v4  ;;  %v1190_v32 = vor.u32 %v1189_v14, %v1185_v18 }
  0xba   : > { %v2123_v20 = vor.u32 %v2122_v0, %v2118_v56  ;;  %v2524_v5 = vrot.slane %v6845_v10, 1  ;;  %782 = vst [vmem:[#allocation2 + $0x40] sm:$0xf] %v508_v26  ;;  %785 = vst [vmem:[#allocation2 + $0x44] sm:$0x1] %v784_v27  ;;  %v1194_v33 = vrot.slane %v1192_v28, 1 }
  0xbb   : > { %v305_v38 = vld [vmem:[%s7463_s6 + $0x58] sm:$0xff]  ;;  %v514_v43 = vshll.u32 %v5821_v25, 16  ;;  %v786_v17 = vld [vmem:[#allocation2 + $0x48] sm:$0xf]  ;;  %v513_v47 = vrot.slane %v511_v42, 7  ;;  %v1197_v58 = vshrl.u32 %v6862_v8, 16 }
  0xbc   : > { %v2128_v21 = vsel %vm1183_vm9, %v2123_v20, %v2127_v6  ;;  %v2525_v29 = vsel %vm1584_vm8, %v2523_v22, %v2524_v5  ;;  %v1195_v37 = vsel %vm1183_vm9, %v1190_v32, %v1194_v33  ;;  %v5822_v41 = vpack.c.bf16 %v305_v38, %v305_v38  ;;  %v6863_v44 = vld [vmem:[#allocation2 + $0x14] ss:$0 sps:$4 sm:$0x11]   ;;  %v790_v62 = vld [vmem:[#allocation2 + $0x50] sm:$0x1]  ;;  %v306_v0 = vld [vmem:[%s7463_s6 + $0x60] sm:$0xff] }
  0xbd   : > { %2857 = vmatprep.mubr.bf16.mxu0 %v2128_v21  ;;  %v6847_v24 = vld [vmem:[#allocation2 + $0xc0] sm:$0xfe]   ;;  %v6848_v30 = vld [vmem:[#allocation2 + $0xc8] ss:$0 sps:$4 sm:$0x11]   ;;  %6423 = vmatprep.mubr.bf16.mxu1 %v2525_v29  ;;  %v516_v55 = vor.u32 %v514_v43, %v513_v47  ;;  %v517_v56 = vrot.slane %v513_v47, 4  ;;  %v5823_v11 = vpack.c.bf16 %v306_v0, %v306_v0 }
  0xbe   : > { %2858 = vmatmul.mubr.bf16.gmra.mrb[12].mxu0 %v6846_v1  ;;  %v2526_v31 = vrot.slane %v6847_v24, 1  ;;  %v2527_v34 = vrot.slane %v6848_v30, 1  ;;  %v519_v45 = vshrl.u32 %v5822_v41, 16  ;;  %v522_v50 = vshll.u32 %v5822_v41, 16  ;;  %v307_v1 = vld [vmem:[%s7463_s6 + $0x68] sm:$0xff]  ;;  %v6868_v20 = vld [vmem:[#allocation2 + $0x18] sm:$0xff]  }
  0xbf   : > { %v1199_v59 = vshll.u32 %v6862_v8, 16  ;;  %v787_v61 = vsel %vm7518_vm6, %v516_v55, %v786_v17  ;;  %v1204_v63 = vshll.u32 %v6863_v44, 16  ;;  %v5824_v13 = vpack.c.bf16 %v307_v1, %v307_v1  ;;  %v6869_v19 = vld [vmem:[#allocation2 + $0x20] ss:$0 sps:$4 sm:$0x11]   ;;  %v6865_v5 = vld [vmem:[#allocation2 + $0xc] sm:$0xff]  }
  0xc0   : > { %v2528_v40 = vsel %vm1584_vm8, %v2526_v31, %v2527_v34  ;;  %v521_v57 = vrot.slane %v519_v45, 7  ;;  %788 = vst [vmem:[#allocation2 + $0x48] sm:$0xf] %v787_v61  ;;  %v1209_v21 = vshrl.u32 %v6868_v20, 16  ;;  %v528_v23 = vshrl.u32 %v5823_v11, 16  ;;  %v6872_v27 = vld [vmem:[#allocation7 + $0x88] sm:$0xff]  }
  0xc1   : > { %6424 = vmatmul.mubr.bf16.gmra.mrb[12].mxu1 %v2528_v40  ;;  %v6853_v46 = vld [vmem:[#allocation2 + $0x3c] sm:$0xff]   ;;  %v6854_v49 = vld [vmem:[#allocation2 + $0x44] ss:$0 sps:$4 sm:$0x11]   ;;  %v1201_v7 = vrot.slane %v1199_v59, 1  ;;  %v1206_v12 = vrot.slane %v1204_v63, 1 }
  0xc2   : > { %3299 = vmatprep.mubr.bf16.mxu1 %v1195_v37  ;;  %v2130_v51 = vshrl.u32 %v6853_v46, 16  ;;  %v2132_v53 = vshll.u32 %v6853_v46, 16  ;;  %v2137_v2 = vshll.u32 %v6854_v49, 16  ;;  %v524_v4 = vor.u32 %v522_v50, %v521_v57  ;;  %v6857_v10 = vld [vmem:[#allocation2 + $0x3c] sm:$0xff]   ;;  %v793_v29 = vld [vmem:[#allocation2 + $0x54] sm:$0xf] }
  0xc3   : > { %v526_v6 = vrot.slane %v521_v57, 4  ;;  %v1202_v18 = vor.u32 %v1201_v7, %v1197_v58  ;;  %v531_v24 = vshll.u32 %v5823_v11, 16  ;;  %v536_v26 = vshrl.u32 %v5824_v13, 16  ;;  %v308_v32 = vld [vmem:[%s7463_s6 + $0x70] sm:$0xff]  ;;  %v797_v36 = vld [vmem:[#allocation2 + $0x5c] sm:$0x1] }
  0xc4   : > { %v2134_v60 = vrot.slane %v2132_v53, 1  ;;  %v2139_v3 = vrot.slane %v2137_v2, 1  ;;  %v525_v15 = vsel %vm7511_vm5, %v517_v56, %v524_v4  ;;  %v539_v28 = vshll.u32 %v5824_v13, 16  ;;  %v309_v25 = vld [vmem:[%s7463_s6 + $0x78] sm:$0xff]  ;;  %v800_v50 = vld [vmem:[#allocation2 + $0x60] sm:$0xf] }
  0xc5   : > { %v791_v16 = vsel %vm7524_vm7, %v526_v6, %v790_v62  ;;  %789 = vst [vmem:[#allocation2 + $0x4c] sm:$0xf] %v525_v15  ;;  %v1207_v14 = vsel %vm1183_vm9, %v1202_v18, %v1206_v12  ;;  %v1211_v30 = vshll.u32 %v6868_v20, 16  ;;  %v1216_v31 = vshll.u32 %v6869_v19, 16  ;;  %v6871_v2 = vld [vmem:[#allocation2 + $0x18] sm:$0xff]  }
  0xc6   : > { %v2135_v9 = vor.u32 %v2134_v60, %v2130_v51  ;;  %792 = vst [vmem:[#allocation2 + $0x50] sm:$0x1] %v791_v16  ;;  %v530_v33 = vrot.slane %v528_v23, 7  ;;  %v538_v34 = vrot.slane %v536_v26, 7  ;;  %v5826_v49 = vpack.c.bf16 %v309_v25, %v309_v25  ;;  %v6875_v51 = vld [vmem:[#allocation2 + $0x24] sm:$0xff]   ;;  %v6879_v16 = vld [vmem:[#allocation2 + $0x6c] sm:$0xff]  }
  0xc7   : > { %v1213_v37 = vrot.slane %v1211_v30, 1  ;;  %v1218_v38 = vrot.slane %v1216_v31, 1  ;;  %v6876_v60 = vld [vmem:[#allocation2 + $0x2c] ss:$0 sps:$4 sm:$0x11]   ;;  %v1221_v61 = vshrl.u32 %v6875_v51, 16 }
  0xc8   : > { %v2140_v22 = vsel %vm1183_vm9, %v2135_v9, %v2139_v3  ;;  %v533_v40 = vor.u32 %v531_v24, %v530_v33  ;;  %v534_v41 = vrot.slane %v530_v33, 4  ;;  %v541_v42 = vor.u32 %v539_v28, %v538_v34  ;;  %v804_v13 = vld [vmem:[#allocation2 + $0x68] sm:$0x1]  ;;  %v6880_v48 = vld [vmem:[#allocation2 + $0x74] ss:$0 sps:$4 sm:$0x11]  }
  0xc9   : > { %3300 = vmatmul.mubr.bf16.vlgmr.msra.gmra.mrb[16].mxu1 %v6858_v54  ;;  %2865 = vmatprep.mubr.bf16.mxu0 %v2140_v22  ;;  %v543_v43 = vrot.slane %v538_v34, 4  ;;  %v1214_v44 = vor.u32 %v1213_v37, %v1209_v21  ;;  %v553_v63 = vshrl.u32 %v5826_v49, 16  ;;  %v556_v0 = vshll.u32 %v5826_v49, 16  ;;  %v6878_v31 = vld [vmem:[#allocation2 + $0x24] sm:$0xff]  }
  0xca   : > { %6428 = vmatpush3.bf16.msra.mxu1 %v6859_v35  ;;  %2866 = vmatmul.mubr.bf16.gmra.mrb[16].mxu0 %v6857_v10  ;;  %v5825_v35 = vpack.c.bf16 %v308_v32, %v308_v32  ;;  %v542_v8 = vsel %vm7511_vm5, %v534_v41, %v541_v42  ;;  %v794_v46 = vsel %vm7518_vm6, %v533_v40, %v793_v29  ;;  %v1223_v1 = vshll.u32 %v6875_v51, 16  ;;  %v6882_v39 = vld [vmem:[#allocation2 + $0x38] ss:$0 sps:$4 sm:$0x11]  }
  0xcb   : > { %3307 = vmatprep.mubr.bf16.mxu1 %v1207_v14  ;;  %6429 = vmatprep.subr.bf16.mxu1 %v6872_v27  ;;  %v798_v47 = vsel %vm7524_vm7, %v543_v43, %v797_v36  ;;  %795 = vst [vmem:[#allocation2 + $0x54] sm:$0xf] %v794_v46  ;;  %796 = vst [vmem:[#allocation2 + $0x58] sm:$0xf] %v542_v8  ;;  %v1219_v54 = vsel %vm1183_vm9, %v1214_v44, %v1218_v38  ;;  %v1228_v6 = vshll.u32 %v6876_v60, 16  ;;  %v6884_v46 = vld [vmem:[#allocation2 + $0x30] sm:$0xff]  }
  0xcc   : > { %v545_v45 = vshrl.u32 %v5825_v35, 16  ;;  %v548_v17 = vshll.u32 %v5825_v35, 16  ;;  %v6860_v53 = vld [vmem:[#allocation2 + $0x48] sm:$0xff]   ;;  %799 = vst [vmem:[#allocation2 + $0x5c] sm:$0x1] %v798_v47  ;;  %v555_v9 = vrot.slane %v553_v63, 7 }
  0xcd   : > { %v6861_v56 = vld [vmem:[#allocation2 + $0x50] ss:$0 sps:$4 sm:$0x11]   ;;  %v2142_v57 = vshrl.u32 %v6860_v53, 16  ;;  %v2144_v58 = vshll.u32 %v6860_v53, 16  ;;  %v1225_v10 = vrot.slane %v1223_v1, 1 }
  0xce   : > { %6430 = vmatpush3.bf16.msra.mxu1 %v6872_v27  ;;  %v547_v55 = vrot.slane %v545_v45, 7  ;;  %v2149_v62 = vshll.u32 %v6861_v56, 16  ;;  %v6864_v11 = vld [vmem:[#allocation2 + $0x48] sm:$0xff]   ;;  %v1230_v15 = vrot.slane %v1228_v6, 1  ;;  %v558_v18 = vor.u32 %v556_v0, %v555_v9  ;;  %v6881_v27 = vld [vmem:[#allocation2 + $0x30] sm:$0xff]  }
  0xcf   : > { %v2146_v3 = vrot.slane %v2144_v58, 1  ;;  %v1226_v19 = vor.u32 %v1225_v10, %v1221_v61  ;;  %v560_v24 = vrot.slane %v555_v9, 4  ;;  %v2180_v32 = vshll.u32 %v6879_v16, 16  ;;  %v6885_v47 = vld [vmem:[#allocation7 + $0x90] sm:$0xff]  }
  0xd0   : > { %v550_v59 = vor.u32 %v548_v17, %v547_v55  ;;  %v2151_v7 = vrot.slane %v2149_v62, 1  ;;  %v551_v20 = vrot.slane %v547_v55, 4  ;;  %v1233_v35 = vshrl.u32 %v6881_v27, 16  ;;  %6431 = vmatprep.subr.bf16.mxu1 %v6885_v47  ;;  %v6889_v63 = vld [vmem:[#allocation2 + $0x44] ss:$0 sps:$4 sm:$0x11]  }
  0xd1   : > { %3308 = vmatmul.mubr.bf16.gmra.mrb[20].mxu1 %v6865_v5  ;;  %v2147_v12 = vor.u32 %v2146_v3, %v2142_v57  ;;  %v1231_v26 = vsel %vm1183_vm9, %v1226_v19, %v1230_v15  ;;  %v805_v30 = vsel %vm7524_vm7, %v560_v24, %v804_v13  ;;  %v1235_v36 = vshll.u32 %v6881_v27, 16  ;;  %v6891_v15 = vld [vmem:[#allocation2 + $0x3c] sm:$0xff]  }
  0xd2   : > { %3315 = vmatprep.mubr.bf16.mxu1 %v1219_v54  ;;  %v801_v4 = vsel %vm7518_vm6, %v550_v59, %v800_v50  ;;  %v6866_v22 = vld [vmem:[#allocation2 + $0x54] sm:$0xff]   ;;  %v559_v23 = vsel %vm7511_vm5, %v551_v20, %v558_v18  ;;  %806 = vst [vmem:[#allocation2 + $0x68] sm:$0x1] %v805_v30  ;;  %v2185_v25 = vshll.u32 %v6880_v48, 16  ;;  %v1240_v41 = vshll.u32 %v6882_v39, 16  ;;  %6432 = vmatpush3.bf16.msra.mxu1 %v6885_v47  ;;  %v6888_v59 = vld [vmem:[#allocation2 + $0x3c] sm:$0xff]  }
  0xd3   : > { %802 = vst [vmem:[#allocation2 + $0x60] sm:$0xf] %v801_v4  ;;  %v2152_v21 = vsel %vm1183_vm9, %v2147_v12, %v2151_v7  ;;  %v6867_v5 = vld [vmem:[#allocation2 + $0x5c] ss:$0 sps:$4 sm:$0x11]   ;;  %v2154_v14 = vshrl.u32 %v6866_v22, 16 }
  0xd4   : > { %2873 = vmatprep.mubr.bf16.mxu0 %v2152_v21  ;;  %v2156_v28 = vshll.u32 %v6866_v22, 16  ;;  %v2161_v29 = vshll.u32 %v6867_v5, 16  ;;  %803 = vst [vmem:[#allocation2 + $0x64] sm:$0xf] %v559_v23  ;;  %v6870_v38 = vld [vmem:[#allocation2 + $0x54] sm:$0xff]   ;;  %v1237_v40 = vrot.slane %v1235_v36, 1 }
  0xd5   : > { %2874 = vmatmul.mubr.bf16.gmra.mrb[20].mxu0 %v6864_v11  ;;  %v2178_v43 = vshrl.u32 %v6879_v16, 16  ;;  %v2182_v44 = vrot.slane %v2180_v32, 1  ;;  %v1242_v17 = vrot.slane %v1240_v41, 1  ;;  %v2187_v8 = vrot.slane %v2185_v25, 1  ;;  %v6886_v54 = vld [vmem:[#allocation2 + $0x78] sm:$0xff]   ;;  %v6892_v12 = vld [vmem:[#allocation2 + $0x84] sm:$0xff]  }
  0xd6   : > { %v2158_v33 = vrot.slane %v2156_v28, 1  ;;  %v2163_v34 = vrot.slane %v2161_v29, 1  ;;  %v1238_v45 = vor.u32 %v1237_v40, %v1233_v35  ;;  %v2192_v58 = vshll.u32 %v6886_v54, 16  ;;  %v6893_v16 = vld [vmem:[#allocation2 + $0x8c] ss:$0 sps:$4 sm:$0x11]  }
  0xd7   : > { %v2183_v56 = vor.u32 %v2182_v44, %v2178_v43  ;;  %v1245_v0 = vshrl.u32 %v6888_v59, 16  ;;  %v1247_v1 = vshll.u32 %v6888_v59, 16  ;;  %v2190_v4 = vshrl.u32 %v6886_v54, 16  ;;  %v6894_v18 = vld [vmem:[#allocation2 + $0x48] sm:$0xff]   ;;  %v6890_v40 = vld [vmem:[#allocation2 + $0x78] sm:$0xff]  }
  0xd8   : > { %v2159_v37 = vor.u32 %v2158_v33, %v2154_v14  ;;  %v1243_v51 = vsel %vm1183_vm9, %v1238_v45, %v1242_v17  ;;  %v2194_v20 = vrot.slane %v2192_v58, 1  ;;  %v1252_v10 = vshll.u32 %v6889_v63, 16  ;;  %v6883_v21 = vld [vmem:[#allocation2 + $0x6c] sm:$0xff]   ;;  %v6900_v36 = vld [vmem:[#allocation2 + $0x98] ss:$0 sps:$4 sm:$0x11]  }
  0xd9   : > { %3316 = vmatmul.mubr.bf16.gmra.mrb[24].mxu1 %v6871_v2  ;;  %v6874_v49 = vld [vmem:[#allocation2 + $0x68] ss:$0 sps:$4 sm:$0x11]   ;;  %v6887_v2 = vld [vmem:[#allocation2 + $0x80] ss:$0 sps:$4 sm:$0x11]   ;;  %v2188_v3 = vsel %vm1183_vm9, %v2183_v56, %v2187_v8 }
  0xda   : > { %3323 = vmatprep.mubr.bf16.mxu1 %v1231_v26  ;;  %v2164_v42 = vsel %vm1183_vm9, %v2159_v37, %v2163_v34  ;;  %v2173_v55 = vshll.u32 %v6874_v49, 16  ;;  %v2197_v6 = vshll.u32 %v6887_v2, 16  ;;  %v1249_v9 = vrot.slane %v1247_v1, 1  ;;  %v6895_v23 = vld [vmem:[#allocation2 + $0x50] ss:$0 sps:$4 sm:$0x11]  }
  0xdb   : > { %2881 = vmatprep.mubr.bf16.mxu0 %v2164_v42  ;;  %v6873_v52 = vld [vmem:[#allocation2 + $0x60] sm:$0xff]   ;;  %v1254_v13 = vrot.slane %v1252_v10, 1  ;;  %v2204_v19 = vshll.u32 %v6892_v12, 16  ;;  %v2195_v22 = vor.u32 %v2194_v20, %v2190_v4  ;;  %v2202_v24 = vshrl.u32 %v6892_v12, 16  ;;  %v6899_v34 = vld [vmem:[#allocation2 + $0x90] sm:$0xff]   ;;  %v6897_v35 = vld [vmem:[#allocation2 + $0x48] sm:$0xff]  }
  0xdc   : > { %v2166_v50 = vshrl.u32 %v6873_v52, 16  ;;  %v2168_v53 = vshll.u32 %v6873_v52, 16  ;;  %v2175_v60 = vrot.slane %v2173_v55, 1  ;;  %v6877_v62 = vld [vmem:[#allocation2 + $0x60] sm:$0xff]   ;;  %v1250_v11 = vor.u32 %v1249_v9, %v1245_v0  ;;  %v6904_v2 = vld [vmem:[#allocation2 + $0x54] sm:$0xff]   ;;  %v6912_v10 = vld [vmem:[#allocation2 + $0xa8] sm:$0xff]  }
  0xdd   : > { %2882 = vmatmul.mubr.bf16.gmra.mrb[24].mxu0 %v6870_v38  ;;  %v2199_v5 = vrot.slane %v2197_v6, 1  ;;  %v2209_v26 = vshll.u32 %v6893_v16, 16  ;;  %v1257_v27 = vshrl.u32 %v6894_v18, 16  ;;  %v1259_v14 = vshll.u32 %v6894_v18, 16  ;;  %v6901_v38 = vld [vmem:[#allocation2 + $0x54] sm:$0xff]   ;;  %v6905_v47 = vld [vmem:[#allocation2 + $0x9c] sm:$0xff]  }
  0xde   : > { %v2170_v57 = vrot.slane %v2168_v53, 1  ;;  %v1255_v48 = vsel %vm1183_vm9, %v1250_v11, %v1254_v13  ;;  %v2206_v28 = vrot.slane %v2204_v19, 1  ;;  %v1264_v29 = vshll.u32 %v6895_v23, 16  ;;  %v6902_v44 = vld [vmem:[#allocation2 + $0x5c] ss:$0 sps:$4 sm:$0x11]  }
  0xdf   : > { %v1261_v30 = vrot.slane %v1259_v14, 1  ;;  %v2200_v32 = vsel %vm1183_vm9, %v2195_v22, %v2199_v5  ;;  %v2216_v37 = vshll.u32 %v6899_v34, 16  ;;  %v2211_v42 = vrot.slane %v2209_v26, 1  ;;  %v6906_v54 = vld [vmem:[#allocation2 + $0xa4] ss:$0 sps:$4 sm:$0x11]  }
  0xe0   : > { %v2171_v61 = vor.u32 %v2170_v57, %v2166_v50  ;;  %v1266_v33 = vrot.slane %v1264_v29, 1  ;;  %v2207_v41 = vor.u32 %v2206_v28, %v2202_v24  ;;  %v2221_v43 = vshll.u32 %v6900_v36, 16  ;;  %v6907_v50 = vld [vmem:[#allocation2 + $0x60] sm:$0xff]   ;;  %v6908_v57 = vld [vmem:[#allocation2 + $0x68] ss:$0 sps:$4 sm:$0x11]  }
  0xe1   : > { %3324 = vmatmul.mubr.bf16.gmra.mrb[28].mxu1 %v6878_v31  ;;  %v6898_v31 = vld [vmem:[#allocation7 + $0x98] sm:$0xff]   ;;  %v1262_v39 = vor.u32 %v1261_v30, %v1257_v27  ;;  %v1269_v52 = vshrl.u32 %v6901_v38, 16  ;;  %v1271_v45 = vshll.u32 %v6901_v38, 16  ;;  %v2214_v17 = vshrl.u32 %v6899_v34, 16  ;;  %v6910_v16 = vld [vmem:[#allocation2 + $0x60] sm:$0xff]  }
  0xe2   : > { %3331 = vmatprep.mubr.bf16.mxu1 %v1243_v51  ;;  %v2176_v7 = vsel %vm1183_vm9, %v2171_v61, %v2175_v60  ;;  %6433 = vmatprep.subr.bf16.mxu1 %v6898_v31  ;;  %v2218_v8 = vrot.slane %v2216_v37, 1  ;;  %v2212_v51 = vsel %vm1183_vm9, %v2207_v41, %v2211_v42  ;;  %v2223_v55 = vrot.slane %v2221_v43, 1  ;;  %v6913_v11 = vld [vmem:[#allocation2 + $0xb0] ss:$0 sps:$4 sm:$0x11]  }
  0xe3   : > { %2889 = vmatprep.mubr.bf16.mxu0 %v2176_v7  ;;  %6434 = vmatpush3.bf16.msra.mxu1 %v6898_v31  ;;  %v1267_v25 = vsel %vm1183_vm9, %v1262_v39, %v1266_v33  ;;  %v1273_v49 = vrot.slane %v1271_v45, 1  ;;  %v2228_v59 = vshll.u32 %v6905_v47, 16  ;;  %v1281_v60 = vshrl.u32 %v6907_v50, 16  ;;  %v6911_v7 = vld [vmem:[#allocation7 + $0xa0] sm:$0xff]   ;;  %v6914_v13 = vld [vmem:[#allocation2 + $0x6c] sm:$0xff]  }
  0xe4   : > { %v1283_v61 = vshll.u32 %v6907_v50, 16  ;;  %v2219_v63 = vor.u32 %v2218_v8, %v2214_v17  ;;  %v2226_v0 = vshrl.u32 %v6905_v47, 16  ;;  %v1288_v1 = vshll.u32 %v6908_v57, 16  ;;  %6435 = vmatprep.subr.bf16.mxu1 %v6911_v7  ;;  %v6915_v18 = vld [vmem:[#allocation2 + $0x74] ss:$0 sps:$4 sm:$0x11]  }
  0xe5   : > { %2890 = vmatmul.mubr.bf16.gmra.mrb[28].mxu0 %v6877_v62  ;;  %v1274_v56 = vor.u32 %v1273_v49, %v1269_v52  ;;  %v6896_v62 = vld [vmem:[#allocation2 + $0x84] sm:$0xff]   ;;  %v2230_v20 = vrot.slane %v2228_v59, 1  ;;  %v1293_v19 = vshrl.u32 %v6914_v13, 16  ;;  %v2238_v23 = vshrl.u32 %v6912_v10, 16  ;;  %v6920_v31 = vld [vmem:[#allocation2 + $0x78] sm:$0xff]   ;;  %v6917_v38 = vld [vmem:[#allocation2 + $0x6c] sm:$0xff]  }
  0xe6   : > { %2897 = vmatprep.mubr.bf16.mxu0 %v2188_v3  ;;  %v2233_v3 = vshll.u32 %v6906_v54, 16  ;;  %v1285_v4 = vrot.slane %v1283_v61, 1  ;;  %v1290_v6 = vrot.slane %v1288_v1, 1  ;;  %v2224_v12 = vsel %vm1183_vm9, %v2219_v63, %v2223_v55  ;;  %v6919_v30 = vld [vmem:[#allocation2 + $0xbc] ss:$0 sps:$4 sm:$0x11]  }
  0xe7   : > { %6436 = vmatpush3.bf16.msra.mxu1 %v6911_v7  ;;  %v2231_v22 = vor.u32 %v2230_v20, %v2226_v0  ;;  %v2240_v24 = vshll.u32 %v6912_v10, 16  ;;  %v1300_v27 = vshll.u32 %v6915_v18, 16  ;;  %v2245_v14 = vshll.u32 %v6913_v11, 16  ;;  %v6918_v39 = vld [vmem:[#allocation2 + $0xb4] sm:$0xff]   ;;  %v6909_v8 = vld [vmem:[#allocation2 + $0x9c] sm:$0xff]   ;;  %v6916_v1 = vld [vmem:[#allocation2 + $0xa8] sm:$0xff]  }
  0xe8   : > { %v1286_v9 = vor.u32 %v1285_v4, %v1281_v60  ;;  %v2235_v5 = vrot.slane %v2233_v3, 1  ;;  %v1305_v36 = vshrl.u32 %v6920_v31, 16  ;;  %v1307_v37 = vshll.u32 %v6920_v31, 16  ;;  %v6925_v50 = vld [vmem:[#allocation2 + $0xc0] sm:$0xff]   ;;  %v6933_v0 = vld [vmem:[#allocation2 + $0x90] sm:$0xff]  }
  0xe9   : > { %3332 = vmatmul.mubr.bf16.gmra.mrb[32].mxu1 %v6884_v46  ;;  %v1276_v46 = vshll.u32 %v6902_v44, 16  ;;  %v1302_v29 = vrot.slane %v1300_v27, 1  ;;  %v2242_v33 = vrot.slane %v2240_v24, 1  ;;  %v2252_v43 = vshll.u32 %v6918_v39, 16  ;;  %v6924_v44 = vld [vmem:[#allocation7 + $0xa8] sm:$0xff]  }
  0xea   : > { %3339 = vmatprep.mubr.bf16.mxu1 %v1255_v48  ;;  %v6903_v48 = vld [vmem:[#allocation2 + $0x90] sm:$0xff]   ;;  %v2257_v52 = vshll.u32 %v6919_v30, 16  ;;  %6437 = vmatprep.subr.bf16.mxu1 %v6924_v44  ;;  %v2250_v47 = vshrl.u32 %v6918_v39, 16  ;;  %v6928_v54 = vld [vmem:[#allocation2 + $0x8c] ss:$0 sps:$4 sm:$0x11]  }
  0xeb   : > { %v1278_v53 = vrot.slane %v1276_v46, 1  ;;  %v2243_v42 = vor.u32 %v2242_v33, %v2238_v23  ;;  %v6927_v46 = vld [vmem:[#allocation2 + $0x84] sm:$0xff]   ;;  %6438 = vmatpush3.bf16.msra.mxu1 %v6924_v44  ;;  %v1324_v59 = vshll.u32 %v6928_v54, 16  ;;  %v2264_v60 = vshll.u32 %v6925_v50, 16  ;;  %v6937_v30 = vld [vmem:[#allocation2 + $0x90] sm:$0xff]   ;;  %v6945_v31 = vld [vmem:[#allocation2 + $0x9c] sm:$0xff]  }
  0xec   : > { %v2259_v55 = vrot.slane %v2257_v52, 1  ;;  %v1319_v57 = vshll.u32 %v6927_v46, 16  ;;  %v2262_v3 = vshrl.u32 %v6925_v50, 16  ;;  %v1329_v10 = vshrl.u32 %v6933_v0, 16  ;;  %v6930_v18 = vld [vmem:[#allocation2 + $0x84] sm:$0xff]   ;;  %v6940_v54 = vld [vmem:[#allocation7 + $0x180] sm:$0xff]  }
  0xed   : > { %2898 = vmatmul.mubr.bf16.gmra.mrb[32].mxu0 %v6883_v21  ;;  %v1279_v58 = vsel %vm1183_vm9, %v1274_v56, %v1278_v53  ;;  %v1295_v21 = vshll.u32 %v6914_v13, 16  ;;  %v2254_v53 = vrot.slane %v2252_v43, 1  ;;  %v6926_v56 = vld [vmem:[#allocation2 + $0xc8] ss:$0 sps:$4 sm:$0x11]   ;;  %v1326_v63 = vrot.slane %v1324_v59, 1 }
  0xee   : > { %2905 = vmatprep.mubr.bf16.mxu0 %v2200_v32  ;;  %v2236_v32 = vsel %vm1183_vm9, %v2231_v22, %v2235_v5  ;;  %v1321_v61 = vrot.slane %v1319_v57, 1  ;;  %v2269_v7 = vshll.u32 %v6926_v56, 16  ;;  %v1331_v11 = vshll.u32 %v6933_v0, 16  ;;  %v6938_v13 = vld [vmem:[#allocation7 + $0xb0] sm:$0xff]   ;;  %v6954_v50 = vld [vmem:[#allocation2 + $0x3c] sm:$0xfe]  }
  0xef   : > { %v1297_v26 = vrot.slane %v1295_v21, 1  ;;  %6439 = vmatprep.subr.bf16.mxu1 %v6938_v13  ;;  %v6932_v24 = vld [vmem:[#allocation2 + $0x14] ss:$0 sps:$4 sm:$0x11]  }
  0xf0   : > { %v2271_v21 = vrot.slane %v2269_v7, 1  ;;  %6440 = vmatpush3.bf16.msra.mxu1 %v6938_v13  ;;  %v2482_v33 = vrot.slane %v6932_v24, 1  ;;  %v6946_v39 = vld [vmem:[#allocation2 + $0xa4] ss:$0 sps:$4 sm:$0x11]   ;;  %v6951_v13 = vld [vmem:[#allocation7 + $0x190] sm:$0xff]  }
  0xf1   : > { %3340 = vmatmul.mubr.bf16.gmra.mrb[36].mxu1 %v6891_v15  ;;  %v1291_v15 = vsel %vm1183_vm9, %v1286_v9, %v1290_v6  ;;  %v1298_v28 = vor.u32 %v1297_v26, %v1293_v19  ;;  %v2266_v6 = vrot.slane %v2264_v60, 1  ;;  %v6934_v9 = vld [vmem:[#allocation2 + $0x98] ss:$0 sps:$4 sm:$0x11]   ;;  %v1333_v19 = vrot.slane %v1331_v11, 1 }
  0xf2   : > { %3347 = vmatprep.mubr.bf16.mxu1 %v1267_v25  ;;  %v2247_v25 = vrot.slane %v2245_v14, 1  ;;  %v6922_v26 = vld [vmem:[#allocation2 + $0xb4] sm:$0xff]  }
  0xf3   : > { %v1303_v34 = vsel %vm1183_vm9, %v1298_v28, %v1302_v29  ;;  %v2267_v5 = vor.u32 %v2266_v6, %v2262_v3  ;;  %v1334_v23 = vor.u32 %v1333_v19, %v1329_v10  ;;  %v6935_v29 = vld [vmem:[#allocation2 + $0x18] sm:$0xfe]   ;;  %v6950_v6 = vld [vmem:[#allocation7 + $0x1d0] sm:$0xff]  }
  0xf4   : > { %v6958_v10 = vld [vmem:[#allocation2 + $0x48] sm:$0xfe]   ;;  %v6962_v24 = vld [vmem:[#allocation7 + $0x1e0] sm:$0xff]  }
  0xf5   : > { %2906 = vmatmul.mubr.bf16.gmra.mrb[36].mxu0 %v6890_v40  ;;  %v1309_v40 = vrot.slane %v1307_v37, 1  ;;  %v2272_v14 = vsel %vm1183_vm9, %v2267_v5, %v2271_v21  ;;  %v6929_v37 = vld [vmem:[#allocation2 + $0xc0] sm:$0xff]   ;;  %v6966_v21 = vld [vmem:[#allocation2 + $0x54] sm:$0xfe]  }
  0xf6   : > { %2913 = vmatprep.mubr.bf16.mxu0 %v2212_v51  ;;  %v2248_v51 = vsel %vm1183_vm9, %v2243_v42, %v2247_v25  ;;  %v6944_v25 = vld [vmem:[#allocation2 + $0x2c] ss:$0 sps:$4 sm:$0x11]   ;;  %v6967_v5 = vld [vmem:[#allocation2 + $0x5c] ss:$0 sps:$4 sm:$0x11]  }
  0xf7   : > { %v1310_v45 = vor.u32 %v1309_v40, %v1305_v36  ;;  %v1343_v36 = vshll.u32 %v6945_v31, 16 }
  0xf9   : > { %3348 = vmatmul.mubr.bf16.gmra.mrb[40].mxu1 %v6897_v35  ;;  %v6921_v35 = vld [vmem:[#allocation2 + $0x80] ss:$0 sps:$4 sm:$0x11]   ;;  %v1345_v40 = vrot.slane %v1343_v36, 1 }
  0xfa   : > { %3355 = vmatprep.mubr.bf16.mxu1 %v1279_v58  ;;  %v1312_v41 = vshll.u32 %v6921_v35, 16  ;;  %v6923_v58 = vld [vmem:[#allocation2 + $0x78] sm:$0xff]   ;;  %v1341_v35 = vshrl.u32 %v6945_v31, 16 }
  0xfc   : > { %v1314_v17 = vrot.slane %v1312_v41, 1  ;;  %v2484_v41 = vrot.slane %v6935_v29, 1 }
  0xfd   : > { %2914 = vmatmul.mubr.bf16.gmra.mrb[40].mxu0 %v6896_v62  ;;  %v2255_v62 = vor.u32 %v2254_v53, %v2250_v47  ;;  %v6947_v47 = vld [vmem:[#allocation2 + $0x30] sm:$0xfe]   ;;  %v6956_v53 = vld [vmem:[#allocation2 + $0xa8] sm:$0xff]  }
  0xfe   : > { %2921 = vmatprep.mubr.bf16.mxu0 %v2224_v12  ;;  %v1315_v49 = vsel %vm1183_vm9, %v1310_v45, %v1314_v17  ;;  %v1346_v45 = vor.u32 %v1345_v40, %v1341_v35  ;;  %v2488_v17 = vrot.slane %v6944_v25, 1  ;;  %v2490_v57 = vrot.slane %v6947_v47, 1  ;;  %v6964_v35 = vld [vmem:[#allocation7 + $0x1e8] sm:$0xff]   ;;  %v6972_v25 = vld [vmem:[#allocation2 + $0xb4] sm:$0xff]  }
  0xff   : > { %v2260_v12 = vsel %vm1183_vm9, %v2255_v62, %v2259_v55  ;;  %v6957_v55 = vld [vmem:[#allocation2 + $0xb0] ss:$0 sps:$4 sm:$0x11]   ;;  %v1355_v59 = vshll.u32 %v6956_v53, 16  ;;  %v6965_v40 = vld [vmem:[#allocation7 + $0x1a8] sm:$0xff]  }
 0x100   : > { %v6961_v62 = vld [vmem:[#allocation7 + $0xb8] sm:$0xff]  }
 0x101   : > { %3356 = vmatmul.mubr.bf16.gmra.mrb[44].mxu1 %v6904_v2  ;;  %v1317_v2 = vshrl.u32 %v6927_v46, 16  ;;  %v6949_v46 = vld [vmem:[#allocation2 + $0x9c] sm:$0xff]   ;;  %6441 = vmatprep.subr.bf16.mxu1 %v6961_v62 }
 0x102   : > { %3363 = vmatprep.mubr.bf16.mxu1 %v1291_v15  ;;  %v1336_v15 = vshll.u32 %v6934_v9, 16  ;;  %6442 = vmatpush3.bf16.msra.mxu1 %v6961_v62 }
 0x103   : > { %v1322_v4 = vor.u32 %v1321_v61, %v1317_v2  ;;  %v6941_v2 = vld [vmem:[#allocation7 + $0x1c8] sm:$0xff]   ;;  %v1360_v61 = vshll.u32 %v6957_v55, 16 }
 0x104   : > { %v1338_v22 = vrot.slane %v1336_v15, 1 }
 0x105   : > { %2922 = vmatmul.mubr.bf16.gmra.mrb[44].mxu0 %v6903_v48  ;;  %v1327_v20 = vsel %vm1183_vm9, %v1322_v4, %v1326_v63  ;;  %v6931_v48 = vld [vmem:[#allocation2 + $0xc] sm:$0xfe]   ;;  %v6942_v63 = vld [vmem:[#allocation7 + $0x188] sm:$0xff]   ;;  %v1357_v4 = vrot.slane %v1355_v59, 1  ;;  %v1362_v7 = vrot.slane %v1360_v61, 1 }
 0x106   : > { %2929 = vmatprep.mubr.bf16.mxu0 %v2236_v32  ;;  %v1339_v27 = vsel %vm1183_vm9, %v1334_v23, %v1338_v22  ;;  %v2481_v28 = vrot.slane %v6931_v48, 1  ;;  %v6936_v32 = vld [vmem:[#allocation2 + $0x20] ss:$0 sps:$4 sm:$0x11]   ;;  %v6953_v22 = vld [vmem:[#allocation7 + $0x198] sm:$0xff]  }
 0x107   : > { %v2485_v44 = vrot.slane %v6936_v32, 1  ;;  %v6968_v48 = vld [vmem:[#allocation2 + $0xb4] sm:$0xff]   ;;  %v6970_v32 = vld [vmem:[#allocation2 + $0x60] sm:$0xfe]  }
 0x108   : > { %v2483_v43 = vsel %vm1584_vm8, %v2481_v28, %v2482_v33  ;;  %v1365_v28 = vshrl.u32 %v6968_v48, 16  ;;  %v1367_v29 = vshll.u32 %v6968_v48, 16  ;;  %v6963_v33 = vld [vmem:[#allocation7 + $0x1a0] sm:$0xff]  }
 0x109   : > { %3364 = vmatmul.mubr.bf16.gmra.mrb[48].mxu1 %v6910_v16  ;;  %v6939_v16 = vld [vmem:[#allocation7 + $0x1c0] sm:$0xff]   ;;  %v2486_v56 = vsel %vm1584_vm8, %v2484_v41, %v2485_v44  ;;  %v6973_v44 = vld [vmem:[#allocation7 + $0x1f0] sm:$0xff]  }
 0x10a   : > { %3371 = vmatprep.mubr.bf16.mxu1 %v1303_v34  ;;  %6243 = vmatprep.subr.bf16.mxu0 %v6939_v16  ;;  %v6943_v34 = vld [vmem:[#allocation2 + $0x24] sm:$0xfe]   ;;  %v6952_v16 = vld [vmem:[#allocation7 + $0x1d8] sm:$0xff]  }
 0x10b   : > { %v2487_v52 = vrot.slane %v6943_v34, 1  ;;  %v6971_v34 = vld [vmem:[#allocation2 + $0x68] ss:$0 sps:$4 sm:$0x11]  }
 0x10d   : > { %2930 = vmatmul.mubr.bf16.gmra.mrb[48].mxu0 %v6909_v8  ;;  %v2489_v60 = vsel %vm1584_vm8, %v2487_v52, %v2488_v17  ;;  %v6977_v52 = vld [vmem:[#allocation2] sm:$0xfe]   ;;  %v6979_v17 = vld [vmem:[#allocation2 + $0x18] sm:$0xff]  }
 0x10e   : > { %2937 = vmatprep.mubr.bf16.mxu0 %v2248_v51  ;;  %v6955_v51 = vld [vmem:[#allocation2 + $0x44] ss:$0 sps:$4 sm:$0x11]   ;;  %v1585_v47 = vrot.slane %v6977_v52, 1  ;;  %v6999_v52 = vld [vmem:[#allocation2 + $0x30] sm:$0xff]  }
 0x10f   : > { %v2494_v3 = vrot.slane %v6955_v51, 1 }
 0x111   : > { %3372 = vmatmul.mubr.bf16.gmra.mrb[52].mxu1 %v6917_v38  ;;  %v1348_v38 = vshll.u32 %v6946_v39, 16 }
 0x112   : > { %3379 = vmatprep.mubr.bf16.mxu1 %v1315_v49  ;;  %v6948_v49 = vld [vmem:[#allocation2 + $0x38] ss:$0 sps:$4 sm:$0x11]  }
 0x113   : > { %v1350_v42 = vrot.slane %v1348_v38, 1  ;;  %v2491_v0 = vrot.slane %v6948_v49, 1 }
 0x115   : > { %2938 = vmatmul.mubr.bf16.gmra.mrb[52].mxu0 %v6916_v1  ;;  %v1351_v8 = vsel %vm1183_vm9, %v1346_v45, %v1350_v42  ;;  %v2493_v1 = vrot.slane %v6954_v50, 1  ;;  %v2492_v15 = vsel %vm1584_vm8, %v2490_v57, %v2491_v0  ;;  %v2502_v42 = vrot.slane %v6970_v32, 1  ;;  %v6978_v45 = vld [vmem:[#allocation2 + $0x8] ss:$0 sps:$4 sm:$0x11]   ;;  %v6984_v57 = vld [vmem:[#allocation7 + $0x200] sm:$0xff]  }
 0x116   : > { %2945 = vmatprep.mubr.bf16.mxu0 %v2260_v12  ;;  %v6959_v12 = vld [vmem:[#allocation2 + $0x50] ss:$0 sps:$4 sm:$0x11]   ;;  %v1586_v49 = vrot.slane %v6978_v45, 1  ;;  %6475 = vmatprep.subr.bf16.mxu1 %v6984_v57  ;;  %v7003_v45 = vld [vmem:[#allocation2 + $0x3c] sm:$0xff]  }
 0x117   : > { %v2495_v19 = vsel %vm1584_vm8, %v2493_v1, %v2494_v3  ;;  %v2497_v23 = vrot.slane %v6959_v12, 1  ;;  %v6980_v50 = vld [vmem:[#allocation2 + $0x20] ss:$0 sps:$4 sm:$0x11]   ;;  %v6987_v1 = vld [vmem:[#allocation2 + $0x24] sm:$0xff]   ;;  %v6983_v3 = vld [vmem:[#allocation2 + $0x18] sm:$0xff]  }
 0x118   : > { %v1587_v55 = vsel %vm1584_vm8, %v1585_v47, %v1586_v49  ;;  %v3925_v12 = vshll.u32 %v6987_v1, 16  ;;  %v7002_v47 = vld [vmem:[#allocation2 + $0x50] ss:$0 sps:$4 sm:$0x11]   ;;  %v3947_v49 = vshrl.u32 %v7003_v45, 16 }
 0x119   : > { %3380 = vmatmul.mubr.bf16.gmra.mrb[56].mxu1 %v6923_v58  ;;  %v1353_v58 = vshrl.u32 %v6956_v53, 16  ;;  %v3911_v53 = vshrl.u32 %v6979_v17, 16 }
 0x11a   : > { %3387 = vmatprep.mubr.bf16.mxu1 %v1327_v20  ;;  %v6960_v20 = vld [vmem:[#allocation2 + $0xa8] sm:$0xff]  }
 0x11b   : > { %v1358_v9 = vor.u32 %v1357_v4, %v1353_v58  ;;  %v6976_v58 = vld [vmem:[#allocation7 + $0x1b8] sm:$0xff]   ;;  %v6985_v4 = vld [vmem:[#allocation2 + $0x18] sm:$0xfe]  }
 0x11d   : > { %2946 = vmatmul.mubr.bf16.gmra.mrb[56].mxu0 %v6922_v26  ;;  %v1363_v11 = vsel %vm1183_vm9, %v1358_v9, %v1362_v7  ;;  %v2499_v26 = vrot.slane %v6966_v21, 1  ;;  %v3923_v9 = vshrl.u32 %v6987_v1, 16  ;;  %v6990_v21 = vld [vmem:[#allocation2 + $0x2c] ss:$0 sps:$4 sm:$0x11]  }
 0x11e   : > { %2953 = vmatprep.mubr.bf16.mxu0 %v2272_v14  ;;  %v6969_v14 = vld [vmem:[#allocation2 + $0xbc] ss:$0 sps:$4 sm:$0x11]  }
 0x11f   : > { %v1372_v31 = vshll.u32 %v6969_v14, 16 }
 0x121   : > { %3388 = vmatmul.mubr.bf16.gmra.mrb[60].mxu1 %v6930_v18  ;;  %v2496_v18 = vrot.slane %v6958_v10, 1  ;;  %v1591_v10 = vrot.slane %v6985_v4, 1  ;;  %v7009_v4 = vld [vmem:[#allocation2 + $0x60] sm:$0xfe]  }
 0x122   : > { %3395 = vmatprep.mubr.bf16.mxu1 %v1339_v27  ;;  %v2500_v27 = vrot.slane %v6967_v5, 1 }
 0x123   : > { %v2498_v39 = vsel %vm1584_vm8, %v2496_v18, %v2497_v23  ;;  %v1595_v23 = vrot.slane %v6990_v21, 1  ;;  %v7014_v21 = vld [vmem:[#allocation2 + $0x74] ss:$0 sps:$4 sm:$0x11]  }
 0x124   : > { %v2501_v38 = vsel %vm1584_vm8, %v2499_v26, %v2500_v27  ;;  %v6991_v26 = vld [vmem:[#allocation2 + $0x24] sm:$0xff]  }
 0x125   : > { %2954 = vmatmul.mubr.bf16.gmra.mrb[60].mxu0 %v6929_v37  ;;  %v1374_v37 = vrot.slane %v1372_v31, 1 }
 0x126   : > { %6395 = vmatprep.mubr.bf16.mxu0 %v2483_v43  ;;  %v2503_v43 = vrot.slane %v6971_v34, 1 }
 0x128   : > { %v2504_v51 = vsel %vm1584_vm8, %v2502_v42, %v2503_v43 }
 0x129   : > { %3396 = vmatmul.mubr.bf16.gmra.mrb[64].mxu1 %v6937_v30  ;;  %v1369_v30 = vrot.slane %v1367_v29, 1  ;;  %v6994_v29 = vld [vmem:[#allocation2 + $0x38] ss:$0 sps:$4 sm:$0x11]  }
 0x12a   : > { %3403 = vmatprep.mubr.bf16.mxu1 %v1351_v8  ;;  %v6974_v8 = vld [vmem:[#allocation7 + $0x1b0] sm:$0xff]   ;;  %v1598_v32 = vrot.slane %v6994_v29, 1  ;;  %v7018_v29 = vld [vmem:[#allocation2 + $0x80] ss:$0 sps:$4 sm:$0x11]  }
 0x12b   : > { %v1370_v36 = vor.u32 %v1369_v30, %v1365_v28  ;;  %v6993_v28 = vld [vmem:[#allocation2 + $0x30] sm:$0xfe]  }
 0x12c   : > { %v6995_v30 = vld [vmem:[#allocation2 + $0x30] sm:$0xff]   ;;  %v1597_v31 = vrot.slane %v6993_v28, 1 }
 0x12d   : > { %6396 = vmatmul.mubr.bf16.vlgmr.msra.gmra.mrb[64].mxu0 %v2486_v56  ;;  %v1375_v41 = vsel %vm1183_vm9, %v1370_v36, %v1374_v37  ;;  %v3918_v56 = vshll.u32 %v6980_v50, 16  ;;  %v3935_v34 = vshrl.u32 %v6995_v30, 16  ;;  %v6997_v37 = vld [vmem:[#allocation2 + $0x3c] sm:$0xfe]  }
 0x12e   : > { %6244 = vmatpush3.bf16.msra.mxu0 %v6940_v54  ;;  %6399 = vmatprep.mubr.bf16.mxu0 %v2489_v60  ;;  %v3913_v54 = vshll.u32 %v6979_v17, 16  ;;  %v6982_v60 = vld [vmem:[#allocation2 + $0x14] ss:$0 sps:$4 sm:$0x11]   ;;  %v1600_v42 = vrot.slane %v6997_v37, 1 }
 0x12f   : > { %6245 = vmatprep.subr.bf16.mxu0 %v6941_v2  ;;  %v6981_v2 = vld [vmem:[#allocation2 + $0xc] sm:$0xfe]   ;;  %v3920_v61 = vrot.slane %v3918_v56, 1  ;;  %v1589_v0 = vrot.slane %v6982_v60, 1  ;;  %v7021_v37 = vld [vmem:[#allocation2 + $0x84] sm:$0xfe]  }
 0x130   : > { %v3915_v59 = vrot.slane %v3913_v54, 1  ;;  %v1588_v62 = vrot.slane %v6981_v2, 1  ;;  %v7001_v17 = vld [vmem:[#allocation2 + $0x48] sm:$0xfe]  }
 0x131   : > { %3404 = vmatmul.mubr.bf16.gmra.mrb[68].mxu1 %v6949_v46  ;;  %v6975_v46 = vld [vmem:[#allocation7 + $0x1f8] sm:$0xff]   ;;  %v1603_v50 = vrot.slane %v7001_v17, 1  ;;  %v7004_v54 = vld [vmem:[#allocation2 + $0x44] ss:$0 sps:$4 sm:$0x11]  }
 0x132   : > { %3411 = vmatprep.mubr.bf16.mxu1 %v1363_v11  ;;  %6246 = vmatpush3.bf16.msra.mxu0 %v6942_v63  ;;  %v3916_v63 = vor.u32 %v3915_v59, %v3911_v53  ;;  %v1590_v7 = vsel %vm1584_vm8, %v1588_v62, %v1589_v0  ;;  %v1604_v53 = vrot.slane %v7002_v47, 1  ;;  %v3954_v2 = vshll.u32 %v7004_v54, 16  ;;  %v7008_v0 = vld [vmem:[#allocation7 + $0x218] sm:$0xff]  }
 0x133   : > { %6247 = vmatprep.subr.bf16.mxu0 %v6950_v6  ;;  %v7025_v17 = vld [vmem:[#allocation2 + $0x90] sm:$0xfe]  }
 0x134   : > { %v3921_v6 = vsel %vm1183_vm9, %v3916_v63, %v3920_v61  ;;  %v1605_v56 = vsel %vm1584_vm8, %v1603_v50, %v1604_v53  ;;  %v3956_v60 = vrot.slane %v3954_v2, 1  ;;  %v7007_v63 = vld [vmem:[#allocation2 + $0x3c] sm:$0xff]   ;;  %v1621_v47 = vrot.slane %v7025_v17, 1  ;;  %v7028_v50 = vld [vmem:[#allocation2 + $0x68] ss:$0 sps:$4 sm:$0x11]  }
 0x135   : > { %6400 = vmatmul.mubr.bf16.gmra.mrb[68].mxu0 %v2492_v15  ;;  %v3927_v15 = vrot.slane %v3925_v12, 1  ;;  %v7032_v2 = vld [vmem:[#allocation7 + $0x230] sm:$0xff]   ;;  %v7045_v17 = vld [vmem:[#allocation2 + $0x78] sm:$0xff]  }
 0x136   : > { %6248 = vmatpush3.bf16.msra.mxu0 %v6951_v13  ;;  %6403 = vmatprep.mubr.bf16.mxu0 %v2495_v19  ;;  %v6988_v13 = vld [vmem:[#allocation2 + $0x2c] ss:$0 sps:$4 sm:$0x11]   ;;  %v6989_v19 = vld [vmem:[#allocation2 + $0x24] sm:$0xfe]  }
 0x137   : > { %6249 = vmatprep.subr.bf16.mxu0 %v6952_v16  ;;  %v3930_v18 = vshll.u32 %v6988_v13, 16  ;;  %v1594_v48 = vrot.slane %v6989_v19, 1 }
 0x139   : > { %3412 = vmatmul.mubr.bf16.gmra.mrb[72].mxu1 %v6960_v20  ;;  %v6986_v20 = vld [vmem:[#allocation2 + $0x20] ss:$0 sps:$4 sm:$0x11]   ;;  %v3932_v5 = vrot.slane %v3930_v18, 1  ;;  %v1596_v14 = vsel %vm1584_vm8, %v1594_v48, %v1595_v23  ;;  %v7016_v18 = vld [vmem:[#allocation7 + $0x220] sm:$0xff]   ;;  %v7015_v48 = vld [vmem:[#allocation2 + $0x48] sm:$0xff]  }
 0x13a   : > { %6250 = vmatpush3.bf16.msra.mxu0 %v6953_v22  ;;  %3419 = vmatprep.mubr.bf16.mxu1 %v1375_v41  ;;  %v1592_v11 = vrot.slane %v6986_v20, 1  ;;  %v3928_v22 = vor.u32 %v3927_v15, %v3923_v9  ;;  %v1609_v20 = vrot.slane %v7009_v4, 1 }
 0x13b   : > { %6251 = vmatprep.subr.bf16.mxu0 %v6962_v24  ;;  %v6992_v24 = vld [vmem:[#allocation7 + $0x208] sm:$0xff]  }
 0x13c   : > { %v1593_v16 = vsel %vm1584_vm8, %v1591_v10, %v1592_v11  ;;  %v3933_v27 = vsel %vm1183_vm9, %v3928_v22, %v3932_v5  ;;  %v7012_v10 = vld [vmem:[#allocation2 + $0x50] ss:$0 sps:$4 sm:$0x11]  }
 0x13d   : > { %6404 = vmatmul.mubr.bf16.gmra.mrb[72].mxu0 %v2498_v39  ;;  %v3937_v39 = vshll.u32 %v6995_v30, 16  ;;  %v3966_v15 = vshll.u32 %v7012_v10, 16  ;;  %v7034_v10 = vld [vmem:[#allocation2 + $0xb0] ss:$0 sps:$4 sm:$0x11]  }
 0x13e   : > { %6252 = vmatpush3.bf16.msra.mxu0 %v6963_v33  ;;  %6407 = vmatprep.mubr.bf16.mxu0 %v2501_v38  ;;  %v6996_v33 = vld [vmem:[#allocation2 + $0x38] ss:$0 sps:$4 sm:$0x11]   ;;  %v7000_v38 = vld [vmem:[#allocation7 + $0x210] sm:$0xff]  }
 0x13f   : > { %6253 = vmatprep.subr.bf16.mxu0 %v6964_v35  ;;  %v1599_v35 = vsel %vm1584_vm8, %v1597_v31, %v1598_v32  ;;  %v3942_v36 = vshll.u32 %v6996_v33, 16  ;;  %v3968_v22 = vrot.slane %v3966_v15, 1  ;;  %v1616_v33 = vrot.slane %v7018_v29, 1 }
 0x141   : > { %3420 = vmatmul.mubr.bf16.gmra.mrb[76].mxu1 %v6972_v25  ;;  %v3939_v25 = vrot.slane %v3937_v39, 1  ;;  %v3944_v41 = vrot.slane %v3942_v36, 1 }
 0x142   : > { %6254 = vmatpush3.bf16.msra.mxu0 %v6965_v40  ;;  %6443 = vmatprep.mubr.bf16.mxu1 %v1587_v55  ;;  %v6998_v40 = vld [vmem:[#allocation2 + $0x44] ss:$0 sps:$4 sm:$0x11]  }
 0x143   : > { %6255 = vmatprep.subr.bf16.mxu0 %v6973_v44  ;;  %v3940_v43 = vor.u32 %v3939_v25, %v3935_v34  ;;  %v1601_v44 = vrot.slane %v6998_v40, 1  ;;  %v7020_v34 = vld [vmem:[#allocation2 + $0x5c] ss:$0 sps:$4 sm:$0x11]   ;;  %v7023_v40 = vld [vmem:[#allocation2 + $0x54] sm:$0xff]  }
 0x144   : > { %v3978_v36 = vshll.u32 %v7020_v34, 16  ;;  %v7041_v34 = vld [vmem:[#allocation2 + $0x78] sm:$0xff]  }
 0x145   : > { %6408 = vmatmul.mubr.bf16.gmra.mrb[76].mxu0 %v2504_v51  ;;  %v3949_v51 = vshll.u32 %v7003_v45, 16 }
 0x146   : > { %6256 = vmatpush3.bf16.msra.mxu0 %v6974_v8  ;;  %4662 = vmatprep.mubr.bf16.mxu0 %v3921_v6  ;;  %v3945_v8 = vsel %vm1183_vm9, %v3940_v43, %v3944_v41  ;;  %v7010_v6 = vld [vmem:[#allocation2 + $0x68] ss:$0 sps:$4 sm:$0x11]   ;;  %v3980_v41 = vrot.slane %v3978_v36, 1 }
 0x147   : > { %6257 = vmatprep.subr.bf16.mxu0 %v6975_v46  ;;  %v1602_v46 = vsel %vm1584_vm8, %v1600_v42, %v1601_v44  ;;  %v3951_v55 = vrot.slane %v3949_v51, 1  ;;  %v1610_v9 = vrot.slane %v7010_v6, 1  ;;  %v1618_v42 = vrot.slane %v7021_v37, 1  ;;  %v7024_v44 = vld [vmem:[#allocation7 + $0x228] sm:$0xff]  }
 0x148   : > { %v7042_v37 = vld [vmem:[#allocation2 + $0x80] ss:$0 sps:$4 sm:$0x11]  }
 0x149   : > { %6444 = vmatmul.mubr.bf16.vlgmr.msra.gmra.mrb[80].mxu1 %v1590_v7  ;;  %v3952_v59 = vor.u32 %v3951_v55, %v3947_v49  ;;  %v7011_v7 = vld [vmem:[#allocation2 + $0x48] sm:$0xff]   ;;  %v1611_v13 = vsel %vm1584_vm8, %v1609_v20, %v1610_v9  ;;  %v3990_v55 = vshll.u32 %v7028_v50, 16 }
 0x14a   : > { %6258 = vmatpush3.bf16.msra.mxu0 %v6976_v58  ;;  %6476 = vmatpush3.bf16.msra.mxu1 %v6984_v57  ;;  %v7005_v57 = vld [vmem:[#allocation2 + $0x54] sm:$0xfe]   ;;  %v7006_v58 = vld [vmem:[#allocation2 + $0x5c] ss:$0 sps:$4 sm:$0x11]   ;;  %v3959_v12 = vshrl.u32 %v7011_v7, 16 }
 0x14b   : > { %6447 = vmatprep.mubr.bf16.mxu1 %v1593_v16  ;;  %6477 = vmatprep.subr.bf16.mxu1 %v6992_v24  ;;  %v1606_v61 = vrot.slane %v7005_v57, 1  ;;  %v1607_v62 = vrot.slane %v7006_v58, 1  ;;  %v3957_v1 = vsel %vm1183_vm9, %v3952_v59, %v3956_v60  ;;  %v3961_v11 = vshll.u32 %v7011_v7, 16  ;;  %v7013_v16 = vld [vmem:[#allocation2 + $0x6c] sm:$0xfe]   ;;  %v7031_v59 = vld [vmem:[#allocation2 + $0x60] sm:$0xff]  }
 0x14c   : > { %v1612_v5 = vrot.slane %v7013_v16, 1  ;;  %v7030_v58 = vld [vmem:[#allocation2 + $0xa4] ss:$0 sps:$4 sm:$0x11]   ;;  %v3992_v60 = vrot.slane %v3990_v55, 1  ;;  %v1628_v16 = vrot.slane %v7034_v10, 1 }
 0x14d   : > { %4663 = vmatmul.mubr.bf16.vlgmr.msra.gmra.mrb[80].mxu0 %v6983_v3  ;;  %v1608_v3 = vsel %vm1584_vm8, %v1606_v61, %v1607_v62  ;;  %v3963_v19 = vrot.slane %v3961_v11, 1  ;;  %v7033_v9 = vld [vmem:[#allocation2 + $0xa8] sm:$0xfe]  }
 0x14e   : > { %4670 = vmatprep.mubr.bf16.mxu0 %v3933_v27  ;;  %6478 = vmatpush3.bf16.msra.mxu1 %v6992_v24  ;;  %v1613_v24 = vrot.slane %v7014_v21, 1  ;;  %v7017_v27 = vld [vmem:[#allocation2 + $0x78] sm:$0xfe]   ;;  %v1627_v15 = vrot.slane %v7033_v9, 1  ;;  %v7040_v21 = vld [vmem:[#allocation7 + $0x238] sm:$0xff]   ;;  %v7052_v9 = vld [vmem:[#allocation2 + $0x84] sm:$0xff]  }
 0x14f   : > { %6479 = vmatprep.subr.bf16.mxu1 %v7000_v38  ;;  %v3964_v23 = vor.u32 %v3963_v19, %v3959_v12  ;;  %v1615_v31 = vrot.slane %v7017_v27, 1  ;;  %v7036_v19 = vld [vmem:[#allocation2 + $0x74] ss:$0 sps:$4 sm:$0x11]   ;;  %v7039_v27 = vld [vmem:[#allocation2 + $0x6c] sm:$0xff]  }
 0x150   : > { %v1614_v28 = vsel %vm1584_vm8, %v1612_v5, %v1613_v24  ;;  %v7037_v24 = vld [vmem:[#allocation2 + $0xb4] sm:$0xfe]   ;;  %v7047_v50 = vld [vmem:[#allocation2 + $0x2c] ss:$0 sps:$4 sm:$0x11]  }
 0x151   : > { %6448 = vmatmul.mubr.bf16.gmra.mrb[84].mxu1 %v1596_v14  ;;  %v3969_v14 = vsel %vm1183_vm9, %v3964_v23, %v3968_v22  ;;  %v1629_v22 = vsel %vm1584_vm8, %v1627_v15, %v1628_v16  ;;  %v4002_v23 = vshll.u32 %v7036_v19, 16  ;;  %v1630_v29 = vrot.slane %v7037_v24, 1  ;;  %v7053_v19 = vld [vmem:[#allocation2 + $0x3c] sm:$0xfe]  }
 0x152   : > { %6451 = vmatprep.mubr.bf16.mxu1 %v1599_v35  ;;  %6480 = vmatpush3.bf16.msra.mxu1 %v7000_v38  ;;  %v1617_v35 = vsel %vm1584_vm8, %v1615_v31, %v1616_v33  ;;  %v7022_v38 = vld [vmem:[#allocation2 + $0x8c] ss:$0 sps:$4 sm:$0x11]   ;;  %v4319_v24 = vrot.slane %v7053_v19, 1 }
 0x153   : > { %6481 = vmatprep.subr.bf16.mxu1 %v7008_v0  ;;  %v1619_v43 = vrot.slane %v7022_v38, 1 }
 0x155   : > { %4671 = vmatmul.mubr.bf16.gmra.mrb[84].mxu0 %v6991_v26  ;;  %v7019_v26 = vld [vmem:[#allocation2 + $0x54] sm:$0xff]   ;;  %v1620_v45 = vsel %vm1584_vm8, %v1618_v42, %v1619_v43 }
 0x156   : > { %4678 = vmatprep.mubr.bf16.mxu0 %v3945_v8  ;;  %6482 = vmatpush3.bf16.msra.mxu1 %v7008_v0  ;;  %v3971_v30 = vshrl.u32 %v7019_v26, 16  ;;  %v3973_v32 = vshll.u32 %v7019_v26, 16  ;;  %v7026_v8 = vld [vmem:[#allocation2 + $0x98] ss:$0 sps:$4 sm:$0x11]  }
 0x157   : > { %6483 = vmatprep.subr.bf16.mxu1 %v7016_v18  ;;  %v1622_v49 = vrot.slane %v7026_v8, 1  ;;  %v7038_v26 = vld [vmem:[#allocation2 + $0xbc] ss:$0 sps:$4 sm:$0x11]  }
 0x158   : > { %v3975_v39 = vrot.slane %v3973_v32, 1  ;;  %v7043_v42 = vld [vmem:[#allocation2 + $0x18] sm:$0xfe]  }
 0x159   : > { %6452 = vmatmul.mubr.bf16.gmra.mrb[88].mxu1 %v1602_v46  ;;  %v7027_v46 = vld [vmem:[#allocation2 + $0x60] sm:$0xff]   ;;  %v1623_v54 = vsel %vm1584_vm8, %v1621_v47, %v1622_v49 }
 0x15a   : > { %6455 = vmatprep.mubr.bf16.mxu1 %v1605_v56  ;;  %6484 = vmatpush3.bf16.msra.mxu1 %v7016_v18  ;;  %v3976_v25 = vor.u32 %v3975_v39, %v3971_v30  ;;  %v3983_v51 = vshrl.u32 %v7027_v46, 16  ;;  %v3985_v53 = vshll.u32 %v7027_v46, 16  ;;  %v7029_v56 = vld [vmem:[#allocation2 + $0x9c] sm:$0xfe]   ;;  %v1631_v30 = vrot.slane %v7038_v26, 1 }
 0x15b   : > { %6485 = vmatprep.subr.bf16.mxu1 %v7024_v44  ;;  %v1624_v61 = vrot.slane %v7029_v56, 1  ;;  %v7046_v49 = vld [vmem:[#allocation2 + $0x24] sm:$0xfe]  }
 0x15c   : > { %v3987_v57 = vrot.slane %v3985_v53, 1 }
 0x15d   : > { %4679 = vmatmul.mubr.bf16.gmra.mrb[88].mxu0 %v6999_v52  ;;  %v3981_v52 = vsel %vm1183_vm9, %v3976_v25, %v3980_v41  ;;  %v4007_v25 = vshrl.u32 %v7041_v34, 16  ;;  %v4014_v41 = vshll.u32 %v7042_v37, 16 }
 0x15e   : > { %4686 = vmatprep.mubr.bf16.mxu0 %v3957_v1  ;;  %6486 = vmatpush3.bf16.msra.mxu1 %v7024_v44  ;;  %v3988_v62 = vor.u32 %v3987_v57, %v3983_v51  ;;  %v7044_v44 = vld [vmem:[#allocation2 + $0x20] ss:$0 sps:$4 sm:$0x11]   ;;  %v4313_v57 = vrot.slane %v7046_v49, 1 }
 0x15f   : > { %6487 = vmatprep.subr.bf16.mxu1 %v7032_v2  ;;  %v4311_v46 = vrot.slane %v7044_v44, 1 }
 0x160   : > { %v3993_v4 = vsel %vm1183_vm9, %v3988_v62, %v3992_v60 }
 0x161   : > { %6456 = vmatmul.mubr.bf16.gmra.mrb[92].mxu1 %v1608_v3  ;;  %v7035_v3 = vld [vmem:[#allocation2 + $0x6c] sm:$0xff]  }
 0x162   : > { %6459 = vmatprep.mubr.bf16.mxu1 %v1611_v13  ;;  %6488 = vmatpush3.bf16.msra.mxu1 %v7032_v2  ;;  %v3995_v11 = vshrl.u32 %v7035_v3, 16  ;;  %v3997_v18 = vshll.u32 %v7035_v3, 16  ;;  %v7048_v2 = vld [vmem:[#allocation2 + $0x84] sm:$0xff]  }
 0x163   : > { %v5987_v0 = vpop.f32.mrb[0].mxu0  ;;  %6489 = vmatprep.subr.bf16.mxu1 %v7040_v21  ;;  %v4019_v62 = vshrl.u32 %v7048_v2, 16 }
 0x164   : > { %v5988_v1 = vpop.f32.mrb[1].mxu0  ;;  %v3999_v5 = vrot.slane %v3997_v18, 1 }
 0x165   : > { %4687 = vmatmul.mubr.bf16.gmra.mrb[92].mxu0 %v7007_v63  ;;  %v1625_v63 = vrot.slane %v7030_v58, 1  ;;  %v7740_v7 = vadd.f32 %v5988_v1, %v5987_v0  ;;  %v5990_v20 = vpop.f32.mrb[2].mxu0  ;;  %v4314_v58 = vrot.slane %v7047_v50, 1 }
 0x166   : > { %4694 = vmatprep.mubr.bf16.mxu0 %v3969_v14  ;;  %v5991_v12 = vpop.f32.mrb[3].mxu0  ;;  %v4000_v14 = vor.u32 %v3999_v5, %v3995_v11  ;;  %6490 = vmatpush3.bf16.msra.mxu1 %v7040_v21  ;;  %v7054_v5 = vld [vmem:[#allocation2 + $0x44] ss:$0 sps:$4 sm:$0x11]  }
 0x167   : > { %v1626_v6 = vsel %vm1584_vm8, %v1624_v61, %v1625_v63  ;;  %v7742_v13 = vadd.f32 %v5991_v12, %v5990_v20  ;;  %v7049_v61 = vld [vmem:[#allocation2 + $0x8c] ss:$0 sps:$4 sm:$0x11]   ;;  %v4021_v63 = vshll.u32 %v7048_v2, 16  ;;  %v4315_v1 = vsel %vm1584_vm8, %v4313_v57, %v4314_v58 }
 0x168   : > { %v7051_v20 = vld [vmem:[#allocation2 + $0x38] ss:$0 sps:$4 sm:$0x11]  }
 0x169   : > { %6460 = vmatmul.mubr.bf16.gmra.mrb[0].mxu1 %v1614_v28  ;;  %v4004_v28 = vrot.slane %v4002_v23, 1  ;;  %v4023_v3 = vrot.slane %v4021_v63, 1  ;;  %v4317_v18 = vrot.slane %v7051_v20, 1 }
 0x16a   : > { %6463 = vmatprep.mubr.bf16.mxu1 %v1617_v35  ;;  %v1632_v35 = vsel %vm1584_vm8, %v1630_v29, %v1631_v30 }
 0x16b   : > { %v4005_v39 = vsel %vm1183_vm9, %v4000_v14, %v4004_v28  ;;  %v4024_v12 = vor.u32 %v4023_v3, %v4019_v62  ;;  %v4320_v14 = vrot.slane %v7054_v5, 1  ;;  %v7056_v28 = vld [vmem:[#allocation2 + $0x98] ss:$0 sps:$4 sm:$0x11]  }
 0x16c   : > { %v7068_v5 = vld [vmem:[#allocation2 + $0x74] ss:$0 sps:$4 sm:$0x11]  }
 0x16d   : > { %4695 = vmatmul.mubr.bf16.gmra.mrb[96].mxu0 %v7015_v48 }
 0x16e   : > { %4702 = vmatprep.mubr.bf16.mxu0 %v3981_v52  ;;  %v4016_v52 = vrot.slane %v4014_v41, 1 }
 0x170   : > { %v5993_v48 = vpop.f32.mrb[4].mxu0 }
 0x171   : > { %6464 = vmatmul.mubr.bf16.gmra.mrb[4].mxu1 %v1620_v45  ;;  %v5994_v31 = vpop.f32.mrb[5].mxu0  ;;  %v4310_v45 = vrot.slane %v7043_v42, 1 }
 0x172   : > { %6467 = vmatprep.mubr.bf16.mxu1 %v1623_v54  ;;  %v7745_v32 = vadd.f32 %v5994_v31, %v5993_v48  ;;  %v5996_v33 = vpop.f32.mrb[6].mxu0  ;;  %v4321_v31 = vsel %vm1584_vm8, %v4319_v24, %v4320_v14 }
 0x173   : > { %v5997_v36 = vpop.f32.mrb[7].mxu0  ;;  %v4312_v54 = vsel %vm1584_vm8, %v4310_v45, %v4311_v46 }
 0x174   : > { %v7749_v38 = vadd.f32 %v5997_v36, %v5996_v33  ;;  %v4038_v33 = vshll.u32 %v7056_v28, 16  ;;  %v7059_v36 = vld [vmem:[#allocation2 + $0x90] sm:$0xff]   ;;  %v4332_v28 = vrot.slane %v7068_v5, 1 }
 0x175   : > { %4703 = vmatmul.mubr.bf16.gmra.mrb[100].mxu0 %v7023_v40  ;;  %v4009_v40 = vshll.u32 %v7041_v34, 16  ;;  %v7057_v34 = vld [vmem:[#allocation2 + $0x48] sm:$0xfe]  }
 0x176   : > { %4710 = vmatprep.mubr.bf16.mxu0 %v3993_v4  ;;  %v4026_v4 = vshll.u32 %v7049_v61, 16  ;;  %v4040_v37 = vrot.slane %v4038_v33, 1  ;;  %v7063_v61 = vld [vmem:[#allocation2 + $0xa4] ss:$0 sps:$4 sm:$0x11]  }
 0x177   : > { %v4011_v43 = vrot.slane %v4009_v40, 1  ;;  %v4050_v3 = vshll.u32 %v7063_v61, 16  ;;  %v7070_v33 = vld [vmem:[#allocation2 + $0xb0] ss:$0 sps:$4 sm:$0x11]  }
 0x178   : > { %v4028_v11 = vrot.slane %v4026_v4, 1  ;;  %v7064_v4 = vld [vmem:[#allocation2 + $0x60] sm:$0xfe]  }
 0x179   : > { %6468 = vmatmul.mubr.bf16.gmra.mrb[8].mxu1 %v1626_v6  ;;  %v4012_v8 = vor.u32 %v4011_v43, %v4007_v25  ;;  %v7050_v6 = vld [vmem:[#allocation2 + $0x30] sm:$0xfe]   ;;  %v4322_v25 = vrot.slane %v7057_v34, 1 }
 0x17a   : > { %6471 = vmatprep.mubr.bf16.mxu1 %v1629_v22  ;;  %v4316_v15 = vrot.slane %v7050_v6, 1  ;;  %v4029_v22 = vsel %vm1183_vm9, %v4024_v12, %v4028_v11  ;;  %v7060_v43 = vld [vmem:[#allocation2 + $0x54] sm:$0xfe]   ;;  %v4052_v11 = vrot.slane %v4050_v3, 1 }
 0x17b   : > { %v4017_v53 = vsel %vm1183_vm9, %v4012_v8, %v4016_v52  ;;  %v7061_v52 = vld [vmem:[#allocation2 + $0x5c] ss:$0 sps:$4 sm:$0x11]  }
 0x17c   : > { %v4318_v23 = vsel %vm1584_vm8, %v4316_v15, %v4317_v18  ;;  %v7062_v8 = vld [vmem:[#allocation2 + $0x9c] sm:$0xff]   ;;  %v4328_v15 = vrot.slane %v7064_v4, 1 }
 0x17d   : > { %4711 = vmatmul.mubr.bf16.gmra.mrb[104].mxu0 %v7031_v59  ;;  %v4043_v57 = vshrl.u32 %v7062_v8, 16 }
 0x17e   : > { %4718 = vmatprep.mubr.bf16.mxu0 %v4005_v39  ;;  %v7058_v39 = vld [vmem:[#allocation2 + $0x50] ss:$0 sps:$4 sm:$0x11]  }
 0x17f   : > { %v4323_v40 = vrot.slane %v7058_v39, 1 }
 0x180   : > { %v5999_v47 = vpop.f32.mrb[8].mxu0 }
 0x181   : > { %6472 = vmatmul.mubr.bf16.gmra.mrb[12].mxu1 %v1632_v35  ;;  %v6000_v51 = vpop.f32.mrb[9].mxu0  ;;  %v4324_v44 = vsel %vm1584_vm8, %v4322_v25, %v4323_v40  ;;  %v4062_v40 = vshll.u32 %v7070_v33, 16 }
 0x182   : > { %v7753_v55 = vadd.f32 %v6000_v51, %v5999_v47  ;;  %v6002_v56 = vpop.f32.mrb[10].mxu0  ;;  %6491 = vmatprep.mubr.bf16.mxu1 %v4312_v54  ;;  %v4325_v47 = vrot.slane %v7060_v43, 1 }
 0x183   : > { %v6003_v59 = vpop.f32.mrb[11].mxu0 }
 0x184   : > { %v7755_v60 = vadd.f32 %v6003_v59, %v6002_v56 }
 0x185   : > { %4719 = vmatmul.mubr.bf16.gmra.mrb[108].mxu0 %v7039_v27  ;;  %v7055_v27 = vld [vmem:[#allocation2 + $0x90] sm:$0xff]  }
 0x186   : > { %4726 = vmatprep.mubr.bf16.mxu0 %v4017_v53  ;;  %v4031_v29 = vshrl.u32 %v7055_v27, 16  ;;  %v4033_v30 = vshll.u32 %v7055_v27, 16  ;;  %v4326_v53 = vrot.slane %v7061_v52, 1  ;;  %v7073_v52 = vld [vmem:[#allocation2 + $0xa8] sm:$0xff]  }
 0x188   : > { %v4035_v35 = vrot.slane %v4033_v30, 1  ;;  %v4327_v62 = vsel %vm1584_vm8, %v4325_v47, %v4326_v53  ;;  %v7069_v30 = vld [vmem:[#allocation2 + $0xa8] sm:$0xff]  }
 0x189   : > { %6492 = vmatmul.mubr.bf16.vlgmr.msra.gmra.mrb[80].mxu1 %v4315_v1  ;;  %v7074_v47 = vld [vmem:[#allocation2 + $0x84] sm:$0xfe]  }
 0x18a   : > { %6495 = vmatprep.mubr.bf16.mxu1 %v4318_v23  ;;  %v4036_v42 = vor.u32 %v4035_v35, %v4031_v29 }
 0x18c   : > { %v4041_v46 = vsel %vm1183_vm9, %v4036_v42, %v4040_v37  ;;  %v4057_v37 = vshll.u32 %v7069_v30, 16 }
 0x18d   : > { %4727 = vmatmul.mubr.bf16.gmra.mrb[112].mxu0 %v7045_v17 }
 0x18e   : > { %4734 = vmatprep.mubr.bf16.mxu0 %v4029_v22  ;;  %v7067_v22 = vld [vmem:[#allocation2 + $0x6c] sm:$0xfe]   ;;  %v4059_v43 = vrot.slane %v4057_v37, 1  ;;  %v7081_v37 = vld [vmem:[#allocation2 + $0x9c] sm:$0xfe]  }
 0x18f   : > { %v4331_v14 = vrot.slane %v7067_v22, 1 }
 0x191   : > { %v6005_v0 = vpop.f32.mrb[12].mxu0  ;;  %6496 = vmatmul.mubr.bf16.gmra.mrb[84].mxu1 %v4321_v31  ;;  %v4333_v34 = vsel %vm1584_vm8, %v4331_v14, %v4332_v28  ;;  %v7079_v14 = vld [vmem:[#allocation2 + $0x98] ss:$0 sps:$4 sm:$0x11]  }
 0x192   : > { %v6006_v10 = vpop.f32.mrb[13].mxu0  ;;  %6499 = vmatprep.mubr.bf16.mxu1 %v4324_v44  ;;  %v7072_v44 = vld [vmem:[#allocation2 + $0x80] ss:$0 sps:$4 sm:$0x11]  }
 0x193   : > { %v7758_v16 = vadd.f32 %v6006_v10, %v6005_v0  ;;  %v6008_v21 = vpop.f32.mrb[14].mxu0  ;;  %v4045_v0 = vshll.u32 %v7062_v8, 16  ;;  %v7066_v10 = vld [vmem:[#allocation2 + $0x9c] sm:$0xff]  }
 0x194   : > { %v6009_v48 = vpop.f32.mrb[15].mxu0 }
 0x195   : > { %v7762_v26 = vadd.f32 %v6009_v48, %v6008_v21  ;;  %4735 = vmatmul.mubr.bf16.gmra.mrb[116].mxu0 %v7052_v9  ;;  %v4047_v20 = vrot.slane %v4045_v0, 1  ;;  %v7065_v9 = vld [vmem:[#allocation2 + $0x68] ss:$0 sps:$4 sm:$0x11]   ;;  %v7076_v0 = vld [vmem:[#allocation2 + $0xb4] sm:$0xff]  }
 0x196   : > { %4742 = vmatprep.mubr.bf16.mxu0 %v4041_v46  ;;  %v4329_v19 = vrot.slane %v7065_v9, 1  ;;  %v4335_v46 = vrot.slane %v7072_v44, 1  ;;  %v4343_v44 = vrot.slane %v7081_v37, 1 }
 0x197   : > { %v4048_v18 = vor.u32 %v4047_v20, %v4043_v57  ;;  %v4337_v57 = vrot.slane %v7074_v47, 1 }
 0x198   : > { %v4330_v24 = vsel %vm1584_vm8, %v4328_v15, %v4329_v19  ;;  %v4069_v15 = vshll.u32 %v7076_v0, 16 }
 0x199   : > { %6500 = vmatmul.mubr.bf16.gmra.mrb[88].mxu1 %v4327_v62  ;;  %v4053_v23 = vsel %vm1183_vm9, %v4048_v18, %v4052_v11  ;;  %v4067_v11 = vshrl.u32 %v7076_v0, 16 }
 0x19a   : > { %6503 = vmatprep.mubr.bf16.mxu1 %v4330_v24  ;;  %v4071_v5 = vrot.slane %v4069_v15, 1  ;;  %v7080_v24 = vld [vmem:[#allocation2 + $0xb4] sm:$0xff]  }
 0x19b   : > { %v7088_v15 = vld [vmem:[#allocation2 + $0xb4] sm:$0xfe]  }
 0x19c   : > { %v6123_v45 = vpop.f32.mrb[16].mxu1 }
 0x19d   : > { %v6011_v41 = vpop.f32.mrb[16].mxu0  ;;  %v6124_v50 = vpop.f32.mrb[17].mxu1  ;;  %4743 = vmatmul.mubr.bf16.gmra.mrb[120].mxu0 %v7059_v36  ;;  %v4055_v36 = vshrl.u32 %v7069_v30, 16 }
 0x19e   : > { %v6012_v17 = vpop.f32.mrb[17].mxu0  ;;  %v7769_v54 = vadd.f32 %v6124_v50, %v6123_v45  ;;  %v6126_v56 = vpop.f32.mrb[18].mxu1  ;;  %4750 = vmatprep.mubr.bf16.mxu0 %v4053_v23  ;;  %v4064_v45 = vrot.slane %v4062_v40, 1  ;;  %v7078_v23 = vld [vmem:[#allocation2 + $0x90] sm:$0xfe]  }
 0x19f   : > { %v7767_v49 = vadd.f32 %v6012_v17, %v6011_v41  ;;  %v6014_v51 = vpop.f32.mrb[18].mxu0  ;;  %v6127_v59 = vpop.f32.mrb[19].mxu1  ;;  %v7071_v41 = vld [vmem:[#allocation2 + $0x78] sm:$0xfe]   ;;  %v4060_v8 = vor.u32 %v4059_v43, %v4055_v36 }
 0x1a0   : > { %v6015_v2 = vpop.f32.mrb[19].mxu0  ;;  %v7774_v63 = vadd.f32 %v6127_v59, %v6126_v56  ;;  %v4334_v17 = vrot.slane %v7071_v41, 1 }
 0x1a1   : > { %v7771_v58 = vadd.f32 %v6015_v2, %v6014_v51  ;;  %6504 = vmatmul.mubr.bf16.gmra.mrb[92].mxu1 %v4333_v34  ;;  %v7075_v51 = vld [vmem:[#allocation2 + $0x8c] ss:$0 sps:$4 sm:$0x11]   ;;  %v4065_v56 = vsel %vm1183_vm9, %v4060_v8, %v4064_v45  ;;  %v4341_v34 = vrot.slane %v7079_v14, 1 }
 0x1a2   : > { %v4336_v2 = vsel %vm1584_vm8, %v4334_v17, %v4335_v46  ;;  %v7083_v17 = vld [vmem:[#allocation2 + $0xc0] sm:$0xff]   ;;  %v7084_v46 = vld [vmem:[#allocation2 + $0xc8] ss:$0 sps:$4 sm:$0x11]  }
 0x1a3   : > { %6507 = vmatprep.mubr.bf16.mxu1 %v4336_v2 }
 0x1a4   : > { %v6129_v1 = vpop.f32.mrb[20].mxu1 }
 0x1a5   : > { %v6130_v6 = vpop.f32.mrb[21].mxu1  ;;  %4751 = vmatmul.mubr.bf16.gmra.mrb[124].mxu0 %v7066_v10  ;;  %v7077_v10 = vld [vmem:[#allocation2 + $0xbc] ss:$0 sps:$4 sm:$0x11]  }
 0x1a6   : > { %v7776_v12 = vadd.f32 %v6130_v6, %v6129_v1  ;;  %v6132_v21 = vpop.f32.mrb[22].mxu1  ;;  %4758 = vmatprep.mubr.bf16.mxu0 %v4065_v56  ;;  %v4338_v1 = vrot.slane %v7075_v51, 1  ;;  %v4081_v56 = vshll.u32 %v7083_v17, 16 }
 0x1a7   : > { %v6133_v48 = vpop.f32.mrb[23].mxu1 }
 0x1a8   : > { %v7780_v27 = vadd.f32 %v6133_v48, %v6132_v21  ;;  %v6017_v29 = vpop.f32.mrb[20].mxu0  ;;  %v4339_v18 = vsel %vm1584_vm8, %v4337_v57, %v4338_v1  ;;  %v4074_v48 = vshll.u32 %v7077_v10, 16  ;;  %v4086_v57 = vshll.u32 %v7084_v46, 16  ;;  %v7086_v1 = vld [vmem:[#allocation2 + $0xb0] ss:$0 sps:$4 sm:$0x11]  }
 0x1a9   : > { %v6018_v31 = vpop.f32.mrb[21].mxu0  ;;  %6508 = vmatmul.mubr.bf16.gmra.mrb[0].mxu1 %v4339_v18  ;;  %v4083_v0 = vrot.slane %v4081_v56, 1 }
 0x1aa   : > { %v7783_v39 = vadd.f32 %v6018_v31, %v6017_v29  ;;  %v6020_v35 = vpop.f32.mrb[22].mxu0  ;;  %v4072_v29 = vor.u32 %v4071_v5, %v4067_v11  ;;  %v4076_v30 = vrot.slane %v4074_v48, 1  ;;  %v4340_v31 = vrot.slane %v7078_v23, 1 }
 0x1ab   : > { %v6021_v25 = vpop.f32.mrb[23].mxu0  ;;  %v4347_v11 = vrot.slane %v7086_v1, 1  ;;  %v4349_v23 = vrot.slane %v7088_v15, 1 }
 0x1ac   : > { %v7785_v42 = vadd.f32 %v6021_v25, %v6020_v35  ;;  %v6135_v50 = vpop.f32.mrb[24].mxu1  ;;  %v4077_v36 = vsel %vm1183_vm9, %v4072_v29, %v4076_v30  ;;  %v7082_v25 = vld [vmem:[#allocation2 + $0xa4] ss:$0 sps:$4 sm:$0x11]   ;;  %v4342_v41 = vsel %vm1584_vm8, %v4340_v31, %v4341_v34  ;;  %v7090_v29 = vld [vmem:[#allocation2 + $0xcc] sm:$0xff]  }
 0x1ad   : > { %v6136_v53 = vpop.f32.mrb[25].mxu1  ;;  %4759 = vmatmul.mubr.bf16.gmra.mrb[128].mxu0 %v7073_v52  ;;  %6511 = vmatprep.mubr.bf16.mxu1 %v4342_v41  ;;  %v4344_v52 = vrot.slane %v7082_v25, 1  ;;  %v7091_v25 = vld [vmem:[#allocation2 + $0xd4] ss:$0 sps:$4 sm:$0x11]   ;;  %v4093_v41 = vshll.u32 %v7090_v29, 16 }
 0x1ae   : > { %v7789_v61 = vadd.f32 %v6136_v53, %v6135_v50  ;;  %v6138_v62 = vpop.f32.mrb[26].mxu1  ;;  %4766 = vmatprep.mubr.bf16.mxu0 %v4077_v36  ;;  %v4079_v53 = vshrl.u32 %v7083_v17, 16  ;;  %v4098_v46 = vshll.u32 %v7091_v25, 16 }
 0x1af   : > { %v6139_v4 = vpop.f32.mrb[27].mxu1  ;;  %v4345_v47 = vsel %vm1584_vm8, %v4343_v44, %v4344_v52 }
 0x1b0   : > { %v6023_v59 = vpop.f32.mrb[24].mxu0  ;;  %v7793_v9 = vadd.f32 %v6139_v4, %v6138_v62  ;;  %v4088_v4 = vrot.slane %v4086_v57, 1  ;;  %v4084_v10 = vor.u32 %v4083_v0, %v4079_v53  ;;  %v7093_v53 = vld [vmem:[#allocation2 + $0xc8] ss:$0 sps:$4 sm:$0x11]   ;;  %v4100_v57 = vrot.slane %v4098_v46, 1 }
 0x1b1   : > { %v6024_v3 = vpop.f32.mrb[25].mxu0  ;;  %6512 = vmatmul.mubr.bf16.gmra.mrb[4].mxu1 %v4345_v47  ;;  %v7092_v47 = vld [vmem:[#allocation2 + $0xc0] sm:$0xfe]   ;;  %v4353_v1 = vrot.slane %v7093_v53, 1 }
 0x1b2   : > { %v7791_v6 = vadd.f32 %v6024_v3, %v6023_v59  ;;  %v6026_v20 = vpop.f32.mrb[26].mxu0  ;;  %v7085_v59 = vld [vmem:[#allocation2 + $0xa8] sm:$0xfe]   ;;  %v7087_v3 = vld [vmem:[#allocation2 + $0xc0] sm:$0xff]   ;;  %v4089_v5 = vsel %vm1183_vm9, %v4084_v10, %v4088_v4 }
 0x1b3   : > { %v6027_v19 = vpop.f32.mrb[27].mxu0  ;;  %v7096_v10 = vld [vmem:[#allocation2 + $0xd4] ss:$0 sps:$4 sm:$0x11]  }
 0x1b4   : > { %v6141_v21 = vpop.f32.mrb[28].mxu1  ;;  %v7796_v22 = vadd.f32 %v6027_v19, %v6026_v20  ;;  %v4346_v20 = vrot.slane %v7085_v59, 1  ;;  %v7089_v19 = vld [vmem:[#allocation2 + $0xbc] ss:$0 sps:$4 sm:$0x11]   ;;  %v4352_v59 = vrot.slane %v7092_v47, 1 }
 0x1b5   : > { %v6142_v28 = vpop.f32.mrb[29].mxu1  ;;  %4767 = vmatmul.mubr.bf16.gmra.mrb[132].mxu0 %v7080_v24  ;;  %v4350_v30 = vrot.slane %v7089_v19, 1 }
 0x1b6   : > { %v7798_v33 = vadd.f32 %v6142_v28, %v6141_v21  ;;  %v6144_v35 = vpop.f32.mrb[30].mxu1  ;;  %v4348_v48 = vsel %vm1584_vm8, %v4346_v20, %v4347_v11  ;;  %4774 = vmatprep.mubr.bf16.mxu0 %v4089_v5  ;;  %v7095_v20 = vld [vmem:[#allocation2 + $0xcc] sm:$0xfe]   ;;  %v4354_v15 = vsel %vm1584_vm8, %v4352_v59, %v4353_v1  ;;  %v4356_v5 = vrot.slane %v7096_v10, 1 }
 0x1b7   : > { %v6145_v40 = vpop.f32.mrb[31].mxu1  ;;  %6515 = vmatprep.mubr.bf16.mxu1 %v4348_v48  ;;  %v4351_v44 = vsel %vm1584_vm8, %v4349_v23, %v4350_v30 }
 0x1b8   : > { %v7802_v43 = vadd.f32 %v6145_v40, %v6144_v35  ;;  %v6029_v45 = vpop.f32.mrb[28].mxu0  ;;  %v4091_v40 = vshrl.u32 %v7090_v29, 16 }
 0x1b9   : > { %v6030_v8 = vpop.f32.mrb[29].mxu0  ;;  %6516 = vmatmul.mubr.bf16.gmra.mrb[8].mxu1 %v4351_v44 }
 0x1ba   : > { %v7805_v50 = vadd.f32 %v6030_v8, %v6029_v45  ;;  %v6032_v51 = vpop.f32.mrb[30].mxu0  ;;  %v4095_v8 = vrot.slane %v4093_v41, 1  ;;  %6519 = vmatprep.mubr.bf16.mxu1 %v4354_v15 }
 0x1bb   : > { %v6033_v2 = vpop.f32.mrb[31].mxu0 }
 0x1bc   : > { %v7807_v62 = vadd.f32 %v6033_v2, %v6032_v51  ;;  %v6147_v18 = vpop.f32.mrb[32].mxu1  ;;  %v7094_v51 = vld [vmem:[#allocation2 + $0xcc] sm:$0xff]   ;;  %v4096_v2 = vor.u32 %v4095_v8, %v4091_v40 }
 0x1bd   : > { %v6148_v21 = vpop.f32.mrb[33].mxu1  ;;  %4775 = vmatmul.mubr.bf16.gmra.mrb[136].mxu0 %v7087_v3 }
 0x1be   : > { %v7811_v14 = vadd.f32 %v6148_v21, %v6147_v18  ;;  %v6150_v28 = vpop.f32.mrb[34].mxu1  ;;  %v4101_v4 = vsel %vm1183_vm9, %v4096_v2, %v4100_v57  ;;  %v4355_v21 = vrot.slane %v7095_v20, 1 }
 0x1bf   : > { %v6151_v34 = vpop.f32.mrb[35].mxu1  ;;  %4782 = vmatprep.mubr.bf16.mxu0 %v4101_v4 }
 0x1c0   : > { %v6035_v24 = vpop.f32.mrb[32].mxu0  ;;  %v7815_v37 = vadd.f32 %v6151_v34, %v6150_v28 }
 0x1c1   : > { %v6036_v31 = vpop.f32.mrb[33].mxu0 }
 0x1c2   : > { %v7813_v35 = vadd.f32 %v6036_v31, %v6035_v24  ;;  %v6038_v36 = vpop.f32.mrb[34].mxu0  ;;  %v4357_v31 = vsel %vm1584_vm8, %v4355_v21, %v4356_v5 }
 0x1c3   : > { %v6039_v52 = vpop.f32.mrb[35].mxu0  ;;  %6520 = vmatmul.mubr.bf16.gmra.mrb[12].mxu1 %v4357_v31 }
 0x1c4   : > { %v6153_v45 = vpop.f32.mrb[36].mxu1  ;;  %v6040_v17 = vadd.f32 %v6039_v52, %v6038_v36 }
 0x1c5   : > { %v6154_v56 = vpop.f32.mrb[37].mxu1  ;;  %4783 = vmatmul.mubr.bf16.gmra.mrb[140].mxu0 %v7094_v51 }
 0x1c6   : > { %v7818_v0 = vadd.f32 %v6154_v56, %v6153_v45  ;;  %v6156_v3 = vpop.f32.mrb[38].mxu1 }
 0x1c7   : > { %v6157_v19 = vpop.f32.mrb[39].mxu1 }
 0x1c8   : > { %v6041_v11 = vpop.f32.mrb[36].mxu0  ;;  %v7822_v24 = vadd.f32 %v6157_v19, %v6156_v3 }
 0x1c9   : > { %v6042_v18 = vpop.f32.mrb[37].mxu0 }
 0x1ca   : > { %v6043_v48 = vadd.f32 %v6042_v18, %v6041_v11  ;;  %v6044_v23 = vpop.f32.mrb[38].mxu0 }
 0x1cb   : > { %v6045_v29 = vpop.f32.mrb[39].mxu0 }
 0x1cc   : > { %v6159_v28 = vpop.f32.mrb[40].mxu1  ;;  %v6046_v34 = vadd.f32 %v6045_v29, %v6044_v23 }
 0x1cd   : > { %v6160_v30 = vpop.f32.mrb[41].mxu1 }
 0x1ce   : > { %v7825_v36 = vadd.f32 %v6160_v30, %v6159_v28  ;;  %v6162_v25 = vpop.f32.mrb[42].mxu1 }
 0x1cf   : > { %v6163_v40 = vpop.f32.mrb[43].mxu1 }
 0x1d0   : > { %v7827_v41 = vadd.f32 %v6163_v40, %v6162_v25  ;;  %v6047_v45 = vpop.f32.mrb[40].mxu0 }
 0x1d1   : > { %v6048_v47 = vpop.f32.mrb[41].mxu0 }
 0x1d2   : > { %v6049_v53 = vadd.f32 %v6048_v47, %v6047_v45  ;;  %v6050_v56 = vpop.f32.mrb[42].mxu0 }
 0x1d3   : > { %v6051_v57 = vpop.f32.mrb[43].mxu0 }
 0x1d4   : > { %v6165_v44 = vpop.f32.mrb[44].mxu1  ;;  %v6052_v59 = vadd.f32 %v6051_v57, %v6050_v56 }
 0x1d5   : > { %v6166_v52 = vpop.f32.mrb[45].mxu1 }
 0x1d6   : > { %v7829_v8 = vadd.f32 %v6166_v52, %v6165_v44  ;;  %v6168_v46 = vpop.f32.mrb[46].mxu1 }
 0x1d7   : > { %v6169_v51 = vpop.f32.mrb[47].mxu1 }
 0x1d8   : > { %v7831_v2 = vadd.f32 %v6169_v51, %v6168_v46  ;;  %v6053_v11 = vpop.f32.mrb[44].mxu0 }
 0x1d9   : > { %v6054_v19 = vpop.f32.mrb[45].mxu0 }
 0x1da   : > { %v6055_v21 = vadd.f32 %v6054_v19, %v6053_v11  ;;  %v6056_v5 = vpop.f32.mrb[46].mxu0 }
 0x1db   : > { %v6057_v28 = vpop.f32.mrb[47].mxu0 }
 0x1dc   : > { %v6171_v1 = vpop.f32.mrb[48].mxu1  ;;  %v6058_v29 = vadd.f32 %v6057_v28, %v6056_v5 }
 0x1dd   : > { %v6172_v3 = vpop.f32.mrb[49].mxu1 }
 0x1de   : > { %v6173_v4 = vadd.f32 %v6172_v3, %v6171_v1  ;;  %v6174_v20 = vpop.f32.mrb[50].mxu1 }
 0x1df   : > { %v6175_v10 = vpop.f32.mrb[51].mxu1 }
 0x1e0   : > { %v7834_v15 = vadd.f32 %v6173_v4, %v7813_v35  ;;  %v6176_v18 = vadd.f32 %v6175_v10, %v6174_v20  ;;  %v6059_v52 = vpop.f32.mrb[48].mxu0 }
 0x1e1   : > { %v6060_v47 = vpop.f32.mrb[49].mxu0 }
 0x1e2   : > { %v7836_v23 = vadd.f32 %v6176_v18, %v6040_v17  ;;  %v6061_v35 = vadd.f32 %v6060_v47, %v6059_v52  ;;  %v6062_v51 = vpop.f32.mrb[50].mxu0 }
 0x1e3   : > { %v6063_v57 = vpop.f32.mrb[51].mxu0 }
 0x1e4   : > { %v6177_v30 = vpop.f32.mrb[52].mxu1  ;;  %v6064_v1 = vadd.f32 %v6063_v57, %v6062_v51 }
 0x1e5   : > { %v6178_v31 = vpop.f32.mrb[53].mxu1 }
 0x1e6   : > { %v6179_v25 = vadd.f32 %v6178_v31, %v6177_v30  ;;  %v6180_v40 = vpop.f32.mrb[54].mxu1 }
 0x1e7   : > { %v6181_v44 = vpop.f32.mrb[55].mxu1 }
 0x1e8   : > { %v7838_v45 = vadd.f32 %v6179_v25, %v6043_v48  ;;  %v6182_v46 = vadd.f32 %v6181_v44, %v6180_v40  ;;  %v6065_v11 = vpop.f32.mrb[52].mxu0 }
 0x1e9   : > { %v6066_v5 = vpop.f32.mrb[53].mxu0 }
 0x1ea   : > { %v7840_v56 = vadd.f32 %v6182_v46, %v6046_v34  ;;  %v6067_v48 = vadd.f32 %v6066_v5, %v6065_v11  ;;  %v6068_v28 = vpop.f32.mrb[54].mxu0 }
 0x1eb   : > { %v6069_v31 = vpop.f32.mrb[55].mxu0 }
 0x1ec   : > { %v6183_v17 = vpop.f32.mrb[56].mxu1  ;;  %v6070_v25 = vadd.f32 %v6069_v31, %v6068_v28 }
 0x1ed   : > { %v6184_v3 = vpop.f32.mrb[57].mxu1 }
 0x1ee   : > { %v6185_v4 = vadd.f32 %v6184_v3, %v6183_v17  ;;  %v6186_v20 = vpop.f32.mrb[58].mxu1 }
 0x1ef   : > { %v6187_v10 = vpop.f32.mrb[59].mxu1 }
 0x1f0   : > { %v7842_v18 = vadd.f32 %v6185_v4, %v6049_v53  ;;  %v6188_v19 = vadd.f32 %v6187_v10, %v6186_v20  ;;  %v6071_v47 = vpop.f32.mrb[56].mxu0 }
 0x1f1   : > { %v6072_v17 = vpop.f32.mrb[57].mxu0 }
 0x1f2   : > { %v7844_v30 = vadd.f32 %v6188_v19, %v6052_v59  ;;  %v6073_v53 = vadd.f32 %v6072_v17, %v6071_v47  ;;  %v6074_v3 = vpop.f32.mrb[58].mxu0 }
 0x1f3   : > { %v6075_v20 = vpop.f32.mrb[59].mxu0 }
 0x1f4   : > { %8148 = vst [vmem:[#allocation16_spill] sm:$0xff] %v7844_v30  ;;  %v6189_v34 = vpop.f32.mrb[60].mxu1  ;;  %v6076_v10 = vadd.f32 %v6075_v20, %v6074_v3 }
 0x1f5   : > { %v6190_v40 = vpop.f32.mrb[61].mxu1 }
 0x1f6   : > { %v6191_v44 = vadd.f32 %v6190_v40, %v6189_v34  ;;  %v6192_v52 = vpop.f32.mrb[62].mxu1 }
 0x1f7   : > { %v6193_v46 = vpop.f32.mrb[63].mxu1 }
 0x1f8   : > { %v7846_v51 = vadd.f32 %v6191_v44, %v6055_v21  ;;  %v6194_v57 = vadd.f32 %v6193_v46, %v6192_v52  ;;  %v6077_v31 = vpop.f32.mrb[60].mxu0 }
 0x1f9   : > { %v6078_v30 = vpop.f32.mrb[61].mxu0 }
 0x1fa   : > { %v7848_v4 = vadd.f32 %v6194_v57, %v6058_v29  ;;  %v6079_v21 = vadd.f32 %v6078_v30, %v6077_v31  ;;  %v6080_v44 = vpop.f32.mrb[62].mxu0 }
 0x1fb   : > { %v6081_v46 = vpop.f32.mrb[63].mxu0 }
 0x1fc   : > { %8149 = vst [vmem:[#allocation17_spill] sm:$0xff] %v7848_v4  ;;  %v6195_v59 = vpop.f32.mrb[64].mxu1  ;;  %v6082_v47 = vadd.f32 %v6081_v46, %v6080_v44 }
 0x1fd   : > { %v6196_v11 = vpop.f32.mrb[65].mxu1 }
 0x1fe   : > { %v6197_v19 = vadd.f32 %v6196_v11, %v6195_v59  ;;  %v6198_v5 = vpop.f32.mrb[66].mxu1 }
 0x1ff   : > { %v6199_v28 = vpop.f32.mrb[67].mxu1 }
 0x200   : > { %v7850_v34 = vadd.f32 %v6197_v19, %v6061_v35  ;;  %v6200_v40 = vadd.f32 %v6199_v28, %v6198_v5  ;;  %v6397_v4 = vpop.f32.mrb[64].mxu0 }
 0x201   : > { %v3005_v35 = vadd.f32 %v6397_v4, %v7745_v32  ;;  %v2996_v19 = vpop.f32.mrb[65].mxu0 }
 0x202   : > { %v7852_v52 = vadd.f32 %v6200_v40, %v6064_v1  ;;  %v2997_v5 = vadd.f32 %v7740_v7, %v2996_v19  ;;  %v6398_v30 = vpop.f32.mrb[66].mxu0 }
 0x203   : > { %v7861_v1 = vadd.f32 %v7776_v12, %v3005_v35  ;;  %v3008_v31 = vadd.f32 %v6398_v30, %v7749_v38  ;;  %v2999_v40 = vpop.f32.mrb[67].mxu0 }
 0x204   : > { %v6201_v29 = vpop.f32.mrb[68].mxu1  ;;  %v3302_v44 = vadd.f32 %v7769_v54, %v2997_v5 }
 0x205   : > { %v6202_v57 = vpop.f32.mrb[69].mxu1  ;;  %v7867_v46 = vadd.f32 %v7780_v27, %v3008_v31 }
 0x206   : > { %v6203_v17 = vadd.f32 %v6202_v57, %v6201_v29  ;;  %v6204_v3 = vpop.f32.mrb[70].mxu1 }
 0x207   : > { %v6205_v20 = vpop.f32.mrb[71].mxu1 }
 0x208   : > { %v7854_v59 = vadd.f32 %v6203_v17, %v6067_v48  ;;  %v6206_v11 = vadd.f32 %v6205_v20, %v6204_v3  ;;  %v3000_v48 = vadd.f32 %v7742_v13, %v2999_v40  ;;  %v6401_v57 = vpop.f32.mrb[68].mxu0 }
 0x209   : > { %v3021_v12 = vadd.f32 %v6401_v57, %v7758_v16  ;;  %v3012_v3 = vpop.f32.mrb[69].mxu0 }
 0x20a   : > { %v7858_v28 = vadd.f32 %v6206_v11, %v6070_v25  ;;  %v3305_v4 = vadd.f32 %v7774_v63, %v3000_v48  ;;  %v3013_v54 = vadd.f32 %v7753_v55, %v3012_v3  ;;  %v6402_v13 = vpop.f32.mrb[70].mxu0 }
 0x20b   : > { %v7875_v27 = vadd.f32 %v7798_v33, %v3021_v12  ;;  %v3024_v11 = vadd.f32 %v6402_v13, %v7762_v26  ;;  %v3015_v63 = vpop.f32.mrb[71].mxu0 }
 0x20c   : > { %v6207_v32 = vpop.f32.mrb[72].mxu1  ;;  %v3318_v19 = vadd.f32 %v7789_v61, %v3013_v54  ;;  %v3016_v5 = vadd.f32 %v7755_v60, %v3015_v63 }
 0x20d   : > { %v6208_v7 = vpop.f32.mrb[73].mxu1  ;;  %v7883_v16 = vadd.f32 %v7802_v43, %v3024_v11 }
 0x20e   : > { %v6209_v29 = vadd.f32 %v6208_v7, %v6207_v32  ;;  %v6210_v25 = vpop.f32.mrb[74].mxu1 }
 0x20f   : > { %v6211_v17 = vpop.f32.mrb[75].mxu1 }
 0x210   : > { %v7871_v38 = vadd.f32 %v6209_v29, %v6073_v53  ;;  %v6212_v20 = vadd.f32 %v6211_v17, %v6210_v25  ;;  %v3321_v53 = vadd.f32 %v7793_v9, %v3016_v5  ;;  %v6405_v30 = vpop.f32.mrb[72].mxu0 }
 0x211   : > { %v3037_v55 = vadd.f32 %v6405_v30, %v7783_v39  ;;  %v3028_v31 = vpop.f32.mrb[73].mxu0 }
 0x212   : > { %v7878_v35 = vadd.f32 %v6212_v20, %v6076_v10  ;;  %v3029_v33 = vadd.f32 %v7767_v49, %v3028_v31  ;;  %v6406_v40 = vpop.f32.mrb[74].mxu0 }
 0x213   : > { %v7889_v10 = vadd.f32 %v7818_v0, %v3037_v55  ;;  %v3040_v61 = vadd.f32 %v6406_v40, %v7785_v42  ;;  %v3031_v48 = vpop.f32.mrb[75].mxu0 }
 0x214   : > { %v6213_v26 = vpop.f32.mrb[76].mxu1  ;;  %v7893_v43 = vadd.f32 %v7811_v14, %v3029_v33  ;;  %v3032_v9 = vadd.f32 %v7771_v58, %v3031_v48 }
 0x215   : > { %v6214_v60 = vpop.f32.mrb[77].mxu1  ;;  %v7897_v39 = vadd.f32 %v7822_v24, %v3040_v61 }
 0x216   : > { %v6215_v32 = vadd.f32 %v6214_v60, %v6213_v26  ;;  %v6216_v7 = vpop.f32.mrb[78].mxu1  ;;  %v3337_v29 = vadd.f32 %v7815_v37, %v3032_v9 }
 0x217   : > { %v6217_v49 = vpop.f32.mrb[79].mxu1 }
 0x218   : > { %v7900_v25 = vadd.f32 %v6215_v32, %v6079_v21  ;;  %v6218_v0 = vadd.f32 %v6217_v49, %v6216_v7  ;;  %v6409_v57 = vpop.f32.mrb[76].mxu0 }
 0x219   : > { %v3053_v17 = vadd.f32 %v6409_v57, %v7805_v50  ;;  %v3044_v14 = vpop.f32.mrb[77].mxu0 }
 0x21a   : > { %v7902_v42 = vadd.f32 %v6218_v0, %v6082_v47  ;;  %v3045_v12 = vadd.f32 %v7791_v6, %v3044_v14  ;;  %v6410_v58 = vpop.f32.mrb[78].mxu0 }
 0x21b   : > { %v7907_v3 = vadd.f32 %v7829_v8, %v3053_v17  ;;  %v3056_v24 = vadd.f32 %v6410_v58, %v7807_v62  ;;  %v3047_v20 = vpop.f32.mrb[79].mxu0 }
 0x21c   : > { %v3350_v37 = vadd.f32 %v7825_v36, %v3045_v12  ;;  %v3048_v21 = vadd.f32 %v7796_v22, %v3047_v20 }
 0x21d   : > { %v7913_v54 = vadd.f32 %v7831_v2, %v3056_v24 }
 0x21e   : > { %v3353_v47 = vadd.f32 %v7827_v41, %v3048_v21 }
 0x220   : > { %v6259_v50 = vpop.f32.mrb[80].mxu0 }
 0x221   : > { %v6260_v13 = vpop.f32.mrb[81].mxu0 }
 0x222   : > { %v6261_v6 = vadd.f32 %v6260_v13, %v6259_v50  ;;  %v6262_v11 = vpop.f32.mrb[82].mxu0 }
 0x223   : > { %v6263_v63 = vpop.f32.mrb[83].mxu0 }
 0x224   : > { %v6264_v8 = vadd.f32 %v6263_v63, %v6262_v11  ;;  %v7916_v5 = vadd.f32 %v6261_v6, %v3302_v44  ;;  %v7282_v44 = vmov 0.0  }
 0x225   : > { %293 = vst [vmem:[%s7925_s22] sm:$0x3] %v7282_v44 }
 0x226   : > { %v7918_v62 = vadd.f32 %v6264_v8, %v3305_v4 }
 0x228   : > { %v6265_v30 = vpop.f32.mrb[84].mxu0 }
 0x229   : > { %v6266_v36 = vpop.f32.mrb[85].mxu0 }
 0x22a   : > { %v6267_v55 = vadd.f32 %v6266_v36, %v6265_v30  ;;  %v6268_v22 = vpop.f32.mrb[86].mxu0 }
 0x22b   : > { %v6269_v31 = vpop.f32.mrb[87].mxu0 }
 0x22c   : > { %v6270_v2 = vadd.f32 %v6269_v31, %v6268_v22  ;;  %v6541_v33 = vadd.f32 %v6267_v55, %v7861_v1 }
 0x22e   : > { %v7922_v41 = vadd.f32 %v6270_v2, %v7867_v46 }
 0x230   : > { %v6271_v40 = vpop.f32.mrb[88].mxu0 }
 0x231   : > { %v6272_v4 = vpop.f32.mrb[89].mxu0 }
 0x232   : > { %v6273_v26 = vadd.f32 %v6272_v4, %v6271_v40  ;;  %v6274_v61 = vpop.f32.mrb[90].mxu0 }
 0x233   : > { %v6275_v48 = vpop.f32.mrb[91].mxu0 }
 0x234   : > { %v6276_v60 = vadd.f32 %v6275_v48, %v6274_v61  ;;  %v7928_v9 = vadd.f32 %v6273_v26, %v3318_v19 }
 0x236   : > { %v7930_v32 = vadd.f32 %v6276_v60, %v3321_v53 }
 0x238   : > { %v6277_v1 = vpop.f32.mrb[92].mxu0 }
 0x239   : > { %v6278_v7 = vpop.f32.mrb[93].mxu0 }
 0x23a   : > { %v6279_v46 = vadd.f32 %v6278_v7, %v6277_v1  ;;  %v6280_v49 = vpop.f32.mrb[94].mxu0 }
 0x23b   : > { %v6281_v0 = vpop.f32.mrb[95].mxu0 }
 0x23c   : > { %v6282_v57 = vadd.f32 %v6281_v0, %v6280_v49  ;;  %v7933_v17 = vadd.f32 %v6279_v46, %v7875_v27 }
 0x23e   : > { %v7936_v14 = vadd.f32 %v6282_v57, %v7883_v16 }
 0x240   : > { %v6283_v12 = vpop.f32.mrb[96].mxu0 }
 0x241   : > { %v6284_v58 = vpop.f32.mrb[97].mxu0 }
 0x242   : > { %v6285_v24 = vadd.f32 %v6284_v58, %v6283_v12  ;;  %v6286_v20 = vpop.f32.mrb[98].mxu0 }
 0x243   : > { %v6287_v19 = vpop.f32.mrb[99].mxu0 }
 0x244   : > { %v6288_v21 = vadd.f32 %v6287_v19, %v6286_v20  ;;  %v7939_v53 = vadd.f32 %v6285_v24, %v7893_v43 }
 0x246   : > { %v7941_v50 = vadd.f32 %v6288_v21, %v3337_v29 }
 0x248   : > { %v6289_v13 = vpop.f32.mrb[100].mxu0 }
 0x249   : > { %v6290_v6 = vpop.f32.mrb[101].mxu0 }
 0x24a   : > { %v6291_v11 = vadd.f32 %v6290_v6, %v6289_v13  ;;  %v6292_v63 = vpop.f32.mrb[102].mxu0 }
 0x24b   : > { %v6293_v27 = vpop.f32.mrb[103].mxu0 }
 0x24c   : > { %v6294_v8 = vadd.f32 %v6293_v27, %v6292_v63  ;;  %v7944_v16 = vadd.f32 %v6291_v11, %v7889_v10 }
 0x24e   : > { %v7947_v30 = vadd.f32 %v6294_v8, %v7897_v39 }
 0x250   : > { %v6295_v36 = vpop.f32.mrb[104].mxu0 }
 0x251   : > { %v6296_v55 = vpop.f32.mrb[105].mxu0 }
 0x252   : > { %v6297_v22 = vadd.f32 %v6296_v55, %v6295_v36  ;;  %v6298_v31 = vpop.f32.mrb[106].mxu0 }
 0x253   : > { %v6299_v43 = vpop.f32.mrb[107].mxu0 }
 0x254   : > { %v6300_v2 = vadd.f32 %v6299_v43, %v6298_v31  ;;  %v7949_v29 = vadd.f32 %v6297_v22, %v3350_v37 }
 0x256   : > { %v7951_v40 = vadd.f32 %v6300_v2, %v3353_v47 }
 0x258   : > { %v6301_v44 = vpop.f32.mrb[108].mxu0 }
 0x259   : > { %v6302_v4 = vpop.f32.mrb[109].mxu0 }
 0x25a   : > { %v6303_v26 = vadd.f32 %v6302_v4, %v6301_v44  ;;  %v6304_v61 = vpop.f32.mrb[110].mxu0 }
 0x25b   : > { %v6305_v10 = vpop.f32.mrb[111].mxu0 }
 0x25c   : > { %v6306_v48 = vadd.f32 %v6305_v10, %v6304_v61  ;;  %v7954_v39 = vadd.f32 %v6303_v26, %v7907_v3  ;;  %v6493_v7 = vpop.f32.mrb[80].mxu1 }
 0x25d   : > { %v6542_v37 = vadd.f32 %v6541_v33, %v6493_v7  ;;  %v4825_v47 = vpop.f32.mrb[81].mxu1 }
 0x25e   : > { %v7957_v60 = vadd.f32 %v6306_v48, %v7913_v54  ;;  %v6546_v57 = vadd.f32 %v7916_v5, %v4825_v47  ;;  %v6494_v12 = vpop.f32.mrb[82].mxu1 }
 0x25f   : > { %v6550_v24 = vadd.f32 %v7922_v41, %v6494_v12  ;;  %v4828_v3 = vpop.f32.mrb[83].mxu1  ;;  %v5187_v41 = vmul.f32 %v6542_v37, %v6542_v37 }
 0x260   : > { %v6307_v1 = vpop.f32.mrb[112].mxu0  ;;  %v6554_v54 = vadd.f32 %v7918_v62, %v4828_v3  ;;  %v5185_v13 = vmul.f32 %v6546_v57, %v6546_v57 }
 0x261   : > { %v6308_v46 = vpop.f32.mrb[113].mxu0  ;;  %v5884_v21 = vpack.c.bf16 %v6550_v24, %v6542_v37 }
 0x262   : > { %v6309_v49 = vadd.f32 %v6308_v46, %v6307_v1  ;;  %v6310_v0 = vpop.f32.mrb[114].mxu0  ;;  %v5879_v6 = vpack.c.bf16 %v6554_v54, %v6546_v57  ;;  %v5145_v11 = vadd.f32 %v6554_v54, %v6546_v57  ;;  %v5186_v63 = vmul.f32 %v6554_v54, %v6554_v54 }
 0x263   : > { %v6311_v58 = vpop.f32.mrb[115].mxu0  ;;  %5956 = vst [vmem:[%s7969_s9 + $0x8] sm:$0xff] %v5884_v21  }
 0x264   : > { %v6312_v20 = vadd.f32 %v6311_v58, %v6310_v0  ;;  %v7963_v19 = vadd.f32 %v7834_v15, %v6309_v49  ;;  %5880 = vst [vmem:[%s7969_s9] sm:$0xff] %v5879_v6   ;;  %v5146_v15 = vadd.f32 %v6542_v37, %v5145_v11  ;;  %v5217_v27 = vadd.f32 %v5186_v63, %v5185_v13  ;;  %v6497_v62 = vpop.f32.mrb[84].mxu1 }
 0x265   : > { %v6558_v31 = vadd.f32 %v7933_v17, %v6497_v62  ;;  %v4841_v43 = vpop.f32.mrb[85].mxu1 }
 0x266   : > { %v7967_v33 = vadd.f32 %v7836_v23, %v6312_v20  ;;  %v5188_v23 = vmul.f32 %v6550_v24, %v6550_v24  ;;  %v5218_v22 = vadd.f32 %v5217_v27, %v5187_v41  ;;  %v5147_v2 = vadd.f32 %v6550_v24, %v5146_v15  ;;  %v6498_v26 = vpop.f32.mrb[86].mxu1 }
 0x267   : > { %v6562_v4 = vadd.f32 %v7928_v9, %v4841_v43  ;;  %v6566_v1 = vadd.f32 %v7936_v14, %v6498_v26  ;;  %v4844_v7 = vpop.f32.mrb[87].mxu1  ;;  %v5191_v24 = vmul.f32 %v6558_v31, %v6558_v31 }
 0x268   : > { %v6313_v5 = vpop.f32.mrb[116].mxu0  ;;  %v5219_v48 = vadd.f32 %v5218_v22, %v5188_v23  ;;  %v6570_v17 = vadd.f32 %v7930_v32, %v4844_v7 }
 0x269   : > { %v6314_v8 = vpop.f32.mrb[117].mxu0  ;;  %v5148_v46 = vadd.f32 %v6562_v4, %v5147_v2  ;;  %v5189_v37 = vmul.f32 %v6562_v4, %v6562_v4  ;;  %v5894_v47 = vpack.c.bf16 %v6566_v1, %v6558_v31  ;;  %v5192_v13 = vmul.f32 %v6566_v1, %v6566_v1 }
 0x26a   : > { %v6315_v36 = vadd.f32 %v6314_v8, %v6313_v5  ;;  %v6316_v55 = vpop.f32.mrb[118].mxu0  ;;  %v5889_v0 = vpack.c.bf16 %v6570_v17, %v6562_v4  ;;  %v5190_v12 = vmul.f32 %v6570_v17, %v6570_v17 }
 0x26b   : > { %v6317_v44 = vpop.f32.mrb[119].mxu0  ;;  %v5220_v9 = vadd.f32 %v5219_v48, %v5189_v37  ;;  %v5149_v57 = vadd.f32 %v6570_v17, %v5148_v46  ;;  %5958 = vst [vmem:[%s7969_s9 + $0x18] sm:$0xff] %v5894_v47  }
 0x26c   : > { %v6318_v61 = vadd.f32 %v6317_v44, %v6316_v55  ;;  %v7976_v10 = vadd.f32 %v7838_v45, %v6315_v36  ;;  %5957 = vst [vmem:[%s7969_s9 + $0x10] sm:$0xff] %v5889_v0   ;;  %v6501_v3 = vpop.f32.mrb[88].mxu1 }
 0x26d   : > { %v5150_v20 = vadd.f32 %v6558_v31, %v5149_v57  ;;  %v5221_v14 = vadd.f32 %v5220_v9, %v5190_v12  ;;  %v6574_v32 = vadd.f32 %v7944_v16, %v6501_v3  ;;  %v8150_v31 = vld [vmem:[#allocation16_spill] sm:$0xff] }
 0x26e   : > { %v7981_v49 = vadd.f32 %v7840_v56, %v6318_v61  ;;  %v4857_v56 = vpop.f32.mrb[89].mxu1 }
 0x26f   : > { %v5222_v11 = vadd.f32 %v5221_v14, %v5191_v24  ;;  %v6578_v63 = vadd.f32 %v7939_v53, %v4857_v56  ;;  %v5151_v5 = vadd.f32 %v6566_v1, %v5150_v20  ;;  %v6502_v41 = vpop.f32.mrb[90].mxu1  ;;  %v5195_v26 = vmul.f32 %v6574_v32, %v6574_v32 }
 0x270   : > { %v6319_v58 = vpop.f32.mrb[120].mxu0  ;;  %v6582_v27 = vadd.f32 %v7947_v30, %v6502_v41  ;;  %v4860_v8 = vpop.f32.mrb[91].mxu1 }
 0x271   : > { %v6320_v45 = vpop.f32.mrb[121].mxu0  ;;  %v5152_v36 = vadd.f32 %v6578_v63, %v5151_v5  ;;  %v5193_v55 = vmul.f32 %v6578_v63, %v6578_v63  ;;  %v5223_v23 = vadd.f32 %v5222_v11, %v5192_v13  ;;  %v6586_v16 = vadd.f32 %v7941_v50, %v4860_v8 }
 0x272   : > { %v6321_v54 = vadd.f32 %v6320_v45, %v6319_v58  ;;  %v6322_v21 = vpop.f32.mrb[122].mxu0  ;;  %v5904_v22 = vpack.c.bf16 %v6582_v27, %v6574_v32  ;;  %v5196_v37 = vmul.f32 %v6582_v27, %v6582_v27 }
 0x273   : > { %v6323_v6 = vpop.f32.mrb[123].mxu0  ;;  %v5224_v53 = vadd.f32 %v5223_v23, %v5193_v55  ;;  %v5899_v2 = vpack.c.bf16 %v6586_v16, %v6578_v63  ;;  %v5153_v44 = vadd.f32 %v6586_v16, %v5152_v36  ;;  %v5194_v4 = vmul.f32 %v6586_v16, %v6586_v16 }
 0x274   : > { %v6324_v15 = vadd.f32 %v6323_v6, %v6322_v21  ;;  %v7989_v62 = vadd.f32 %v7842_v18, %v6321_v54  ;;  %5960 = vst [vmem:[%s7969_s9 + $0x28] sm:$0xff] %v5904_v22   ;;  %v6505_v1 = vpop.f32.mrb[92].mxu1 }
 0x275   : > { %5959 = vst [vmem:[%s7969_s9 + $0x20] sm:$0xff] %v5899_v2   ;;  %v5154_v61 = vadd.f32 %v6574_v32, %v5153_v44  ;;  %v5225_v18 = vadd.f32 %v5224_v53, %v5194_v4  ;;  %v6590_v17 = vadd.f32 %v7954_v39, %v6505_v1  ;;  %v4873_v47 = vpop.f32.mrb[93].mxu1  ;;  %v8151_v39 = vld [vmem:[#allocation17_spill] sm:$0xff] }
 0x276   : > { %v7993_v43 = vadd.f32 %v8150_v31, %v6324_v15  ;;  %v6594_v57 = vadd.f32 %v7949_v29, %v4873_v47  ;;  %v6506_v12 = vpop.f32.mrb[94].mxu1 }
 0x277   : > { %v5226_v50 = vadd.f32 %v5225_v18, %v5195_v26  ;;  %v5155_v9 = vadd.f32 %v6582_v27, %v5154_v61  ;;  %v6598_v20 = vadd.f32 %v7957_v60, %v6506_v12  ;;  %v4876_v14 = vpop.f32.mrb[95].mxu1  ;;  %v5199_v5 = vmul.f32 %v6590_v17, %v6590_v17 }
 0x278   : > { %v6325_v30 = vpop.f32.mrb[124].mxu0  ;;  %v5197_v54 = vmul.f32 %v6594_v57, %v6594_v57  ;;  %v6602_v21 = vadd.f32 %v7951_v40, %v4876_v14 }
 0x279   : > { %v6326_v48 = vpop.f32.mrb[125].mxu0  ;;  %v5227_v24 = vadd.f32 %v5226_v50, %v5196_v37  ;;  %v5156_v3 = vadd.f32 %v6594_v57, %v5155_v9  ;;  %v5914_v32 = vpack.c.bf16 %v6598_v20, %v6590_v17  ;;  %v5200_v36 = vmul.f32 %v6598_v20, %v6598_v20 }
 0x27a   : > { %v6327_v7 = vadd.f32 %v6326_v48, %v6325_v30  ;;  %v6328_v46 = vpop.f32.mrb[126].mxu0  ;;  %v5909_v6 = vpack.c.bf16 %v6602_v21, %v6594_v57  ;;  %v5198_v11 = vmul.f32 %v6602_v21, %v6602_v21 }
 0x27b   : > { %v6329_v0 = vpop.f32.mrb[127].mxu0  ;;  %v5228_v56 = vadd.f32 %v5227_v24, %v5197_v54  ;;  %v5157_v29 = vadd.f32 %v6602_v21, %v5156_v3  ;;  %5962 = vst [vmem:[%s7969_s9 + $0x38] sm:$0xff] %v5914_v32  }
 0x27c   : > { %v6330_v58 = vadd.f32 %v6329_v0, %v6328_v46  ;;  %v6616_v45 = vadd.f32 %v7846_v51, %v6327_v7  ;;  %5961 = vst [vmem:[%s7969_s9 + $0x30] sm:$0xff] %v5909_v6   ;;  %v6509_v60 = vpop.f32.mrb[0].mxu1 }
 0x27d   : > { %v5158_v51 = vadd.f32 %v6590_v17, %v5157_v29  ;;  %v5229_v41 = vadd.f32 %v5228_v56, %v5198_v11  ;;  %v6605_v40 = vadd.f32 %v7976_v10, %v6509_v60  ;;  %v4889_v23 = vpop.f32.mrb[1].mxu1 }
 0x27e   : > { %v6622_v13 = vadd.f32 %v8151_v39, %v6330_v58  ;;  %v6608_v31 = vadd.f32 %v7963_v19, %v4889_v23  ;;  %v6510_v53 = vpop.f32.mrb[2].mxu1 }
 0x27f   : > { %v5230_v55 = vadd.f32 %v5229_v41, %v5199_v5  ;;  %v5159_v16 = vadd.f32 %v6598_v20, %v5158_v51  ;;  %v6611_v30 = vadd.f32 %v7981_v49, %v6510_v53  ;;  %v4892_v26 = vpop.f32.mrb[3].mxu1  ;;  %v5203_v17 = vmul.f32 %v6605_v40, %v6605_v40 }
 0x280   : > { %v6331_v63 = vpop.f32.mrb[128].mxu0  ;;  %v5201_v18 = vmul.f32 %v6608_v31, %v6608_v31  ;;  %v6614_v48 = vadd.f32 %v7967_v33, %v4892_v26 }
 0x281   : > { %v6332_v15 = vpop.f32.mrb[129].mxu0  ;;  %v5231_v4 = vadd.f32 %v5230_v55, %v5200_v36  ;;  %v5160_v61 = vadd.f32 %v6608_v31, %v5159_v16  ;;  %v5924_v1 = vpack.c.bf16 %v6611_v30, %v6605_v40  ;;  %v5204_v57 = vmul.f32 %v6611_v30, %v6611_v30 }
 0x282   : > { %v6333_v27 = vadd.f32 %v6332_v15, %v6331_v63  ;;  %v6334_v8 = vpop.f32.mrb[130].mxu0  ;;  %v5919_v19 = vpack.c.bf16 %v6614_v48, %v6608_v31  ;;  %v5202_v37 = vmul.f32 %v6614_v48, %v6614_v48 }
 0x283   : > { %v6335_v22 = vpop.f32.mrb[131].mxu0  ;;  %v5232_v7 = vadd.f32 %v5231_v4, %v5201_v18  ;;  %v5161_v46 = vadd.f32 %v6614_v48, %v5160_v61  ;;  %5964 = vst [vmem:[%s7969_s9 + $0x48] sm:$0xff] %v5924_v1  }
 0x284   : > { %v6336_v2 = vadd.f32 %v6335_v22, %v6334_v8  ;;  %v6631_v44 = vadd.f32 %v7850_v34, %v6333_v27  ;;  %5963 = vst [vmem:[%s7969_s9 + $0x40] sm:$0xff] %v5919_v19   ;;  %v6513_v12 = vpop.f32.mrb[4].mxu1 }
 0x285   : > { %v5162_v47 = vadd.f32 %v6605_v40, %v5161_v46  ;;  %v5233_v49 = vadd.f32 %v5232_v7, %v5202_v37  ;;  %v4905_v24 = vpop.f32.mrb[5].mxu1 }
 0x286   : > { %v8011_v10 = vadd.f32 %v7852_v52, %v6336_v2  ;;  %v6617_v52 = vadd.f32 %v6616_v45, %v6513_v12  ;;  %v6620_v3 = vadd.f32 %v7989_v62, %v4905_v24  ;;  %v6514_v54 = vpop.f32.mrb[6].mxu1 }
 0x287   : > { %v5234_v58 = vadd.f32 %v5233_v49, %v5203_v17  ;;  %v5163_v20 = vadd.f32 %v6611_v30, %v5162_v47  ;;  %v6623_v32 = vadd.f32 %v6622_v13, %v6514_v54  ;;  %v4908_v56 = vpop.f32.mrb[7].mxu1 }
 0x288   : > { %v6337_v50 = vpop.f32.mrb[132].mxu0  ;;  %v5205_v11 = vmul.f32 %v6620_v3, %v6620_v3  ;;  %v6626_v63 = vadd.f32 %v7993_v43, %v4908_v56  ;;  %v5207_v60 = vmul.f32 %v6617_v52, %v6617_v52 }
 0x289   : > { %v6338_v34 = vpop.f32.mrb[133].mxu0  ;;  %v5235_v39 = vadd.f32 %v5234_v58, %v5204_v57  ;;  %v5164_v29 = vadd.f32 %v6620_v3, %v5163_v20  ;;  %v5934_v45 = vpack.c.bf16 %v6623_v32, %v6617_v52 }
 0x28a   : > { %v6339_v9 = vadd.f32 %v6338_v34, %v6337_v50  ;;  %v6340_v0 = vpop.f32.mrb[134].mxu0  ;;  %v5929_v51 = vpack.c.bf16 %v6626_v63, %v6620_v3  ;;  %v5206_v15 = vmul.f32 %v6626_v63, %v6626_v63 }
 0x28b   : > { %v6341_v33 = vpop.f32.mrb[135].mxu0  ;;  %v5236_v5 = vadd.f32 %v5235_v39, %v5205_v11  ;;  %v5165_v41 = vadd.f32 %v6626_v63, %v5164_v29  ;;  %5966 = vst [vmem:[%s7969_s9 + $0x58] sm:$0xff] %v5934_v45  }
 0x28c   : > { %v6342_v14 = vadd.f32 %v6341_v33, %v6340_v0  ;;  %v6628_v21 = vadd.f32 %v7854_v59, %v6339_v9  ;;  %5965 = vst [vmem:[%s7969_s9 + $0x50] sm:$0xff] %v5929_v51   ;;  %v6517_v13 = vpop.f32.mrb[8].mxu1 }
 0x28d   : > { %v5166_v59 = vadd.f32 %v6617_v52, %v5165_v41  ;;  %v5237_v27 = vadd.f32 %v5236_v5, %v5206_v15  ;;  %v4921_v16 = vpop.f32.mrb[9].mxu1 }
 0x28e   : > { %v6634_v6 = vadd.f32 %v7858_v28, %v6342_v14  ;;  %v5208_v28 = vmul.f32 %v6623_v32, %v6623_v32  ;;  %v6629_v23 = vadd.f32 %v6628_v21, %v6517_v13  ;;  %v6632_v31 = vadd.f32 %v6631_v44, %v4921_v16  ;;  %v6518_v53 = vpop.f32.mrb[10].mxu1 }
 0x28f   : > { %v5238_v40 = vadd.f32 %v5237_v27, %v5207_v60  ;;  %v5167_v43 = vadd.f32 %v6623_v32, %v5166_v59  ;;  %v4924_v61 = vpop.f32.mrb[11].mxu1 }
 0x290   : > { %v6343_v62 = vpop.f32.mrb[136].mxu0  ;;  %v6635_v26 = vadd.f32 %v6634_v6, %v6518_v53  ;;  %v5209_v48 = vmul.f32 %v6632_v31, %v6632_v31  ;;  %v6638_v1 = vadd.f32 %v8011_v10, %v4924_v61  ;;  %v5211_v47 = vmul.f32 %v6629_v23, %v6629_v23 }
 0x291   : > { %v6344_v8 = vpop.f32.mrb[137].mxu0  ;;  %v5239_v30 = vadd.f32 %v5238_v40, %v5208_v28  ;;  %v5168_v18 = vadd.f32 %v6632_v31, %v5167_v43 }
 0x292   : > { %v6345_v36 = vadd.f32 %v6344_v8, %v6343_v62  ;;  %v6346_v55 = vpop.f32.mrb[138].mxu0  ;;  %v5944_v19 = vpack.c.bf16 %v6635_v26, %v6629_v23  ;;  %v5939_v37 = vpack.c.bf16 %v6638_v1, %v6632_v31  ;;  %v5210_v44 = vmul.f32 %v6638_v1, %v6638_v1 }
 0x293   : > { %v6347_v22 = vpop.f32.mrb[139].mxu0  ;;  %v5240_v46 = vadd.f32 %v5239_v30, %v5209_v48  ;;  %v5169_v50 = vadd.f32 %v6638_v1, %v5168_v18  ;;  %v5212_v57 = vmul.f32 %v6635_v26, %v6635_v26 }
 0x294   : > { %v6348_v2 = vadd.f32 %v6347_v22, %v6346_v55  ;;  %v6643_v4 = vadd.f32 %v7871_v38, %v6345_v36  ;;  %5968 = vst [vmem:[%s7969_s9 + $0x68] sm:$0xff] %v5944_v19   ;;  %5967 = vst [vmem:[%s7969_s9 + $0x60] sm:$0xff] %v5939_v37  }
 0x295   : > { %v5170_v38 = vadd.f32 %v6629_v23, %v5169_v50  ;;  %v5241_v49 = vadd.f32 %v5240_v46, %v5210_v44 }
 0x296   : > { %v6649_v7 = vadd.f32 %v7878_v35, %v6348_v2  ;;  %v6521_v10 = vpop.f32.mrb[12].mxu1 }
 0x297   : > { %v5242_v35 = vadd.f32 %v5241_v49, %v5211_v47  ;;  %v4937_v58 = vpop.f32.mrb[13].mxu1  ;;  %v5171_v52 = vadd.f32 %v6635_v26, %v5170_v38 }
 0x298   : > { %v6349_v34 = vpop.f32.mrb[140].mxu0  ;;  %v6644_v20 = vadd.f32 %v6643_v4, %v4937_v58  ;;  %v6522_v14 = vpop.f32.mrb[14].mxu1 }
 0x299   : > { %v6350_v17 = vpop.f32.mrb[141].mxu0  ;;  %v5243_v54 = vadd.f32 %v5242_v35, %v5212_v57  ;;  %v4940_v39 = vpop.f32.mrb[15].mxu1 }
 0x29a   : > { %v6351_v9 = vadd.f32 %v6350_v17, %v6349_v34  ;;  %v6352_v0 = vpop.f32.mrb[142].mxu0  ;;  %v5172_v32 = vadd.f32 %v6644_v20, %v5171_v52  ;;  %v5213_v56 = vmul.f32 %v6644_v20, %v6644_v20  ;;  %v6650_v6 = vadd.f32 %v6649_v7, %v4940_v39 }
 0x29b   : > { %v6353_v12 = vpop.f32.mrb[143].mxu0 }
 0x29c   : > { %v6640_v33 = vadd.f32 %v7900_v25, %v6351_v9  ;;  %v6354_v24 = vadd.f32 %v6353_v12, %v6352_v0  ;;  %v5244_v11 = vadd.f32 %v5243_v54, %v5213_v56  ;;  %v5949_v63 = vpack.c.bf16 %v6650_v6, %v6644_v20 }
 0x29d   : > { %v5173_v45 = vadd.f32 %v6650_v6, %v5172_v32  ;;  %v5214_v5 = vmul.f32 %v6650_v6, %v6650_v6 }
 0x29e   : > { %v6641_v3 = vadd.f32 %v6640_v33, %v6521_v10  ;;  %v6646_v21 = vadd.f32 %v7902_v42, %v6354_v24  ;;  %5969 = vst [vmem:[%s7969_s9 + $0x70] sm:$0xff] %v5949_v63  }
 0x29f   : > { %v5245_v15 = vadd.f32 %v5244_v11, %v5214_v5 }
 0x2a0   : > { %v5215_v29 = vmul.f32 %v6641_v3, %v6641_v3  ;;  %v6647_v25 = vadd.f32 %v6646_v21, %v6522_v14  ;;  %v5174_v41 = vadd.f32 %v6641_v3, %v5173_v45 }
 0x2a2   : > { %v5954_v42 = vpack.c.bf16 %v6647_v25, %v6641_v3  ;;  %v5216_v51 = vmul.f32 %v6647_v25, %v6647_v25  ;;  %v5175_v62 = vadd.f32 %v6647_v25, %v5174_v41  ;;  %v5246_v60 = vadd.f32 %v5245_v15, %v5215_v29 }
 0x2a4   : > { %5970 = vst [vmem:[%s7969_s9 + $0x78] sm:$0xff] %v5954_v42  }
 0x2a5   : > { %7168 = shalt.err (!%p7165_p5)
}
 0x2a6   : > { %s7169_s4 = scalar_lea.hbm %s8033_s7, 2048  ;;  %s7173_s24 = scalar_lea.hbm %s8123_s2, 4096 }
 0x2a7   : > { %p7170_p9 = scmp.ne.s32.totalorder %s8033_s7, %s7169_s4  ;;  %p7174_p3 = scmp.lt.u32.totalorder %s8033_s7, %s8123_s2 }
 0x2a8   : > { %p7175_p7 = scmp.lt.u32.totalorder %s7173_s24, %s7169_s4  ;;  %p7177_p4 = scmp.lt.u32.totalorder %s7169_s4, %s8033_s7 }
 0x2a9   : > { %p7171_p1 = pnand %p7170_p9, %p7403_p10 }
 0x2aa   : > { %p7176_p13 = por %p7175_p7, %p7174_p3 }
 0x2ab   : > { %p7172_p2 = pneg %p7171_p1 }
 0x2ac   : > { %p7178_p6 = por %p7177_p4, %p7176_p13 }
 0x2ae   : > { %p7179_p8 = pnand %p7178_p6, %p7172_p2 }
 0x2b0   : > { %7182 = shalt.err (!%p7179_p8)
}
 0x2b1   : > { %s7284_s18 = smov 64   ;;  %s7285_s26 = smov 4   ;;  %v5176_v59 = vrot.slane %v5175_v62, 4  ;;  %v5247_v27 = vadd.f32 %v5246_v60, %v5216_v51  ;;  %v5144_v43 = vld [vmem:[%s7925_s22] sm:$0x1] }
 0x2b2   : > { %6705 = dma.vmem_to_hbm [thread:$0]  (%p7403_p10), %s8035_s11, 2048, %s8033_s7, %s5257_s8, %s7284_s18, %s7284_s18, %s7285_s26  }
 0x2b3   : > { %v5177_v8 = vadd.f32 %v5176_v59, %v5175_v62  ;;  %v5248_v13 = vrot.slane %v5247_v27, 4  ;;  %v5184_v53 = vld [vmem:[%s7925_s22 + $0x1] sm:$0x1]  ;;  %s5807_s11 = sshll.u32 %s7265_s15, 5  ;;  %s5292_s7 = sshll.u32 %s7925_s22, 4  ;;  %s8073_s7 = int_to_ptr.vmem [resolvable:$true] %s5292_s7 }
 0x2b4   : > { %s8071_s19 = scalar_lea.hbm %s8124_s3, %s5807_s11  ;;  %s5262_s25 = scalar_lea.sflag [#allocation11], %s7459_s27 }
 0x2b5   : > { %v5178_v36 = vrot.slane %v5177_v8, 2  ;;  %v5249_v55 = vadd.f32 %v5248_v13, %v5247_v27  ;;  %s7183_s29 = scalar_lea.vmem %s8073_s7, 32  ;;  %s7286_s15 = smov [#allocation10]  }
 0x2b6   : > { %p7184_p12 = scmp.ne.s32.totalorder %s8073_s7, %s7183_s29  ;;  %s7187_s4 = sshll.u32 %s7286_s15, 4  ;;  %s7188_s4 = int_to_ptr.vmem [resolvable:$false] %s7187_s4 }
 0x2b7   : > { %v5179_v28 = vadd.f32 %v5178_v36, %v5177_v8  ;;  %v5250_v40 = vrot.slane %v5249_v55, 2  ;;  %s7189_s6 = scalar_lea.vmem %s7188_s4, 64  ;;  %p7190_p5 = scmp.lt.s32.totalorder %s8073_s7, %s7188_s4 }
 0x2b8   : > { %p7185_p11 = pnand %p7184_p12, %p7403_p10  ;;  %p7191_p9 = scmp.lt.s32.totalorder %s7189_s6, %s7183_s29 }
 0x2b9   : > { %v5180_v23 = vrot.slane %v5179_v28, 1  ;;  %v5251_v16 = vadd.f32 %v5250_v40, %v5249_v55 }
 0x2ba   : > { %p7186_p0 = pneg %p7185_p11  ;;  %p7192_p1 = por %p7191_p9, %p7190_p5 }
 0x2bb   : > { %v5181_v22 = vadd.f32 %v5180_v23, %v5179_v28  ;;  %v5252_v31 = vrot.slane %v5251_v16, 1 }
 0x2bc   : > { %p7193_p2 = pnand %p7192_p1, %p7186_p0 }
 0x2bd   : > { %v5253_v2 = vadd.f32 %v5252_v31, %v5251_v16  ;;  %v5182_v4 = vadd.f32 %v5181_v22, %v5144_v43 }
 0x2bf   : > { %5183 = vst [vmem:[%s7925_s22] sm:$0x1] %v5182_v4  ;;  %v5254_v30 = vadd.f32 %v5253_v2, %v5184_v53 }
 0x2c1   : > { %5255 = vst [vmem:[%s7925_s22 + $0x1] sm:$0x1] %v5254_v30 }
 0x2c2   : > { %7196 = shalt.err (!%p7193_p2)
}
 0x2c3   : > { %s7197_s27 = scalar_lea.hbm %s8071_s19, 32  ;;  %s7201_s24 = scalar_lea.hbm %s8124_s3, 64 }
 0x2c4   : > { %p7198_p3 = scmp.ne.s32.totalorder %s8071_s19, %s7197_s27  ;;  %p7202_p4 = scmp.lt.u32.totalorder %s8071_s19, %s8124_s3 }
 0x2c5   : > { %p7203_p6 = scmp.lt.u32.totalorder %s7201_s24, %s7197_s27  ;;  %p7205_p12 = scmp.lt.u32.totalorder %s7197_s27, %s8071_s19 }
 0x2c6   : > { %p7199_p7 = pnand %p7198_p3, %p7403_p10 }
 0x2c7   : > { %p7204_p8 = por %p7203_p6, %p7202_p4 }
 0x2c8   : > { %p7200_p13 = pneg %p7199_p7 }
 0x2c9   : > { %p7206_p11 = por %p7205_p12, %p7204_p8 }
 0x2cb   : > { %p7207_p0 = pnand %p7206_p11, %p7200_p13 }
 0x2cd   : > { %7210 = shalt.err (!%p7207_p0)
}
 0x2ce   : > { %6706 = dma.vmem_to_hbm [thread:$0]  (%p7403_p10), %s8073_s7, 32, %s8071_s19, %s5262_s25  }
 0x2cf PF: > { %s5304_s18 = sand.u32 1, %s7253_s12   ;;  %p8152_p5 = scmp.ne.s32.totalorder %s8132_s23, 0 }
 0x2d0   : > { %p8153_p9 = scmp.ge.s32.totalorder %s7273_s17, 2  ;;  %s5305_s26 = scalar_lea.sflag [#allocation6], %s5304_s18 }
 0x2d2   : > { %p6718_p1 = pnand %p8153_p9, %p8152_p5 }
 0x2d4   : > { %7244 = dma.done.wait (!%p6718_p1), %s5305_s26, 2048  }
 0x2d5   : > { %7246 = vsyncadd (!%p6718_p1), %s5305_s26, 4294965248  ;;  %s5314_s11 = scalar_lea.sflag [#allocation11], %s5304_s18 }
 0x2d6   : > { %7248 = dma.done.wait (!%p6718_p1), %s5314_s11, 32  }
 0x2d7   : > { %7250 = vsyncadd (!%p6718_p1), %s5314_s11, 4294967264  ;;  %s24_s17 = sadd.s32 1, %s7273_s17   ;;  %s8154_s12 = smov %s7257_s13 }
 0x2d8   : > { %p21_p2 = scmp.ge.s32.totalorder %s24_s17, 4   ;;  %s8155_s13 = smov %s7261_s14 }
 0x2d9   : > { %s8156_s14 = smov %s7412_s5  ;;  %s8157_s15 = smov %s7269_s16 }
 0x2da   : > { %s8158_s16 = smov %s8160_s28  ;;  %23 = sbr.rel (!%p21_p2) target bundleno = 9 (0x9), region = 100 }
 0x2e1   :  { %5319 = vsyncpa [#allocation5], 1 }
 0x2e2   :  { %5321 = vsyncpa [#allocation5 + $0x1], 1 }
 0x2e3   :  { %5322 = vsyncpa [#allocation8], 1 }
 0x2e4   :  { %5323 = vsyncpa [#allocation6], 1 }
 0x2e5   :  { %5325 = vsyncpa [#allocation6 + $0x1], 1 }
 0x2e6   :  { %5326 = vsyncpa [#allocation11], 1 }
 0x2e7   :  { %5328 = vsyncpa [#allocation11 + $0x1], 1 }

</bundles_post_ra>
